<compile_context>
chip_gen: v7x
topology: tpu7x:2x2x1
jax: 0.10.0
libtpu: 0.0.40
codegen_flags: <defaults>
</compile_context>

<pallas_src>
import functools

import jax
import jax.numpy as jnp
from jax import lax
from jax.experimental import pallas as pl
from jax.experimental.pallas import tpu as pltpu

EPS = 1e-5                       # nn.BatchNorm2d default
_LANE = 128                      # lane width -> output-channel padding
_VMEM_LIMIT = 48 * 1024 * 1024   # safe on 64 MiB (v7x) and 128 MiB (v5e/v6e)


# ----------------------------------------------------------------------------
# Pallas kernels
# ----------------------------------------------------------------------------
def _conv3x3_kernel(x0_ref, x1_ref, x2_ref, w_ref, b_ref, y_ref, st_ref, *, W, d):
    """Direct 3x3 stride-1 conv on one (1, TH, W+2d, Cin) slab per vertical tap.

    9 accumulated (TH*W, Cin) @ (Cin, Cpad) MXU matmuls (f32 accumulation),
    + bias, writes the pre-BN f32 conv tile and per-tile partial BN statistics
    (per-channel sum and sum-of-squares).
    """
    TH = x0_ref.shape[1]
    Cin = x0_ref.shape[3]
    Cpad = w_ref.shape[2]
    m = TH * W
    slabs = (x0_ref, x1_ref, x2_ref)

    acc = jnp.zeros((m, Cpad), jnp.float32)
    for kh in range(3):
        for kw in range(3):
            # W-shifted window of the vertical-tap slab; Cin stays on lanes.
            xs = slabs[kh][0, :, kw * d:kw * d + W, :].reshape(m, Cin)
            acc = acc + jnp.dot(xs, w_ref[kh * 3 + kw],
                                preferred_element_type=jnp.float32)
    acc = acc + b_ref[...]                      # (m, Cpad) + (1, Cpad)
    y_ref[...] = acc

    st_ref[...] = jnp.concatenate(
        [jnp.sum(acc, axis=0, keepdims=True),
         jnp.sum(acc * acc, axis=0, keepdims=True)],
        axis=0).reshape(1, 1, 2, Cpad)


def _bn_relu_kernel(y_ref, scale_ref, shift_ref, o_ref):
    """Pass-2 epilogue: y * scale + shift, ReLU (conv1)."""
    y = y_ref[...] * scale_ref[...] + shift_ref[...]
    o_ref[...] = jnp.maximum(y, 0.0).astype(o_ref.dtype)


def _bn_skipadd_relu_kernel(y_ref, scale_ref, shift_ref, xs_ref, o_ref):
    """Pass-2 epilogue with identity skip (mode 'A'): BN + x + ReLU."""
    y = y_ref[...] * scale_ref[...] + shift_ref[...]
    o_ref[...] = jnp.maximum(y + xs_ref[...].astype(jnp.float32),
                             0.0).astype(o_ref.dtype)


def _bn_skipconv_relu_kernel(y_ref, scale_ref, shift_ref,
                             xs_ref, ws_ref, bs_ref, o_ref):
    """Pass-2 epilogue with 1x1-conv skip (mode 'B'): BN + (x @ Wskip + b) + ReLU."""
    y = y_ref[...] * scale_ref[...] + shift_ref[...]
    skip = jnp.dot(xs_ref[...], ws_ref[...],
                   preferred_element_type=jnp.float32) + bs_ref[...]
    o_ref[...] = jnp.maximum(y + skip, 0.0).astype(o_ref.dtype)


# ----------------------------------------------------------------------------
# pallas_call wrappers
# ----------------------------------------------------------------------------
def _round_up(x, m):
    return (x + m - 1) // m * m


def _pick_tile_h(H, W, max_rows):
    """Largest divisor of H such that the tile has <= max_rows output pixels."""
    th = 1
    for cand in range(1, H + 1):
        if H % cand == 0 and cand * W <= max_rows:
            th = cand
    return th


def _conv3x3(x_nhwc, w9, b_row, dilation, compute_dtype, max_tile_rows):
    """Direct 3x3 'same' stride-1 conv.  Returns (y (M, Cpad) f32, mean, var, TM)."""
    N, H, W, Cin = x_nhwc.shape
    Cpad = w9.shape[2]
    d = dilation
    TH = _pick_tile_h(H, W, max_tile_rows)
    nH = H // TH
    TM = TH * W
    M = N * H * W
    Wp = W + 2 * d

    # Three vertical-tap slabs (one per kernel row) -> halo-free H tiling;
    # the three horizontal taps are handled by in-kernel W shifts.
    xp = jnp.pad(x_nhwc.astype(compute_dtype), ((0, 0), (d, d), (d, d), (0, 0)))
    slabs = [xp[:, kh * d:kh * d + H] for kh in range(3)]     # (N, H, Wp, Cin)

    slab_spec = pl.BlockSpec((1, TH, Wp, Cin), lambda n, t: (n, t, 0, 0))
    kern = functools.partial(_conv3x3_kernel, W=W, d=d)

    y, stats = pl.pallas_call(
        kern,
        out_shape=(jax.ShapeDtypeStruct((M, Cpad), jnp.float32),
                   jax.ShapeDtypeStruct((N, nH, 2, Cpad), jnp.float32)),
        grid=(N, nH),
        in_specs=[slab_spec, slab_spec, slab_spec,
                  pl.BlockSpec((9, Cin, Cpad), lambda n, t: (0, 0, 0)),
                  pl.BlockSpec((1, Cpad), lambda n, t: (0, 0))],
        out_specs=[pl.BlockSpec((TM, Cpad), lambda n, t, nH=nH: (n * nH + t, 0)),
                   pl.BlockSpec((1, 1, 2, Cpad), lambda n, t: (n, t, 0, 0))],
        compiler_params=pltpu.CompilerParams(
            dimension_semantics=("parallel", "parallel"),
            vmem_limit_bytes=_VMEM_LIMIT),
    )(slabs[0], slabs[1], slabs[2], w9.astype(compute_dtype), b_row)

    # Tiny cross-tile reduction of the partial statistics (plain JAX).
    tot = jnp.sum(stats, axis=(0, 1))                          # (2, Cpad)
    mean = tot[0] / M
    var = jnp.maximum(tot[1] / M - mean * mean, 0.0)
    return y, mean, var, TM


def _epilogue(kernel, y2d, scale, shift, extra_args, extra_specs, out_dtype, TM):
    """Row-tiled elementwise epilogue (BN affine + optional skip + ReLU)."""
    M, Cpad = y2d.shape
    return pl.pallas_call(
        kernel,
        out_shape=jax.ShapeDtypeStruct((M, Cpad), out_dtype),
        grid=(M // TM,),
        in_specs=[pl.BlockSpec((TM, Cpad), lambda i: (i, 0)),
                  pl.BlockSpec((1, Cpad), lambda i: (0, 0)),
                  pl.BlockSpec((1, Cpad), lambda i: (0, 0))] + extra_specs,
        out_specs=pl.BlockSpec((TM, Cpad), lambda i: (i, 0)),
        compiler_params=pltpu.CompilerParams(
            dimension_semantics=("parallel",),
            vmem_limit_bytes=_VMEM_LIMIT),
    )(y2d, scale, shift, *extra_args)


# ----------------------------------------------------------------------------
# Parameter packing / BN folding (plain JAX glue, tiny)
# ----------------------------------------------------------------------------
def _pad_vec(v, cpad):
    return jnp.pad(v.astype(jnp.float32), (0, cpad - v.shape[0]))


def _pad_row(v, cpad):
    return _pad_vec(v, cpad).reshape(1, cpad)


def _pack_w3x3(w_oihw, cpad, in_pad=None):
    """(Cout, Cin, 3, 3) -> (9, Cin_pad, Cpad), zero-padded (padded taps are 0)."""
    cout, cin, kh, kw = w_oihw.shape
    w = jnp.transpose(w_oihw, (2, 3, 1, 0)).reshape(kh * kw, cin, cout)
    ci = cin if in_pad is None else in_pad
    return jnp.pad(w.astype(jnp.float32), ((0, 0), (0, ci - cin), (0, cpad - cout)))


def _bn_scale_shift(mean, var, gamma_pad, beta_pad):
    rstd = lax.rsqrt(var + EPS)
    scale = gamma_pad * rstd
    shift = beta_pad - mean * scale
    return (scale.reshape(1, -1).astype(jnp.float32),
            shift.reshape(1, -1).astype(jnp.float32))


def init_block_params(key, cin, cout, mode='B'):
    ks = jax.random.split(key, 6)
    s1 = 1.0 / jnp.sqrt(cin * 9.0)
    s2 = 1.0 / jnp.sqrt(cout * 9.0)
    params = dict(
        w1=jax.random.uniform(ks[0], (cout, cin, 3, 3), jnp.float32, -s1, s1),
        b1=jax.random.uniform(ks[1], (cout,), jnp.float32, -s1, s1),
        w2=jax.random.uniform(ks[2], (cout, cout, 3, 3), jnp.float32, -s2, s2),
        b2=jax.random.uniform(ks[3], (cout,), jnp.float32, -s2, s2),
        gamma1=jnp.ones((cout,), jnp.float32), beta1=jnp.zeros((cout,), jnp.float32),
        gamma2=jnp.ones((cout,), jnp.float32), beta2=jnp.zeros((cout,), jnp.float32),
    )
    if mode == 'B':
        ss = 1.0 / jnp.sqrt(float(cin))
        params['wskip'] = jax.random.uniform(ks[4], (cout, cin, 1, 1), jnp.float32, -ss, ss)
        params['bskip'] = jax.random.uniform(ks[5], (cout,), jnp.float32, -ss, ss)
    return params


# ----------------------------------------------------------------------------
# Forward pass
# ----------------------------------------------------------------------------
@functools.partial(jax.jit,
                   static_argnames=('mode', 'dilation', 'compute_dtype',
                                    'max_tile_rows'))
def block_forward(x_nchw, params, mode='B', dilation=1,
                  compute_dtype=jnp.bfloat16, max_tile_rows=2048):
    """Pallas implementation of `block.forward` (stride=1). NCHW in / NCHW out."""
    N, Cin, H, W = x_nchw.shape
    Cout = params['w1'].shape[0]
    Cpad = _round_up(Cout, _LANE)           # lane-dense output channels
    M = N * H * W

    x = jnp.transpose(x_nchw, (0, 2, 3, 1)).astype(jnp.float32)   # NHWC f32

    # --- conv1 (3x3, padding=dilation, dilation) + BN1 + ReLU --------------
    w1 = _pack_w3x3(params['w1'], Cpad)
    b1 = _pad_row(params['b1'], Cpad)
    y1_pre, mean1, var1, TM = _conv3x3(x, w1, b1, dilation, compute_dtype,
                                       max_tile_rows)
    scale1, shift1 = _bn_scale_shift(mean1, var1,
                                     _pad_vec(params['gamma1'], Cpad),
                                     _pad_vec(params['beta1'], Cpad))
    # Padded channels stay exactly 0 (zero weights/bias/gamma/beta).
    y1 = _epilogue(_bn_relu_kernel, y1_pre, scale1, shift1, [], [],
                   compute_dtype, TM)                             # (M, Cpad)

    # --- conv2 (3x3, padding=1) + BN2 --------------------------------------
    # y1 is carried at Cpad channels (zero padding), so conv2 stays lane-dense.
    y1_4d = y1.reshape(N, H, W, Cpad)
    w2 = _pack_w3x3(params['w2'], Cpad, in_pad=Cpad)
    b2 = _pad_row(params['b2'], Cpad)
    y2_pre, mean2, var2, TM2 = _conv3x3(y1_4d, w2, b2, 1, compute_dtype,
                                        max_tile_rows)
    scale2, shift2 = _bn_scale_shift(mean2, var2,
                                     _pad_vec(params['gamma2'], Cpad),
                                     _pad_vec(params['beta2'], Cpad))

    # --- skip + ReLU (inside the pass-2 epilogue kernel) --------------------
    if mode == 'B':
        x2d = x.reshape(M, Cin).astype(compute_dtype)
        wskip = jnp.transpose(params['wskip'][:, :, 0, 0], (1, 0))  # (Cin, Cout)
        wskip = jnp.pad(wskip.astype(jnp.float32),
                        ((0, 0), (0, Cpad - Cout))).astype(compute_dtype)
        bskip = _pad_row(params['bskip'], Cpad)
        out2d = _epilogue(
            _bn_skipconv_relu_kernel, y2_pre, scale2, shift2,
            [x2d, wskip, bskip],
            [pl.BlockSpec((TM2, Cin), lambda i: (i, 0)),
             pl.BlockSpec((Cin, Cpad), lambda i: (0, 0)),
             pl.BlockSpec((1, Cpad), lambda i: (0, 0))],
            jnp.float32, TM2)
    else:  # mode 'A': identity skip, no matmul -- plain f32 add
        assert Cin == Cout, "mode 'A' requires input_channels == output_channels"
        xpad = jnp.pad(x.reshape(M, Cin), ((0, 0), (0, Cpad - Cin)))
        out2d = _epilogue(
            _bn_skipadd_relu_kernel, y2_pre, scale2, shift2,
            [xpad],
            [pl.BlockSpec((TM2, Cpad), lambda i: (i, 0))],
            jnp.float32, TM2)

    out = out2d.reshape(N, H, W, Cpad)[..., :Cout]
    return jnp.transpose(out, (0, 3, 1, 2))                      # back to NCHW


# ----------------------------------------------------------------------------
# Pure-JAX reference (training-mode BN).  compute_dtype lets us build a
# matched-precision reference for the bf16-operand fast path.
# ----------------------------------------------------------------------------
def _bn_train(y_nchw, gamma, beta):
    mean = jnp.mean(y_nchw, axis=(0, 2, 3), keepdims=True)
    var = jnp.mean(jnp.square(y_nchw - mean), axis=(0, 2, 3), keepdims=True)
    return (y_nchw - mean) * lax.rsqrt(var + EPS) * gamma[None, :, None, None] \
        + beta[None, :, None, None]


def block_reference(x_nchw, params, mode='B', dilation=1,
                    compute_dtype=jnp.float32):
    cd = compute_dtype
    dn = ('NCHW', 'OIHW', 'NCHW')
    d = dilation

    def conv(inp, w, pad, dil):
        return lax.conv_general_dilated(
            inp.astype(cd), w.astype(cd), (1, 1), [(pad, pad), (pad, pad)],
            rhs_dilation=(dil, dil), dimension_numbers=dn,
            preferred_element_type=jnp.float32)

    y = conv(x_nchw, params['w1'], d, d) + params['b1'][None, :, None, None]
    y = jax.nn.relu(_bn_train(y, params['gamma1'], params['beta1']))
    y = conv(y, params['w2'], 1, 1) + params['b2'][None, :, None, None]
    y = _bn_train(y, params['gamma2'], params['beta2'])
    if mode == 'B':
        skip = conv(x_nchw, params['wskip'], 0, 1) \
            + params['bskip'][None, :, None, None]
    else:
        skip = x_nchw.astype(jnp.float32)
    return jax.nn.relu(y + skip)


# ----------------------------------------------------------------------------
if __name__ == "__main__":
    key = jax.random.PRNGKey(0)
    kx, kp, kp2 = jax.random.split(key, 3)

    N, Cin, Cout, H, W = 2, 4, 8, 16, 16

    # ---- mode 'B' (1x1-conv skip), dilation=1 ------------------------------
    x = jax.random.normal(kx, (N, Cin, H, W), jnp.float32)
    params_b = init_block_params(kp, Cin, Cout, mode='B')

    # strict check: f32 MXU operands; small tiles exercise the multi-tile
    # (partial sum / sumsq) BatchNorm path.
    out_f32 = jax.block_until_ready(
        block_forward(x, params_b, mode='B', dilation=1,
                      compute_dtype=jnp.float32, max_tile_rows=128))
    ref_f32 = block_reference(x, params_b, mode='B', dilation=1)
    assert out_f32.shape == (N, Cout, H, W), out_f32.shape
    assert jnp.allclose(out_f32, ref_f32, atol=1e-3, rtol=1e-3), \
        float(jnp.max(jnp.abs(out_f32 - ref_f32)))

    # fast path: bf16 MXU operands, f32 accumulation -- checked against a
    # matched bf16-operand reference (residual diff is accumulation order +
    # one bf16 quantisation boundary on the y1 intermediate).
    out_bf16 = jax.block_until_ready(
        block_forward(x, params_b, mode='B', dilation=1,
                      compute_dtype=jnp.bfloat16, max_tile_rows=2048))
    ref_bf16 = block_reference(x, params_b, mode='B', dilation=1,
                               compute_dtype=jnp.bfloat16)
    assert jnp.allclose(out_bf16, ref_bf16, atol=2e-2, rtol=2e-2), \
        float(jnp.max(jnp.abs(out_bf16 - ref_bf16)))

    # ---- mode 'A' (identity skip, Cin == Cout), dilation=2 -----------------
    x_a = jax.random.normal(kx, (N, Cout, H, W), jnp.float32)
    params_a = init_block_params(kp2, Cout, Cout, mode='A')
    out_a = jax.block_until_ready(
        block_forward(x_a, params_a, mode='A', dilation=2,
                      compute_dtype=jnp.float32, max_tile_rows=128))
    ref_a = block_reference(x_a, params_a, mode='A', dilation=2)
    assert jnp.allclose(out_a, ref_a, atol=1e-3, rtol=1e-3), \
        float(jnp.max(jnp.abs(out_a - ref_a)))

    # TODO(synk): fuse the BN1+ReLU epilogue with conv2's slab read to avoid
    # one HBM round trip of the intermediate activation.
    print("KERNEL_OK")
</pallas_src>

<mosaic_0001>
module attributes {stable_mosaic.version = 11 : i64} {
  func.func @_conv3x3_kernel(%arg0: i32, %arg1: i32, %arg2: memref<1x8x18x4xf32, #tpu.memory_space<vmem>>, %arg3: memref<1x8x18x4xf32, #tpu.memory_space<vmem>>, %arg4: memref<1x8x18x4xf32, #tpu.memory_space<vmem>>, %arg5: memref<9x4x128xf32, #tpu.memory_space<vmem>>, %arg6: memref<1x128xf32, #tpu.memory_space<vmem>>, %arg7: memref<128x128xf32, #tpu.memory_space<vmem>>, %arg8: memref<1x1x2x128xf32, #tpu.memory_space<vmem>>) attributes {dimension_semantics = [#tpu.dimension_semantics<parallel>, #tpu.dimension_semantics<parallel>], iteration_bounds = array<i64: 2, 2>, scalar_prefetch = 0 : i64, scratch_operands = 0 : i64, tpu.core_type = #tpu.core_type<tc>, window_params = [{transform_indices = @transform_0, window_bounds = array<i64: 1, 8, 18, 4>}, {transform_indices = @transform_1, window_bounds = array<i64: 1, 8, 18, 4>}, {transform_indices = @transform_2, window_bounds = array<i64: 1, 8, 18, 4>}, {pipeline_mode = #tpu.pipeline_mode<synchronous>, transform_indices = @transform_3, window_bounds = array<i64: 9, 4, 128>}, {pipeline_mode = #tpu.pipeline_mode<synchronous>, transform_indices = @transform_4, window_bounds = array<i64: 1, 128>}, {transform_indices = @transform_5, window_bounds = array<i64: 128, 128>}, {transform_indices = @transform_6, window_bounds = array<i64: 1, 1, 2, 128>}]} {
    %cst = arith.constant 0.000000e+00 : f32
    %0 = vector.broadcast %cst : f32 to vector<128x128xf32>
    %c0 = arith.constant 0 : index
    %c0_0 = arith.constant 0 : index
    %c0_1 = arith.constant 0 : index
    %c0_2 = arith.constant 0 : index
    %1 = vector.load %arg2[%c0, %c0_0, %c0_1, %c0_2] : memref<1x8x18x4xf32, #tpu.memory_space<vmem>>, vector<1x8x16x4xf32>
    %2 = vector.shape_cast %1 : vector<1x8x16x4xf32> to vector<8x16x4xf32>
    %3 = vector.shape_cast %2 : vector<8x16x4xf32> to vector<128x4xf32>
    %c0_3 = arith.constant 0 : index
    %c0_4 = arith.constant 0 : index
    %c0_5 = arith.constant 0 : index
    %4 = vector.load %arg5[%c0_3, %c0_4, %c0_5] : memref<9x4x128xf32, #tpu.memory_space<vmem>>, vector<1x4x128xf32>
    %5 = vector.shape_cast %4 : vector<1x4x128xf32> to vector<4x128xf32>
    %cst_6 = arith.constant dense<0.000000e+00> : vector<128x128xf32>
    %6 = tpu.matmul %3, %5, %cst_6 {dimension_numbers = #tpu.dot_dimension_numbers<[1], [0], [0], [1], [0, 0, 1, 1], [], []>} : vector<128x4xf32>, vector<4x128xf32>, vector<128x128xf32> -> vector<128x128xf32>
    %7 = arith.addf %0, %6 : vector<128x128xf32>
    %c0_7 = arith.constant 0 : index
    %c0_8 = arith.constant 0 : index
    %c1 = arith.constant 1 : index
    %c0_9 = arith.constant 0 : index
    %8 = vector.load %arg2[%c0_7, %c0_8, %c1, %c0_9] : memref<1x8x18x4xf32, #tpu.memory_space<vmem>>, vector<1x8x16x4xf32>
    %9 = vector.shape_cast %8 : vector<1x8x16x4xf32> to vector<8x16x4xf32>
    %10 = vector.shape_cast %9 : vector<8x16x4xf32> to vector<128x4xf32>
    %c1_10 = arith.constant 1 : index
    %c0_11 = arith.constant 0 : index
    %c0_12 = arith.constant 0 : index
    %11 = vector.load %arg5[%c1_10, %c0_11, %c0_12] : memref<9x4x128xf32, #tpu.memory_space<vmem>>, vector<1x4x128xf32>
    %12 = vector.shape_cast %11 : vector<1x4x128xf32> to vector<4x128xf32>
    %cst_13 = arith.constant dense<0.000000e+00> : vector<128x128xf32>
    %13 = tpu.matmul %10, %12, %cst_13 {dimension_numbers = #tpu.dot_dimension_numbers<[1], [0], [0], [1], [0, 0, 1, 1], [], []>} : vector<128x4xf32>, vector<4x128xf32>, vector<128x128xf32> -> vector<128x128xf32>
    %14 = arith.addf %7, %13 : vector<128x128xf32>
    %c0_14 = arith.constant 0 : index
    %c0_15 = arith.constant 0 : index
    %c2 = arith.constant 2 : index
    %c0_16 = arith.constant 0 : index
    %15 = vector.load %arg2[%c0_14, %c0_15, %c2, %c0_16] : memref<1x8x18x4xf32, #tpu.memory_space<vmem>>, vector<1x8x16x4xf32>
    %16 = vector.shape_cast %15 : vector<1x8x16x4xf32> to vector<8x16x4xf32>
    %17 = vector.shape_cast %16 : vector<8x16x4xf32> to vector<128x4xf32>
    %c2_17 = arith.constant 2 : index
    %c0_18 = arith.constant 0 : index
    %c0_19 = arith.constant 0 : index
    %18 = vector.load %arg5[%c2_17, %c0_18, %c0_19] : memref<9x4x128xf32, #tpu.memory_space<vmem>>, vector<1x4x128xf32>
    %19 = vector.shape_cast %18 : vector<1x4x128xf32> to vector<4x128xf32>
    %cst_20 = arith.constant dense<0.000000e+00> : vector<128x128xf32>
    %20 = tpu.matmul %17, %19, %cst_20 {dimension_numbers = #tpu.dot_dimension_numbers<[1], [0], [0], [1], [0, 0, 1, 1], [], []>} : vector<128x4xf32>, vector<4x128xf32>, vector<128x128xf32> -> vector<128x128xf32>
    %21 = arith.addf %14, %20 : vector<128x128xf32>
    %c0_21 = arith.constant 0 : index
    %c0_22 = arith.constant 0 : index
    %c0_23 = arith.constant 0 : index
    %c0_24 = arith.constant 0 : index
    %22 = vector.load %arg3[%c0_21, %c0_22, %c0_23, %c0_24] : memref<1x8x18x4xf32, #tpu.memory_space<vmem>>, vector<1x8x16x4xf32>
    %23 = vector.shape_cast %22 : vector<1x8x16x4xf32> to vector<8x16x4xf32>
    %24 = vector.shape_cast %23 : vector<8x16x4xf32> to vector<128x4xf32>
    %c3 = arith.constant 3 : index
    %c0_25 = arith.constant 0 : index
    %c0_26 = arith.constant 0 : index
    %25 = vector.load %arg5[%c3, %c0_25, %c0_26] : memref<9x4x128xf32, #tpu.memory_space<vmem>>, vector<1x4x128xf32>
    %26 = vector.shape_cast %25 : vector<1x4x128xf32> to vector<4x128xf32>
    %cst_27 = arith.constant dense<0.000000e+00> : vector<128x128xf32>
    %27 = tpu.matmul %24, %26, %cst_27 {dimension_numbers = #tpu.dot_dimension_numbers<[1], [0], [0], [1], [0, 0, 1, 1], [], []>} : vector<128x4xf32>, vector<4x128xf32>, vector<128x128xf32> -> vector<128x128xf32>
    %28 = arith.addf %21, %27 : vector<128x128xf32>
    %c0_28 = arith.constant 0 : index
    %c0_29 = arith.constant 0 : index
    %c1_30 = arith.constant 1 : index
    %c0_31 = arith.constant 0 : index
    %29 = vector.load %arg3[%c0_28, %c0_29, %c1_30, %c0_31] : memref<1x8x18x4xf32, #tpu.memory_space<vmem>>, vector<1x8x16x4xf32>
    %30 = vector.shape_cast %29 : vector<1x8x16x4xf32> to vector<8x16x4xf32>
    %31 = vector.shape_cast %30 : vector<8x16x4xf32> to vector<128x4xf32>
    %c4 = arith.constant 4 : index
    %c0_32 = arith.constant 0 : index
    %c0_33 = arith.constant 0 : index
    %32 = vector.load %arg5[%c4, %c0_32, %c0_33] : memref<9x4x128xf32, #tpu.memory_space<vmem>>, vector<1x4x128xf32>
    %33 = vector.shape_cast %32 : vector<1x4x128xf32> to vector<4x128xf32>
    %cst_34 = arith.constant dense<0.000000e+00> : vector<128x128xf32>
    %34 = tpu.matmul %31, %33, %cst_34 {dimension_numbers = #tpu.dot_dimension_numbers<[1], [0], [0], [1], [0, 0, 1, 1], [], []>} : vector<128x4xf32>, vector<4x128xf32>, vector<128x128xf32> -> vector<128x128xf32>
    %35 = arith.addf %28, %34 : vector<128x128xf32>
    %c0_35 = arith.constant 0 : index
    %c0_36 = arith.constant 0 : index
    %c2_37 = arith.constant 2 : index
    %c0_38 = arith.constant 0 : index
    %36 = vector.load %arg3[%c0_35, %c0_36, %c2_37, %c0_38] : memref<1x8x18x4xf32, #tpu.memory_space<vmem>>, vector<1x8x16x4xf32>
    %37 = vector.shape_cast %36 : vector<1x8x16x4xf32> to vector<8x16x4xf32>
    %38 = vector.shape_cast %37 : vector<8x16x4xf32> to vector<128x4xf32>
    %c5 = arith.constant 5 : index
    %c0_39 = arith.constant 0 : index
    %c0_40 = arith.constant 0 : index
    %39 = vector.load %arg5[%c5, %c0_39, %c0_40] : memref<9x4x128xf32, #tpu.memory_space<vmem>>, vector<1x4x128xf32>
    %40 = vector.shape_cast %39 : vector<1x4x128xf32> to vector<4x128xf32>
    %cst_41 = arith.constant dense<0.000000e+00> : vector<128x128xf32>
    %41 = tpu.matmul %38, %40, %cst_41 {dimension_numbers = #tpu.dot_dimension_numbers<[1], [0], [0], [1], [0, 0, 1, 1], [], []>} : vector<128x4xf32>, vector<4x128xf32>, vector<128x128xf32> -> vector<128x128xf32>
    %42 = arith.addf %35, %41 : vector<128x128xf32>
    %c0_42 = arith.constant 0 : index
    %c0_43 = arith.constant 0 : index
    %c0_44 = arith.constant 0 : index
    %c0_45 = arith.constant 0 : index
    %43 = vector.load %arg4[%c0_42, %c0_43, %c0_44, %c0_45] : memref<1x8x18x4xf32, #tpu.memory_space<vmem>>, vector<1x8x16x4xf32>
    %44 = vector.shape_cast %43 : vector<1x8x16x4xf32> to vector<8x16x4xf32>
    %45 = vector.shape_cast %44 : vector<8x16x4xf32> to vector<128x4xf32>
    %c6 = arith.constant 6 : index
    %c0_46 = arith.constant 0 : index
    %c0_47 = arith.constant 0 : index
    %46 = vector.load %arg5[%c6, %c0_46, %c0_47] : memref<9x4x128xf32, #tpu.memory_space<vmem>>, vector<1x4x128xf32>
    %47 = vector.shape_cast %46 : vector<1x4x128xf32> to vector<4x128xf32>
    %cst_48 = arith.constant dense<0.000000e+00> : vector<128x128xf32>
    %48 = tpu.matmul %45, %47, %cst_48 {dimension_numbers = #tpu.dot_dimension_numbers<[1], [0], [0], [1], [0, 0, 1, 1], [], []>} : vector<128x4xf32>, vector<4x128xf32>, vector<128x128xf32> -> vector<128x128xf32>
    %49 = arith.addf %42, %48 : vector<128x128xf32>
    %c0_49 = arith.constant 0 : index
    %c0_50 = arith.constant 0 : index
    %c1_51 = arith.constant 1 : index
    %c0_52 = arith.constant 0 : index
    %50 = vector.load %arg4[%c0_49, %c0_50, %c1_51, %c0_52] : memref<1x8x18x4xf32, #tpu.memory_space<vmem>>, vector<1x8x16x4xf32>
    %51 = vector.shape_cast %50 : vector<1x8x16x4xf32> to vector<8x16x4xf32>
    %52 = vector.shape_cast %51 : vector<8x16x4xf32> to vector<128x4xf32>
    %c7 = arith.constant 7 : index
    %c0_53 = arith.constant 0 : index
    %c0_54 = arith.constant 0 : index
    %53 = vector.load %arg5[%c7, %c0_53, %c0_54] : memref<9x4x128xf32, #tpu.memory_space<vmem>>, vector<1x4x128xf32>
    %54 = vector.shape_cast %53 : vector<1x4x128xf32> to vector<4x128xf32>
    %cst_55 = arith.constant dense<0.000000e+00> : vector<128x128xf32>
    %55 = tpu.matmul %52, %54, %cst_55 {dimension_numbers = #tpu.dot_dimension_numbers<[1], [0], [0], [1], [0, 0, 1, 1], [], []>} : vector<128x4xf32>, vector<4x128xf32>, vector<128x128xf32> -> vector<128x128xf32>
    %56 = arith.addf %49, %55 : vector<128x128xf32>
    %c0_56 = arith.constant 0 : index
    %c0_57 = arith.constant 0 : index
    %c2_58 = arith.constant 2 : index
    %c0_59 = arith.constant 0 : index
    %57 = vector.load %arg4[%c0_56, %c0_57, %c2_58, %c0_59] : memref<1x8x18x4xf32, #tpu.memory_space<vmem>>, vector<1x8x16x4xf32>
    %58 = vector.shape_cast %57 : vector<1x8x16x4xf32> to vector<8x16x4xf32>
    %59 = vector.shape_cast %58 : vector<8x16x4xf32> to vector<128x4xf32>
    %c8 = arith.constant 8 : index
    %c0_60 = arith.constant 0 : index
    %c0_61 = arith.constant 0 : index
    %60 = vector.load %arg5[%c8, %c0_60, %c0_61] : memref<9x4x128xf32, #tpu.memory_space<vmem>>, vector<1x4x128xf32>
    %61 = vector.shape_cast %60 : vector<1x4x128xf32> to vector<4x128xf32>
    %cst_62 = arith.constant dense<0.000000e+00> : vector<128x128xf32>
    %62 = tpu.matmul %59, %61, %cst_62 {dimension_numbers = #tpu.dot_dimension_numbers<[1], [0], [0], [1], [0, 0, 1, 1], [], []>} : vector<128x4xf32>, vector<4x128xf32>, vector<128x128xf32> -> vector<128x128xf32>
    %63 = arith.addf %56, %62 : vector<128x128xf32>
    %c0_63 = arith.constant 0 : index
    %c0_64 = arith.constant 0 : index
    %64 = vector.load %arg6[%c0_63, %c0_64] : memref<1x128xf32, #tpu.memory_space<vmem>>, vector<1x128xf32>
    %65 = vector.broadcast %64 : vector<1x128xf32> to vector<128x128xf32>
    %66 = arith.addf %63, %65 : vector<128x128xf32>
    %c0_65 = arith.constant 0 : index
    %c0_66 = arith.constant 0 : index
    %67 = vector.load %arg7[%c0_65, %c0_66] : memref<128x128xf32, #tpu.memory_space<vmem>>, vector<128x128xf32>
    tpu.vector_store %arg7[%c0_65, %c0_66], %66 {strides = array<i32>} : memref<128x128xf32, #tpu.memory_space<vmem>>, vector<128x128xf32>,
    %cst_67 = arith.constant dense<0.000000e+00> : vector<128xf32>
    %68 = vector.multi_reduction <add>, %66, %cst_67 [0] : vector<128x128xf32> to vector<128xf32>
    %69 = vector.shape_cast %68 : vector<128xf32> to vector<1x128xf32>
    %70 = arith.mulf %66, %66 : vector<128x128xf32>
    %cst_68 = arith.constant dense<0.000000e+00> : vector<128xf32>
    %71 = vector.multi_reduction <add>, %70, %cst_68 [0] : vector<128x128xf32> to vector<128xf32>
    %72 = vector.shape_cast %71 : vector<128xf32> to vector<1x128xf32>
    %73 = tpu.concatenate %69, %72 in 0 : vector<1x128xf32>, vector<1x128xf32> -> vector<2x128xf32>
    %74 = vector.shape_cast %73 : vector<2x128xf32> to vector<1x1x2x128xf32>
    %c0_69 = arith.constant 0 : index
    %c0_70 = arith.constant 0 : index
    %c0_71 = arith.constant 0 : index
    %c0_72 = arith.constant 0 : index
    %75 = vector.load %arg8[%c0_69, %c0_70, %c0_71, %c0_72] : memref<1x1x2x128xf32, #tpu.memory_space<vmem>>, vector<1x1x2x128xf32>
    tpu.vector_store %arg8[%c0_69, %c0_70, %c0_71, %c0_72], %74 {strides = array<i32>} : memref<1x1x2x128xf32, #tpu.memory_space<vmem>>, vector<1x1x2x128xf32>,
    return
  }
  func.func @transform_0(%arg0: i32, %arg1: i32) -> (i32, i32, i32, i32) {
    %c0_i32 = arith.constant 0 : i32
    %c0_i32_0 = arith.constant 0 : i32
    %c0_i32_1 = arith.constant 0 : i32
    return %arg0, %arg1, %c0_i32, %c0_i32_0 : i32, i32, i32, i32
  }
  func.func @transform_1(%arg0: i32, %arg1: i32) -> (i32, i32, i32, i32) {
    %c0_i32 = arith.constant 0 : i32
    %c0_i32_0 = arith.constant 0 : i32
    %c0_i32_1 = arith.constant 0 : i32
    return %arg0, %arg1, %c0_i32, %c0_i32_0 : i32, i32, i32, i32
  }
  func.func @transform_2(%arg0: i32, %arg1: i32) -> (i32, i32, i32, i32) {
    %c0_i32 = arith.constant 0 : i32
    %c0_i32_0 = arith.constant 0 : i32
    %c0_i32_1 = arith.constant 0 : i32
    return %arg0, %arg1, %c0_i32, %c0_i32_0 : i32, i32, i32, i32
  }
  func.func @transform_3(%arg0: i32, %arg1: i32) -> (i32, i32, i32) {
    %c0_i32 = arith.constant 0 : i32
    %c0_i32_0 = arith.constant 0 : i32
    %c0_i32_1 = arith.constant 0 : i32
    %c0_i32_2 = arith.constant 0 : i32
    return %c0_i32, %c0_i32_0, %c0_i32_1 : i32, i32, i32
  }
  func.func @transform_4(%arg0: i32, %arg1: i32) -> (i32, i32) {
    %c0_i32 = arith.constant 0 : i32
    %c0_i32_0 = arith.constant 0 : i32
    %c0_i32_1 = arith.constant 0 : i32
    return %c0_i32, %c0_i32_0 : i32, i32
  }
  func.func @transform_5(%arg0: i32, %arg1: i32) -> (i32, i32) {
    %c2_i32 = arith.constant 2 : i32
    %0 = arith.muli %arg0, %c2_i32 : i32
    %1 = arith.addi %0, %arg1 : i32
    %c0_i32 = arith.constant 0 : i32
    %c0_i32_0 = arith.constant 0 : i32
    return %1, %c0_i32 : i32, i32
  }
  func.func @transform_6(%arg0: i32, %arg1: i32) -> (i32, i32, i32, i32) {
    %c0_i32 = arith.constant 0 : i32
    %c0_i32_0 = arith.constant 0 : i32
    %c0_i32_1 = arith.constant 0 : i32
    return %arg0, %arg1, %c0_i32, %c0_i32_0 : i32, i32, i32, i32
  }
}

module attributes {stable_mosaic.version = 11 : i64} {
  func.func @_bn_relu_kernel(%arg0: i32, %arg1: memref<128x128xf32, #tpu.memory_space<vmem>>, %arg2: memref<1x128xf32, #tpu.memory_space<vmem>>, %arg3: memref<1x128xf32, #tpu.memory_space<vmem>>, %arg4: memref<128x128xf32, #tpu.memory_space<vmem>>) attributes {dimension_semantics = [#tpu.dimension_semantics<parallel>], iteration_bounds = array<i64: 4>, scalar_prefetch = 0 : i64, scratch_operands = 0 : i64, tpu.core_type = #tpu.core_type<tc>, window_params = [{transform_indices = @transform_0, window_bounds = array<i64: 128, 128>}, {pipeline_mode = #tpu.pipeline_mode<synchronous>, transform_indices = @transform_1, window_bounds = array<i64: 1, 128>}, {pipeline_mode = #tpu.pipeline_mode<synchronous>, transform_indices = @transform_2, window_bounds = array<i64: 1, 128>}, {transform_indices = @transform_3, window_bounds = array<i64: 128, 128>}]} {
    %c0 = arith.constant 0 : index
    %c0_0 = arith.constant 0 : index
    %0 = vector.load %arg1[%c0, %c0_0] : memref<128x128xf32, #tpu.memory_space<vmem>>, vector<128x128xf32>
    %c0_1 = arith.constant 0 : index
    %c0_2 = arith.constant 0 : index
    %1 = vector.load %arg2[%c0_1, %c0_2] : memref<1x128xf32, #tpu.memory_space<vmem>>, vector<1x128xf32>
    %2 = vector.broadcast %1 : vector<1x128xf32> to vector<128x128xf32>
    %3 = arith.mulf %0, %2 : vector<128x128xf32>
    %c0_3 = arith.constant 0 : index
    %c0_4 = arith.constant 0 : index
    %4 = vector.load %arg3[%c0_3, %c0_4] : memref<1x128xf32, #tpu.memory_space<vmem>>, vector<1x128xf32>
    %5 = vector.broadcast %4 : vector<1x128xf32> to vector<128x128xf32>
    %6 = arith.addf %3, %5 : vector<128x128xf32>
    %cst = arith.constant 0.000000e+00 : f32
    %7 = vector.broadcast %cst : f32 to vector<128x128xf32>
    %8 = arith.maximumf %6, %7 : vector<128x128xf32>
    %c0_5 = arith.constant 0 : index
    %c0_6 = arith.constant 0 : index
    %9 = vector.load %arg4[%c0_5, %c0_6] : memref<128x128xf32, #tpu.memory_space<vmem>>, vector<128x128xf32>
    tpu.vector_store %arg4[%c0_5, %c0_6], %8 {strides = array<i32>} : memref<128x128xf32, #tpu.memory_space<vmem>>, vector<128x128xf32>,
    return
  }
  func.func @transform_0(%arg0: i32) -> (i32, i32) {
    %c0_i32 = arith.constant 0 : i32
    %c0_i32_0 = arith.constant 0 : i32
    return %arg0, %c0_i32 : i32, i32
  }
  func.func @transform_1(%arg0: i32) -> (i32, i32) {
    %c0_i32 = arith.constant 0 : i32
    %c0_i32_0 = arith.constant 0 : i32
    %c0_i32_1 = arith.constant 0 : i32
    return %c0_i32, %c0_i32_0 : i32, i32
  }
  func.func @transform_2(%arg0: i32) -> (i32, i32) {
    %c0_i32 = arith.constant 0 : i32
    %c0_i32_0 = arith.constant 0 : i32
    %c0_i32_1 = arith.constant 0 : i32
    return %c0_i32, %c0_i32_0 : i32, i32
  }
  func.func @transform_3(%arg0: i32) -> (i32, i32) {
    %c0_i32 = arith.constant 0 : i32
    %c0_i32_0 = arith.constant 0 : i32
    return %arg0, %c0_i32 : i32, i32
  }
}

module attributes {stable_mosaic.version = 11 : i64} {
  func.func @_conv3x3_kernel(%arg0: i32, %arg1: i32, %arg2: memref<1x8x18x128xf32, #tpu.memory_space<vmem>>, %arg3: memref<1x8x18x128xf32, #tpu.memory_space<vmem>>, %arg4: memref<1x8x18x128xf32, #tpu.memory_space<vmem>>, %arg5: memref<9x128x128xf32, #tpu.memory_space<vmem>>, %arg6: memref<1x128xf32, #tpu.memory_space<vmem>>, %arg7: memref<128x128xf32, #tpu.memory_space<vmem>>, %arg8: memref<1x1x2x128xf32, #tpu.memory_space<vmem>>) attributes {dimension_semantics = [#tpu.dimension_semantics<parallel>, #tpu.dimension_semantics<parallel>], iteration_bounds = array<i64: 2, 2>, scalar_prefetch = 0 : i64, scratch_operands = 0 : i64, tpu.core_type = #tpu.core_type<tc>, window_params = [{transform_indices = @transform_0, window_bounds = array<i64: 1, 8, 18, 128>}, {transform_indices = @transform_1, window_bounds = array<i64: 1, 8, 18, 128>}, {transform_indices = @transform_2, window_bounds = array<i64: 1, 8, 18, 128>}, {pipeline_mode = #tpu.pipeline_mode<synchronous>, transform_indices = @transform_3, window_bounds = array<i64: 9, 128, 128>}, {pipeline_mode = #tpu.pipeline_mode<synchronous>, transform_indices = @transform_4, window_bounds = array<i64: 1, 128>}, {transform_indices = @transform_5, window_bounds = array<i64: 128, 128>}, {transform_indices = @transform_6, window_bounds = array<i64: 1, 1, 2, 128>}]} {
    %cst = arith.constant 0.000000e+00 : f32
    %0 = vector.broadcast %cst : f32 to vector<128x128xf32>
    %c0 = arith.constant 0 : index
    %c0_0 = arith.constant 0 : index
    %c0_1 = arith.constant 0 : index
    %c0_2 = arith.constant 0 : index
    %1 = vector.load %arg2[%c0, %c0_0, %c0_1, %c0_2] : memref<1x8x18x128xf32, #tpu.memory_space<vmem>>, vector<1x8x16x128xf32>
    %2 = vector.shape_cast %1 : vector<1x8x16x128xf32> to vector<8x16x128xf32>
    %3 = vector.shape_cast %2 : vector<8x16x128xf32> to vector<128x128xf32>
    %c0_3 = arith.constant 0 : index
    %c0_4 = arith.constant 0 : index
    %c0_5 = arith.constant 0 : index
    %4 = vector.load %arg5[%c0_3, %c0_4, %c0_5] : memref<9x128x128xf32, #tpu.memory_space<vmem>>, vector<1x128x128xf32>
    %5 = vector.shape_cast %4 : vector<1x128x128xf32> to vector<128x128xf32>
    %cst_6 = arith.constant dense<0.000000e+00> : vector<128x128xf32>
    %6 = tpu.matmul %3, %5, %cst_6 {dimension_numbers = #tpu.dot_dimension_numbers<[1], [0], [0], [1], [0, 0, 1, 1], [], []>} : vector<128x128xf32>, vector<128x128xf32>, vector<128x128xf32> -> vector<128x128xf32>
    %7 = arith.addf %0, %6 : vector<128x128xf32>
    %c0_7 = arith.constant 0 : index
    %c0_8 = arith.constant 0 : index
    %c1 = arith.constant 1 : index
    %c0_9 = arith.constant 0 : index
    %8 = vector.load %arg2[%c0_7, %c0_8, %c1, %c0_9] : memref<1x8x18x128xf32, #tpu.memory_space<vmem>>, vector<1x8x16x128xf32>
    %9 = vector.shape_cast %8 : vector<1x8x16x128xf32> to vector<8x16x128xf32>
    %10 = vector.shape_cast %9 : vector<8x16x128xf32> to vector<128x128xf32>
    %c1_10 = arith.constant 1 : index
    %c0_11 = arith.constant 0 : index
    %c0_12 = arith.constant 0 : index
    %11 = vector.load %arg5[%c1_10, %c0_11, %c0_12] : memref<9x128x128xf32, #tpu.memory_space<vmem>>, vector<1x128x128xf32>
    %12 = vector.shape_cast %11 : vector<1x128x128xf32> to vector<128x128xf32>
    %cst_13 = arith.constant dense<0.000000e+00> : vector<128x128xf32>
    %13 = tpu.matmul %10, %12, %cst_13 {dimension_numbers = #tpu.dot_dimension_numbers<[1], [0], [0], [1], [0, 0, 1, 1], [], []>} : vector<128x128xf32>, vector<128x128xf32>, vector<128x128xf32> -> vector<128x128xf32>
    %14 = arith.addf %7, %13 : vector<128x128xf32>
    %c0_14 = arith.constant 0 : index
    %c0_15 = arith.constant 0 : index
    %c2 = arith.constant 2 : index
    %c0_16 = arith.constant 0 : index
    %15 = vector.load %arg2[%c0_14, %c0_15, %c2, %c0_16] : memref<1x8x18x128xf32, #tpu.memory_space<vmem>>, vector<1x8x16x128xf32>
    %16 = vector.shape_cast %15 : vector<1x8x16x128xf32> to vector<8x16x128xf32>
    %17 = vector.shape_cast %16 : vector<8x16x128xf32> to vector<128x128xf32>
    %c2_17 = arith.constant 2 : index
    %c0_18 = arith.constant 0 : index
    %c0_19 = arith.constant 0 : index
    %18 = vector.load %arg5[%c2_17, %c0_18, %c0_19] : memref<9x128x128xf32, #tpu.memory_space<vmem>>, vector<1x128x128xf32>
    %19 = vector.shape_cast %18 : vector<1x128x128xf32> to vector<128x128xf32>
    %cst_20 = arith.constant dense<0.000000e+00> : vector<128x128xf32>
    %20 = tpu.matmul %17, %19, %cst_20 {dimension_numbers = #tpu.dot_dimension_numbers<[1], [0], [0], [1], [0, 0, 1, 1], [], []>} : vector<128x128xf32>, vector<128x128xf32>, vector<128x128xf32> -> vector<128x128xf32>
    %21 = arith.addf %14, %20 : vector<128x128xf32>
    %c0_21 = arith.constant 0 : index
    %c0_22 = arith.constant 0 : index
    %c0_23 = arith.constant 0 : index
    %c0_24 = arith.constant 0 : index
    %22 = vector.load %arg3[%c0_21, %c0_22, %c0_23, %c0_24] : memref<1x8x18x128xf32, #tpu.memory_space<vmem>>, vector<1x8x16x128xf32>
    %23 = vector.shape_cast %22 : vector<1x8x16x128xf32> to vector<8x16x128xf32>
    %24 = vector.shape_cast %23 : vector<8x16x128xf32> to vector<128x128xf32>
    %c3 = arith.constant 3 : index
    %c0_25 = arith.constant 0 : index
    %c0_26 = arith.constant 0 : index
    %25 = vector.load %arg5[%c3, %c0_25, %c0_26] : memref<9x128x128xf32, #tpu.memory_space<vmem>>, vector<1x128x128xf32>
    %26 = vector.shape_cast %25 : vector<1x128x128xf32> to vector<128x128xf32>
    %cst_27 = arith.constant dense<0.000000e+00> : vector<128x128xf32>
    %27 = tpu.matmul %24, %26, %cst_27 {dimension_numbers = #tpu.dot_dimension_numbers<[1], [0], [0], [1], [0, 0, 1, 1], [], []>} : vector<128x128xf32>, vector<128x128xf32>, vector<128x128xf32> -> vector<128x128xf32>
    %28 = arith.addf %21, %27 : vector<128x128xf32>
    %c0_28 = arith.constant 0 : index
    %c0_29 = arith.constant 0 : index
    %c1_30 = arith.constant 1 : index
    %c0_31 = arith.constant 0 : index
    %29 = vector.load %arg3[%c0_28, %c0_29, %c1_30, %c0_31] : memref<1x8x18x128xf32, #tpu.memory_space<vmem>>, vector<1x8x16x128xf32>
    %30 = vector.shape_cast %29 : vector<1x8x16x128xf32> to vector<8x16x128xf32>
    %31 = vector.shape_cast %30 : vector<8x16x128xf32> to vector<128x128xf32>
    %c4 = arith.constant 4 : index
    %c0_32 = arith.constant 0 : index
    %c0_33 = arith.constant 0 : index
    %32 = vector.load %arg5[%c4, %c0_32, %c0_33] : memref<9x128x128xf32, #tpu.memory_space<vmem>>, vector<1x128x128xf32>
    %33 = vector.shape_cast %32 : vector<1x128x128xf32> to vector<128x128xf32>
    %cst_34 = arith.constant dense<0.000000e+00> : vector<128x128xf32>
    %34 = tpu.matmul %31, %33, %cst_34 {dimension_numbers = #tpu.dot_dimension_numbers<[1], [0], [0], [1], [0, 0, 1, 1], [], []>} : vector<128x128xf32>, vector<128x128xf32>, vector<128x128xf32> -> vector<128x128xf32>
    %35 = arith.addf %28, %34 : vector<128x128xf32>
    %c0_35 = arith.constant 0 : index
    %c0_36 = arith.constant 0 : index
    %c2_37 = arith.constant 2 : index
    %c0_38 = arith.constant 0 : index
    %36 = vector.load %arg3[%c0_35, %c0_36, %c2_37, %c0_38] : memref<1x8x18x128xf32, #tpu.memory_space<vmem>>, vector<1x8x16x128xf32>
    %37 = vector.shape_cast %36 : vector<1x8x16x128xf32> to vector<8x16x128xf32>
    %38 = vector.shape_cast %37 : vector<8x16x128xf32> to vector<128x128xf32>
    %c5 = arith.constant 5 : index
    %c0_39 = arith.constant 0 : index
    %c0_40 = arith.constant 0 : index
    %39 = vector.load %arg5[%c5, %c0_39, %c0_40] : memref<9x128x128xf32, #tpu.memory_space<vmem>>, vector<1x128x128xf32>
    %40 = vector.shape_cast %39 : vector<1x128x128xf32> to vector<128x128xf32>
    %cst_41 = arith.constant dense<0.000000e+00> : vector<128x128xf32>
    %41 = tpu.matmul %38, %40, %cst_41 {dimension_numbers = #tpu.dot_dimension_numbers<[1], [0], [0], [1], [0, 0, 1, 1], [], []>} : vector<128x128xf32>, vector<128x128xf32>, vector<128x128xf32> -> vector<128x128xf32>
    %42 = arith.addf %35, %41 : vector<128x128xf32>
    %c0_42 = arith.constant 0 : index
    %c0_43 = arith.constant 0 : index
    %c0_44 = arith.constant 0 : index
    %c0_45 = arith.constant 0 : index
    %43 = vector.load %arg4[%c0_42, %c0_43, %c0_44, %c0_45] : memref<1x8x18x128xf32, #tpu.memory_space<vmem>>, vector<1x8x16x128xf32>
    %44 = vector.shape_cast %43 : vector<1x8x16x128xf32> to vector<8x16x128xf32>
    %45 = vector.shape_cast %44 : vector<8x16x128xf32> to vector<128x128xf32>
    %c6 = arith.constant 6 : index
    %c0_46 = arith.constant 0 : index
    %c0_47 = arith.constant 0 : index
    %46 = vector.load %arg5[%c6, %c0_46, %c0_47] : memref<9x128x128xf32, #tpu.memory_space<vmem>>, vector<1x128x128xf32>
    %47 = vector.shape_cast %46 : vector<1x128x128xf32> to vector<128x128xf32>
    %cst_48 = arith.constant dense<0.000000e+00> : vector<128x128xf32>
    %48 = tpu.matmul %45, %47, %cst_48 {dimension_numbers = #tpu.dot_dimension_numbers<[1], [0], [0], [1], [0, 0, 1, 1], [], []>} : vector<128x128xf32>, vector<128x128xf32>, vector<128x128xf32> -> vector<128x128xf32>
    %49 = arith.addf %42, %48 : vector<128x128xf32>
    %c0_49 = arith.constant 0 : index
    %c0_50 = arith.constant 0 : index
    %c1_51 = arith.constant 1 : index
    %c0_52 = arith.constant 0 : index
    %50 = vector.load %arg4[%c0_49, %c0_50, %c1_51, %c0_52] : memref<1x8x18x128xf32, #tpu.memory_space<vmem>>, vector<1x8x16x128xf32>
    %51 = vector.shape_cast %50 : vector<1x8x16x128xf32> to vector<8x16x128xf32>
    %52 = vector.shape_cast %51 : vector<8x16x128xf32> to vector<128x128xf32>
    %c7 = arith.constant 7 : index
    %c0_53 = arith.constant 0 : index
    %c0_54 = arith.constant 0 : index
    %53 = vector.load %arg5[%c7, %c0_53, %c0_54] : memref<9x128x128xf32, #tpu.memory_space<vmem>>, vector<1x128x128xf32>
    %54 = vector.shape_cast %53 : vector<1x128x128xf32> to vector<128x128xf32>
    %cst_55 = arith.constant dense<0.000000e+00> : vector<128x128xf32>
    %55 = tpu.matmul %52, %54, %cst_55 {dimension_numbers = #tpu.dot_dimension_numbers<[1], [0], [0], [1], [0, 0, 1, 1], [], []>} : vector<128x128xf32>, vector<128x128xf32>, vector<128x128xf32> -> vector<128x128xf32>
    %56 = arith.addf %49, %55 : vector<128x128xf32>
    %c0_56 = arith.constant 0 : index
    %c0_57 = arith.constant 0 : index
    %c2_58 = arith.constant 2 : index
    %c0_59 = arith.constant 0 : index
    %57 = vector.load %arg4[%c0_56, %c0_57, %c2_58, %c0_59] : memref<1x8x18x128xf32, #tpu.memory_space<vmem>>, vector<1x8x16x128xf32>
    %58 = vector.shape_cast %57 : vector<1x8x16x128xf32> to vector<8x16x128xf32>
    %59 = vector.shape_cast %58 : vector<8x16x128xf32> to vector<128x128xf32>
    %c8 = arith.constant 8 : index
    %c0_60 = arith.constant 0 : index
    %c0_61 = arith.constant 0 : index
    %60 = vector.load %arg5[%c8, %c0_60, %c0_61] : memref<9x128x128xf32, #tpu.memory_space<vmem>>, vector<1x128x128xf32>
    %61 = vector.shape_cast %60 : vector<1x128x128xf32> to vector<128x128xf32>
    %cst_62 = arith.constant dense<0.000000e+00> : vector<128x128xf32>
    %62 = tpu.matmul %59, %61, %cst_62 {dimension_numbers = #tpu.dot_dimension_numbers<[1], [0], [0], [1], [0, 0, 1, 1], [], []>} : vector<128x128xf32>, vector<128x128xf32>, vector<128x128xf32> -> vector<128x128xf32>
    %63 = arith.addf %56, %62 : vector<128x128xf32>
    %c0_63 = arith.constant 0 : index
    %c0_64 = arith.constant 0 : index
    %64 = vector.load %arg6[%c0_63, %c0_64] : memref<1x128xf32, #tpu.memory_space<vmem>>, vector<1x128xf32>
    %65 = vector.broadcast %64 : vector<1x128xf32> to vector<128x128xf32>
    %66 = arith.addf %63, %65 : vector<128x128xf32>
    %c0_65 = arith.constant 0 : index
    %c0_66 = arith.constant 0 : index
    %67 = vector.load %arg7[%c0_65, %c0_66] : memref<128x128xf32, #tpu.memory_space<vmem>>, vector<128x128xf32>
    tpu.vector_store %arg7[%c0_65, %c0_66], %66 {strides = array<i32>} : memref<128x128xf32, #tpu.memory_space<vmem>>, vector<128x128xf32>,
    %cst_67 = arith.constant dense<0.000000e+00> : vector<128xf32>
    %68 = vector.multi_reduction <add>, %66, %cst_67 [0] : vector<128x128xf32> to vector<128xf32>
    %69 = vector.shape_cast %68 : vector<128xf32> to vector<1x128xf32>
    %70 = arith.mulf %66, %66 : vector<128x128xf32>
    %cst_68 = arith.constant dense<0.000000e+00> : vector<128xf32>
    %71 = vector.multi_reduction <add>, %70, %cst_68 [0] : vector<128x128xf32> to vector<128xf32>
    %72 = vector.shape_cast %71 : vector<128xf32> to vector<1x128xf32>
    %73 = tpu.concatenate %69, %72 in 0 : vector<1x128xf32>, vector<1x128xf32> -> vector<2x128xf32>
    %74 = vector.shape_cast %73 : vector<2x128xf32> to vector<1x1x2x128xf32>
    %c0_69 = arith.constant 0 : index
    %c0_70 = arith.constant 0 : index
    %c0_71 = arith.constant 0 : index
    %c0_72 = arith.constant 0 : index
    %75 = vector.load %arg8[%c0_69, %c0_70, %c0_71, %c0_72] : memref<1x1x2x128xf32, #tpu.memory_space<vmem>>, vector<1x1x2x128xf32>
    tpu.vector_store %arg8[%c0_69, %c0_70, %c0_71, %c0_72], %74 {strides = array<i32>} : memref<1x1x2x128xf32, #tpu.memory_space<vmem>>, vector<1x1x2x128xf32>,
    return
  }
  func.func @transform_0(%arg0: i32, %arg1: i32) -> (i32, i32, i32, i32) {
    %c0_i32 = arith.constant 0 : i32
    %c0_i32_0 = arith.constant 0 : i32
    %c0_i32_1 = arith.constant 0 : i32
    return %arg0, %arg1, %c0_i32, %c0_i32_0 : i32, i32, i32, i32
  }
  func.func @transform_1(%arg0: i32, %arg1: i32) -> (i32, i32, i32, i32) {
    %c0_i32 = arith.constant 0 : i32
    %c0_i32_0 = arith.constant 0 : i32
    %c0_i32_1 = arith.constant 0 : i32
    return %arg0, %arg1, %c0_i32, %c0_i32_0 : i32, i32, i32, i32
  }
  func.func @transform_2(%arg0: i32, %arg1: i32) -> (i32, i32, i32, i32) {
    %c0_i32 = arith.constant 0 : i32
    %c0_i32_0 = arith.constant 0 : i32
    %c0_i32_1 = arith.constant 0 : i32
    return %arg0, %arg1, %c0_i32, %c0_i32_0 : i32, i32, i32, i32
  }
  func.func @transform_3(%arg0: i32, %arg1: i32) -> (i32, i32, i32) {
    %c0_i32 = arith.constant 0 : i32
    %c0_i32_0 = arith.constant 0 : i32
    %c0_i32_1 = arith.constant 0 : i32
    %c0_i32_2 = arith.constant 0 : i32
    return %c0_i32, %c0_i32_0, %c0_i32_1 : i32, i32, i32
  }
  func.func @transform_4(%arg0: i32, %arg1: i32) -> (i32, i32) {
    %c0_i32 = arith.constant 0 : i32
    %c0_i32_0 = arith.constant 0 : i32
    %c0_i32_1 = arith.constant 0 : i32
    return %c0_i32, %c0_i32_0 : i32, i32
  }
  func.func @transform_5(%arg0: i32, %arg1: i32) -> (i32, i32) {
    %c2_i32 = arith.constant 2 : i32
    %0 = arith.muli %arg0, %c2_i32 : i32
    %1 = arith.addi %0, %arg1 : i32
    %c0_i32 = arith.constant 0 : i32
    %c0_i32_0 = arith.constant 0 : i32
    return %1, %c0_i32 : i32, i32
  }
  func.func @transform_6(%arg0: i32, %arg1: i32) -> (i32, i32, i32, i32) {
    %c0_i32 = arith.constant 0 : i32
    %c0_i32_0 = arith.constant 0 : i32
    %c0_i32_1 = arith.constant 0 : i32
    return %arg0, %arg1, %c0_i32, %c0_i32_0 : i32, i32, i32, i32
  }
}

module attributes {stable_mosaic.version = 11 : i64} {
  func.func @_bn_skipconv_relu_kernel(%arg0: i32, %arg1: memref<128x128xf32, #tpu.memory_space<vmem>>, %arg2: memref<1x128xf32, #tpu.memory_space<vmem>>, %arg3: memref<1x128xf32, #tpu.memory_space<vmem>>, %arg4: memref<128x4xf32, #tpu.memory_space<vmem>>, %arg5: memref<4x128xf32, #tpu.memory_space<vmem>>, %arg6: memref<1x128xf32, #tpu.memory_space<vmem>>, %arg7: memref<128x128xf32, #tpu.memory_space<vmem>>) attributes {dimension_semantics = [#tpu.dimension_semantics<parallel>], iteration_bounds = array<i64: 4>, scalar_prefetch = 0 : i64, scratch_operands = 0 : i64, tpu.core_type = #tpu.core_type<tc>, window_params = [{transform_indices = @transform_0, window_bounds = array<i64: 128, 128>}, {pipeline_mode = #tpu.pipeline_mode<synchronous>, transform_indices = @transform_1, window_bounds = array<i64: 1, 128>}, {pipeline_mode = #tpu.pipeline_mode<synchronous>, transform_indices = @transform_2, window_bounds = array<i64: 1, 128>}, {transform_indices = @transform_3, window_bounds = array<i64: 128, 4>}, {pipeline_mode = #tpu.pipeline_mode<synchronous>, transform_indices = @transform_4, window_bounds = array<i64: 4, 128>}, {pipeline_mode = #tpu.pipeline_mode<synchronous>, transform_indices = @transform_5, window_bounds = array<i64: 1, 128>}, {transform_indices = @transform_6, window_bounds = array<i64: 128, 128>}]} {
    %c0 = arith.constant 0 : index
    %c0_0 = arith.constant 0 : index
    %0 = vector.load %arg1[%c0, %c0_0] : memref<128x128xf32, #tpu.memory_space<vmem>>, vector<128x128xf32>
    %c0_1 = arith.constant 0 : index
    %c0_2 = arith.constant 0 : index
    %1 = vector.load %arg2[%c0_1, %c0_2] : memref<1x128xf32, #tpu.memory_space<vmem>>, vector<1x128xf32>
    %2 = vector.broadcast %1 : vector<1x128xf32> to vector<128x128xf32>
    %3 = arith.mulf %0, %2 : vector<128x128xf32>
    %c0_3 = arith.constant 0 : index
    %c0_4 = arith.constant 0 : index
    %4 = vector.load %arg3[%c0_3, %c0_4] : memref<1x128xf32, #tpu.memory_space<vmem>>, vector<1x128xf32>
    %5 = vector.broadcast %4 : vector<1x128xf32> to vector<128x128xf32>
    %6 = arith.addf %3, %5 : vector<128x128xf32>
    %c0_5 = arith.constant 0 : index
    %c0_6 = arith.constant 0 : index
    %7 = vector.load %arg4[%c0_5, %c0_6] : memref<128x4xf32, #tpu.memory_space<vmem>>, vector<128x4xf32>
    %c0_7 = arith.constant 0 : index
    %c0_8 = arith.constant 0 : index
    %8 = vector.load %arg5[%c0_7, %c0_8] : memref<4x128xf32, #tpu.memory_space<vmem>>, vector<4x128xf32>
    %cst = arith.constant dense<0.000000e+00> : vector<128x128xf32>
    %9 = tpu.matmul %7, %8, %cst {dimension_numbers = #tpu.dot_dimension_numbers<[1], [0], [0], [1], [0, 0, 1, 1], [], []>} : vector<128x4xf32>, vector<4x128xf32>, vector<128x128xf32> -> vector<128x128xf32>
    %c0_9 = arith.constant 0 : index
    %c0_10 = arith.constant 0 : index
    %10 = vector.load %arg6[%c0_9, %c0_10] : memref<1x128xf32, #tpu.memory_space<vmem>>, vector<1x128xf32>
    %11 = vector.broadcast %10 : vector<1x128xf32> to vector<128x128xf32>
    %12 = arith.addf %9, %11 : vector<128x128xf32>
    %13 = arith.addf %6, %12 : vector<128x128xf32>
    %cst_11 = arith.constant 0.000000e+00 : f32
    %14 = vector.broadcast %cst_11 : f32 to vector<128x128xf32>
    %15 = arith.maximumf %13, %14 : vector<128x128xf32>
    %c0_12 = arith.constant 0 : index
    %c0_13 = arith.constant 0 : index
    %16 = vector.load %arg7[%c0_12, %c0_13] : memref<128x128xf32, #tpu.memory_space<vmem>>, vector<128x128xf32>
    tpu.vector_store %arg7[%c0_12, %c0_13], %15 {strides = array<i32>} : memref<128x128xf32, #tpu.memory_space<vmem>>, vector<128x128xf32>,
    return
  }
  func.func @transform_0(%arg0: i32) -> (i32, i32) {
    %c0_i32 = arith.constant 0 : i32
    %c0_i32_0 = arith.constant 0 : i32
    return %arg0, %c0_i32 : i32, i32
  }
  func.func @transform_1(%arg0: i32) -> (i32, i32) {
    %c0_i32 = arith.constant 0 : i32
    %c0_i32_0 = arith.constant 0 : i32
    %c0_i32_1 = arith.constant 0 : i32
    return %c0_i32, %c0_i32_0 : i32, i32
  }
  func.func @transform_2(%arg0: i32) -> (i32, i32) {
    %c0_i32 = arith.constant 0 : i32
    %c0_i32_0 = arith.constant 0 : i32
    %c0_i32_1 = arith.constant 0 : i32
    return %c0_i32, %c0_i32_0 : i32, i32
  }
  func.func @transform_3(%arg0: i32) -> (i32, i32) {
    %c0_i32 = arith.constant 0 : i32
    %c0_i32_0 = arith.constant 0 : i32
    return %arg0, %c0_i32 : i32, i32
  }
  func.func @transform_4(%arg0: i32) -> (i32, i32) {
    %c0_i32 = arith.constant 0 : i32
    %c0_i32_0 = arith.constant 0 : i32
    %c0_i32_1 = arith.constant 0 : i32
    return %c0_i32, %c0_i32_0 : i32, i32
  }
  func.func @transform_5(%arg0: i32) -> (i32, i32) {
    %c0_i32 = arith.constant 0 : i32
    %c0_i32_0 = arith.constant 0 : i32
    %c0_i32_1 = arith.constant 0 : i32
    return %c0_i32, %c0_i32_0 : i32, i32
  }
  func.func @transform_6(%arg0: i32) -> (i32, i32) {
    %c0_i32 = arith.constant 0 : i32
    %c0_i32_0 = arith.constant 0 : i32
    return %arg0, %c0_i32 : i32, i32
  }
}

</mosaic_0001>

<bundles_post_ra>
// kernel: block_forward.5
= control target key start
LH: loop header
LB: loop body
LE: loop exit
PB: predicated region body
PF: predicated region fallthrough
CT: control target
= control target key end

     0   :  { %s373_s12 = smov 0   ;;  %s468_s0 = inlined_call_operand.vmem [shape: f32[512,128], index: 0, kind: input, shape index: {}]   ;;  %s469_s1 = inlined_call_operand.vmem [shape: f32[1,128], index: 1, kind: input, shape index: {}]   ;;  %s470_s2 = inlined_call_operand.vmem [shape: f32[1,128], index: 2, kind: input, shape index: {}]   ;;  %s471_s3 = inlined_call_operand.vmem [shape: f32[512,128], index: 3, kind: output, shape index: {}]  }
   0x1 LB: > { %s324_s13 = sadd.s32 4294967295, %s351_s12   ;;  %p328_p0 = scmp.ge.s32.totalorder %s351_s12, 1  ;;  %s351_s12 = sphi %s373_s12, %s13_s12  }
   0x2   : > { %p138_p1 = scmp.lt.s32.totalorder %s351_s12, 5 }
   0x4   : > { %p139_p2 = pnand %p328_p0, %p138_p1 }
   0x5   : > { %s329_s14 = sshll.u32 (!%p139_p2), %s324_s13, 4  ;;  %v384_v0 = vld [vmem:[%s469_s1] ss:$0 sm:$0xff] (!%p139_p2) }
   0x6   : > { %142 = sbr.rel (%p139_p2) target bundleno = 34 (0x22), region = 32  ;;  %p163_p3 = scmp.lt.s32.totalorder (!%p139_p2), %s329_s14, 63  ;;  %v394_v1 = vld [vmem:[%s470_s2] ss:$0 sm:$0xff] (!%p139_p2) }
   0xd   : > { %s473_s14 = smov (!%p163_p3, %s329_s14), 63 }
   0xe   : > { %s330_s15 = sshll.u32 %s473_s14, 3 }
   0xf   : > { %s389_s20 = scalar_lea.vmem %s468_s0, %s330_s15  ;;  %s417_s25 = scalar_lea.vmem %s471_s3, %s330_s15 }
  0x10   : > { %v174_v2 = vld [vmem:[%s389_s20] sm:$0xff]  ;;  %v175_v3 = vld [vmem:[%s389_s20 + $0x8] sm:$0xff]  ;;  %v176_v4 = vld [vmem:[%s389_s20 + $0x10] sm:$0xff] }
  0x11   : > { %v197_v5 = vmul.f32 %v384_v0, %v174_v2  ;;  %v198_v6 = vmul.f32 %v384_v0, %v175_v3  ;;  %v199_v7 = vmul.f32 %v384_v0, %v176_v4  ;;  %v177_v8 = vld [vmem:[%s389_s20 + $0x18] sm:$0xff]  ;;  %v178_v9 = vld [vmem:[%s389_s20 + $0x20] sm:$0xff]  ;;  %v179_v10 = vld [vmem:[%s389_s20 + $0x28] sm:$0xff] }
  0x12   : > { %v200_v11 = vmul.f32 %v384_v0, %v177_v8  ;;  %v201_v12 = vmul.f32 %v384_v0, %v178_v9  ;;  %v202_v13 = vmul.f32 %v384_v0, %v179_v10  ;;  %v180_v14 = vld [vmem:[%s389_s20 + $0x30] sm:$0xff]  ;;  %v181_v15 = vld [vmem:[%s389_s20 + $0x38] sm:$0xff]  ;;  %v182_v24 = vld [vmem:[%s389_s20 + $0x40] sm:$0xff] }
  0x13   : > { %v220_v16 = vadd.f32 %v394_v1, %v197_v5  ;;  %v221_v17 = vadd.f32 %v394_v1, %v198_v6  ;;  %v222_v18 = vadd.f32 %v394_v1, %v199_v7  ;;  %v203_v19 = vmul.f32 %v384_v0, %v180_v14  ;;  %v183_v25 = vld [vmem:[%s389_s20 + $0x48] sm:$0xff]  ;;  %v184_v26 = vld [vmem:[%s389_s20 + $0x50] sm:$0xff]  ;;  %v185_v31 = vld [vmem:[%s389_s20 + $0x58] sm:$0xff] }
  0x14   : > { %v223_v20 = vadd.f32 %v394_v1, %v200_v11  ;;  %v224_v21 = vadd.f32 %v394_v1, %v201_v12  ;;  %v225_v22 = vadd.f32 %v394_v1, %v202_v13  ;;  %v204_v23 = vmul.f32 %v384_v0, %v181_v15  ;;  %v186_v32 = vld [vmem:[%s389_s20 + $0x60] sm:$0xff]  ;;  %v187_v33 = vld [vmem:[%s389_s20 + $0x68] sm:$0xff]  ;;  %v188_v38 = vld [vmem:[%s389_s20 + $0x70] sm:$0xff] }
  0x15   : > { %v236_v27 = vmax.f32 %v220_v16, 0.0  ;;  %v237_v28 = vmax.f32 %v221_v17, 0.0  ;;  %v238_v29 = vmax.f32 %v222_v18, 0.0  ;;  %v226_v30 = vadd.f32 %v394_v1, %v203_v19  ;;  %v189_v43 = vld [vmem:[%s389_s20 + $0x78] sm:$0xff] }
  0x16   : > { %v239_v34 = vmax.f32 %v223_v20, 0.0  ;;  %v240_v35 = vmax.f32 %v224_v21, 0.0  ;;  %v241_v36 = vmax.f32 %v225_v22, 0.0  ;;  %v227_v37 = vadd.f32 %v394_v1, %v204_v23 }
  0x17   : > { %252 = vst [vmem:[%s417_s25] sm:$0xff] %v236_v27  ;;  %253 = vst [vmem:[%s417_s25 + $0x8] sm:$0xff] %v237_v28  ;;  %v242_v39 = vmax.f32 %v226_v30, 0.0  ;;  %v205_v40 = vmul.f32 %v384_v0, %v182_v24  ;;  %v206_v41 = vmul.f32 %v384_v0, %v183_v25  ;;  %v207_v42 = vmul.f32 %v384_v0, %v184_v26 }
  0x18   : > { %254 = vst [vmem:[%s417_s25 + $0x10] sm:$0xff] %v238_v29  ;;  %255 = vst [vmem:[%s417_s25 + $0x18] sm:$0xff] %v239_v34  ;;  %v243_v44 = vmax.f32 %v227_v37, 0.0  ;;  %v208_v45 = vmul.f32 %v384_v0, %v185_v31  ;;  %v209_v46 = vmul.f32 %v384_v0, %v186_v32  ;;  %v210_v47 = vmul.f32 %v384_v0, %v187_v33 }
  0x19   : > { %256 = vst [vmem:[%s417_s25 + $0x20] sm:$0xff] %v240_v35  ;;  %257 = vst [vmem:[%s417_s25 + $0x28] sm:$0xff] %v241_v36  ;;  %v228_v48 = vadd.f32 %v394_v1, %v205_v40  ;;  %v229_v49 = vadd.f32 %v394_v1, %v206_v41  ;;  %v230_v50 = vadd.f32 %v394_v1, %v207_v42 }
  0x1a   : > { %258 = vst [vmem:[%s417_s25 + $0x30] sm:$0xff] %v242_v39  ;;  %v211_v51 = vmul.f32 %v384_v0, %v188_v38  ;;  %259 = vst [vmem:[%s417_s25 + $0x38] sm:$0xff] %v243_v44  ;;  %v231_v52 = vadd.f32 %v394_v1, %v208_v45  ;;  %v232_v53 = vadd.f32 %v394_v1, %v209_v46 }
  0x1b   : > { %v233_v54 = vadd.f32 %v394_v1, %v210_v47  ;;  %v212_v55 = vmul.f32 %v384_v0, %v189_v43  ;;  %v244_v56 = vmax.f32 %v228_v48, 0.0  ;;  %v245_v57 = vmax.f32 %v229_v49, 0.0 }
  0x1c   : > { %v246_v58 = vmax.f32 %v230_v50, 0.0  ;;  %v234_v59 = vadd.f32 %v394_v1, %v211_v51  ;;  %v247_v60 = vmax.f32 %v231_v52, 0.0  ;;  %v248_v61 = vmax.f32 %v232_v53, 0.0 }
  0x1d   : > { %v249_v62 = vmax.f32 %v233_v54, 0.0  ;;  %v235_v63 = vadd.f32 %v394_v1, %v212_v55  ;;  %260 = vst [vmem:[%s417_s25 + $0x40] sm:$0xff] %v244_v56  ;;  %261 = vst [vmem:[%s417_s25 + $0x48] sm:$0xff] %v245_v57 }
  0x1e   : > { %262 = vst [vmem:[%s417_s25 + $0x50] sm:$0xff] %v246_v58  ;;  %v250_v2 = vmax.f32 %v234_v59, 0.0  ;;  %263 = vst [vmem:[%s417_s25 + $0x58] sm:$0xff] %v247_v60 }
  0x1f   : > { %264 = vst [vmem:[%s417_s25 + $0x60] sm:$0xff] %v248_v61  ;;  %265 = vst [vmem:[%s417_s25 + $0x68] sm:$0xff] %v249_v62  ;;  %v251_v0 = vmax.f32 %v235_v63, 0.0 }
  0x20   : > { %266 = vst [vmem:[%s417_s25 + $0x70] sm:$0xff] %v250_v2 }
  0x21   : > { %267 = vst [vmem:[%s417_s25 + $0x78] sm:$0xff] %v251_v0 }
  0x22 PF: > { %s13_s12 = sadd.s32 1, %s351_s12  }
  0x23   : > { %p10_p4 = scmp.ge.s32.totalorder %s13_s12, 6  }
  0x25   :  { %12 = sbr.rel (!%p10_p4) target bundleno = 1 (0x1), region = 62 }

// kernel: block_forward.7
= control target key start
LH: loop header
LB: loop body
LE: loop exit
PB: predicated region body
PF: predicated region fallthrough
CT: control target
= control target key end

     0   :  { %s806_s21 = smov 0   ;;  %s949_s0 = inlined_call_operand.vmem [shape: f32[512,128], index: 0, kind: input, shape index: {}]   ;;  %s950_s1 = inlined_call_operand.vmem [shape: f32[1,128], index: 1, kind: input, shape index: {}]   ;;  %s951_s2 = inlined_call_operand.vmem [shape: f32[1,128], index: 2, kind: input, shape index: {}]   ;;  %s952_s3 = inlined_call_operand.vmem [shape: f32[512,4], index: 3, kind: input, shape index: {}]   ;;  %s953_s4 = inlined_call_operand.vmem [shape: f32[4,128], index: 4, kind: input, shape index: {}]   ;;  %s954_s5 = inlined_call_operand.vmem [shape: f32[1,128], index: 5, kind: input, shape index: {}]   ;;  %s955_s6 = inlined_call_operand.vmem [shape: f32[512,128], index: 6, kind: output, shape index: {}]  }
   0x1 LB: > { %s677_s22 = sadd.s32 4294967295, %s769_s21   ;;  %p681_p0 = scmp.ge.s32.totalorder %s769_s21, 1  ;;  %s769_s21 = sphi %s806_s21, %s16_s21  }
   0x2   : > { %p224_p1 = scmp.lt.s32.totalorder %s769_s21, 5 }
   0x4   : > { %p225_p2 = pnand %p681_p0, %p224_p1 }
   0x5   : > { %v355_v0 = vld [vmem:[%s953_s4] sm:$0xf] (!%p225_p2)  ;;  %vm412_vm0 = vcmask (!%p225_p2), 1043456   ;;  %s682_s25 = sshll.u32 (!%p225_p2), %s677_s22, 4  ;;  %vm363_vm1 = vcmask (!%p225_p2), 31744  }
   0x6   : > { %228 = sbr.rel (%p225_p2) target bundleno = 251 (0xfb), region = 44  ;;  %727 = vmatprep.subr.msk.mxu0 (!%p225_p2), %vm412_vm0, %v355_v0  ;;  %753 = vmatprep.subr.msk.mxu1 (!%p225_p2), %vm412_vm0, %v355_v0  ;;  %p260_p3 = scmp.lt.s32.totalorder (!%p225_p2), %s682_s25, 63  ;;  %v849_v18 = vld [vmem:[%s950_s1] ss:$0 sm:$0xff] (!%p225_p2) }
   0x7   : > { %728 = vmatpush3.msk.msra.mxu0 (!%p225_p2), %vm412_vm0, %v355_v0  ;;  %754 = vmatpush3.msk.msra.mxu1 (!%p225_p2), %vm412_vm0, %v355_v0  ;;  %v863_v28 = vld [vmem:[%s951_s2] ss:$0 sm:$0xff] (!%p225_p2) }
   0x8   : > { %v876_v37 = vld [vmem:[%s954_s5] ss:$0 sm:$0xff] (!%p225_p2) }
   0xd   : > { %s957_s25 = smov (!%p260_p3, %s682_s25), 63 }
   0xe   : > { %s817_s26 = sshll.u32 %s957_s25, 3 }
   0xf   : > { %s269_s29 = scalar_lea.vmem %s952_s3, %s817_s26  ;;  %s843_s8 = scalar_lea.vmem %s949_s0, %s817_s26 }
  0x10   : > { %v339_v1 = vld [vmem:[%s269_s29] sm:$0xff]  ;;  %v340_v3 = vld [vmem:[%s269_s29 + $0x8] sm:$0xff]  ;;  %v341_v5 = vld [vmem:[%s269_s29 + $0x10] sm:$0xff]  ;;  %s902_s17 = scalar_lea.vmem %s955_s6, %s817_s26 }
  0x11   : > { %v347_v2 = vld [vmem:[%s269_s29 + $0x40] sm:$0xff]  ;;  %729 = vmatprep.mubr.msk.f32.mxu0 %vm363_vm1, %v339_v1  ;;  %v348_v4 = vld [vmem:[%s269_s29 + $0x48] sm:$0xff]  ;;  %v349_v6 = vld [vmem:[%s269_s29 + $0x50] sm:$0xff] }
  0x12   : > { %741 = vmatprep.mubr.msk.f32.mxu1 %vm363_vm1, %v347_v2  ;;  %730 = vmatmul.mubr.msk.f32.vlgmr.msra.gmra.mrb[0].mxu0 %vm363_vm1, %v340_v3  ;;  %v342_v7 = vld [vmem:[%s269_s29 + $0x18] sm:$0xff]  ;;  %v343_v9 = vld [vmem:[%s269_s29 + $0x20] sm:$0xff]  ;;  %v344_v11 = vld [vmem:[%s269_s29 + $0x28] sm:$0xff] }
  0x13   : > { %742 = vmatmul.mubr.msk.f32.vlgmr.msra.gmra.mrb[0].mxu1 %vm363_vm1, %v348_v4  ;;  %732 = vmatprep.mubr.msk.f32.mxu0 %vm363_vm1, %v341_v5  ;;  %v350_v8 = vld [vmem:[%s269_s29 + $0x58] sm:$0xff]  ;;  %v351_v10 = vld [vmem:[%s269_s29 + $0x60] sm:$0xff]  ;;  %v352_v12 = vld [vmem:[%s269_s29 + $0x68] sm:$0xff] }
  0x14   : > { %744 = vmatprep.mubr.msk.f32.mxu1 %vm363_vm1, %v349_v6  ;;  %v345_v13 = vld [vmem:[%s269_s29 + $0x30] sm:$0xff]  ;;  %v346_v15 = vld [vmem:[%s269_s29 + $0x38] sm:$0xff]  ;;  %v278_v17 = vld [vmem:[%s843_s8 + $0x8] sm:$0xff] }
  0x15   : > { %v353_v14 = vld [vmem:[%s269_s29 + $0x70] sm:$0xff]  ;;  %v354_v16 = vld [vmem:[%s269_s29 + $0x78] sm:$0xff]  ;;  %v286_v19 = vld [vmem:[%s843_s8 + $0x48] sm:$0xff]  ;;  %v301_v24 = vmul.f32 %v849_v18, %v278_v17 }
  0x16   : > { %733 = vmatmul.mubr.msk.f32.gmra.mrb[2].mxu0 %vm363_vm1, %v342_v7  ;;  %v277_v20 = vld [vmem:[%s843_s8] sm:$0xff]  ;;  %v280_v22 = vld [vmem:[%s843_s8 + $0x18] sm:$0xff]  ;;  %v309_v25 = vmul.f32 %v849_v18, %v286_v19  ;;  %v279_v26 = vld [vmem:[%s843_s8 + $0x10] sm:$0xff] }
  0x17   : > { %745 = vmatmul.mubr.msk.f32.gmra.mrb[2].mxu1 %vm363_vm1, %v350_v8  ;;  %735 = vmatprep.mubr.msk.f32.mxu0 %vm363_vm1, %v343_v9  ;;  %v285_v21 = vld [vmem:[%s843_s8 + $0x40] sm:$0xff]  ;;  %v288_v23 = vld [vmem:[%s843_s8 + $0x58] sm:$0xff]  ;;  %v287_v27 = vld [vmem:[%s843_s8 + $0x50] sm:$0xff]  ;;  %v300_v29 = vmul.f32 %v849_v18, %v277_v20  ;;  %v303_v33 = vmul.f32 %v849_v18, %v280_v22  ;;  %v302_v38 = vmul.f32 %v849_v18, %v279_v26 }
  0x18   : > { %747 = vmatprep.mubr.msk.f32.mxu1 %vm363_vm1, %v351_v10  ;;  %v308_v30 = vmul.f32 %v849_v18, %v285_v21  ;;  %v282_v31 = vld [vmem:[%s843_s8 + $0x28] sm:$0xff]  ;;  %v311_v34 = vmul.f32 %v849_v18, %v288_v23  ;;  %v281_v35 = vld [vmem:[%s843_s8 + $0x20] sm:$0xff]  ;;  %v310_v39 = vmul.f32 %v849_v18, %v287_v27  ;;  %v324_v40 = vadd.f32 %v863_v28, %v301_v24  ;;  %v284_v6 = vld [vmem:[%s843_s8 + $0x38] sm:$0xff] }
  0x19   : > { %v290_v32 = vld [vmem:[%s843_s8 + $0x68] sm:$0xff]  ;;  %v289_v36 = vld [vmem:[%s843_s8 + $0x60] sm:$0xff]  ;;  %v332_v41 = vadd.f32 %v863_v28, %v309_v25  ;;  %v305_v42 = vmul.f32 %v849_v18, %v282_v31  ;;  %v323_v46 = vadd.f32 %v863_v28, %v300_v29  ;;  %v304_v48 = vmul.f32 %v849_v18, %v281_v35  ;;  %v292_v7 = vld [vmem:[%s843_s8 + $0x78] sm:$0xff] }
  0x1a   : > { %736 = vmatmul.mubr.msk.f32.gmra.mrb[4].mxu0 %vm363_vm1, %v344_v11  ;;  %v313_v43 = vmul.f32 %v849_v18, %v290_v32  ;;  %v331_v47 = vadd.f32 %v863_v28, %v308_v30  ;;  %v312_v49 = vmul.f32 %v849_v18, %v289_v36  ;;  %v326_v54 = vadd.f32 %v863_v28, %v303_v33 }
  0x1b   : > { %748 = vmatmul.mubr.msk.f32.gmra.mrb[4].mxu1 %vm363_vm1, %v352_v12  ;;  %738 = vmatprep.mubr.msk.f32.mxu0 %vm363_vm1, %v345_v13  ;;  %v334_v55 = vadd.f32 %v863_v28, %v311_v34  ;;  %v325_v58 = vadd.f32 %v863_v28, %v302_v38  ;;  %v333_v59 = vadd.f32 %v863_v28, %v310_v39 }
  0x1c   : > { %750 = vmatprep.mubr.msk.f32.mxu1 %vm363_vm1, %v353_v14  ;;  %v328_v62 = vadd.f32 %v863_v28, %v305_v42  ;;  %v336_v63 = vadd.f32 %v863_v28, %v313_v43  ;;  %v327_v4 = vadd.f32 %v863_v28, %v304_v48  ;;  %v335_v5 = vadd.f32 %v863_v28, %v312_v49  ;;  %v283_v14 = vld [vmem:[%s843_s8 + $0x30] sm:$0xff] }
  0x1d   : > { %v307_v23 = vmul.f32 %v849_v18, %v284_v6  ;;  %v315_v24 = vmul.f32 %v849_v18, %v292_v7  ;;  %v306_v30 = vmul.f32 %v849_v18, %v283_v14 }
  0x1e   : > { %739 = vmatmul.mubr.msk.f32.gmra.mrb[6].mxu0 %vm363_vm1, %v346_v15  ;;  %v291_v15 = vld [vmem:[%s843_s8 + $0x70] sm:$0xff] }
  0x1f   : > { %751 = vmatmul.mubr.msk.f32.gmra.mrb[6].mxu1 %vm363_vm1, %v354_v16  ;;  %v314_v31 = vmul.f32 %v849_v18, %v291_v15 }
  0xe5   : > { %v731_v44 = vpop.f32.mrb[0].mxu0 }
  0xe6   : > { %v743_v45 = vpop.f32.mrb[0].mxu1  ;;  %v488_v50 = vadd.f32 %v731_v44, %v876_v37  ;;  %v482_v52 = vpop.f32.mrb[1].mxu0  ;;  %v330_v44 = vadd.f32 %v863_v28, %v307_v23 }
  0xe7   : > { %v528_v51 = vadd.f32 %v743_v45, %v876_v37  ;;  %v522_v53 = vpop.f32.mrb[1].mxu1  ;;  %v483_v56 = vadd.f32 %v876_v37, %v482_v52  ;;  %v338_v45 = vadd.f32 %v863_v28, %v315_v24 }
  0xe8   : > { %v523_v57 = vadd.f32 %v876_v37, %v522_v53  ;;  %v562_v60 = vadd.f32 %v488_v50, %v324_v40  ;;  %v329_v50 = vadd.f32 %v863_v28, %v306_v30 }
  0xe9   : > { %v570_v61 = vadd.f32 %v528_v51, %v332_v41  ;;  %v561_v0 = vadd.f32 %v483_v56, %v323_v46  ;;  %v734_v2 = vpop.f32.mrb[2].mxu0  ;;  %v337_v51 = vadd.f32 %v863_v28, %v314_v31 }
  0xea   : > { %v569_v1 = vadd.f32 %v523_v57, %v331_v47  ;;  %v746_v3 = vpop.f32.mrb[2].mxu1  ;;  %v578_v8 = vmax.f32 %v562_v60, 0.0  ;;  %v498_v10 = vadd.f32 %v734_v2, %v876_v37  ;;  %v492_v12 = vpop.f32.mrb[3].mxu0 }
  0xeb   : > { %v586_v9 = vmax.f32 %v570_v61, 0.0  ;;  %v538_v11 = vadd.f32 %v746_v3, %v876_v37  ;;  %v532_v13 = vpop.f32.mrb[3].mxu1  ;;  %v577_v16 = vmax.f32 %v561_v0, 0.0  ;;  %v493_v19 = vadd.f32 %v876_v37, %v492_v12 }
  0xec   : > { %v585_v17 = vmax.f32 %v569_v1, 0.0  ;;  %v533_v20 = vadd.f32 %v876_v37, %v532_v13  ;;  %594 = vst [vmem:[%s902_s17 + $0x8] sm:$0xff] %v578_v8  ;;  %v564_v21 = vadd.f32 %v498_v10, %v326_v54 }
  0xed   : > { %602 = vst [vmem:[%s902_s17 + $0x48] sm:$0xff] %v586_v9  ;;  %v572_v22 = vadd.f32 %v538_v11, %v334_v55  ;;  %593 = vst [vmem:[%s902_s17] sm:$0xff] %v577_v16  ;;  %v563_v25 = vadd.f32 %v493_v19, %v325_v58  ;;  %v737_v27 = vpop.f32.mrb[4].mxu0 }
  0xee   : > { %601 = vst [vmem:[%s902_s17 + $0x40] sm:$0xff] %v585_v17  ;;  %v571_v26 = vadd.f32 %v533_v20, %v333_v59  ;;  %v749_v29 = vpop.f32.mrb[4].mxu1  ;;  %v580_v32 = vmax.f32 %v564_v21, 0.0  ;;  %v508_v34 = vadd.f32 %v737_v27, %v876_v37  ;;  %v502_v36 = vpop.f32.mrb[5].mxu0 }
  0xef   : > { %v588_v33 = vmax.f32 %v572_v22, 0.0  ;;  %v548_v35 = vadd.f32 %v749_v29, %v876_v37  ;;  %v542_v38 = vpop.f32.mrb[5].mxu1  ;;  %v579_v39 = vmax.f32 %v563_v25, 0.0  ;;  %v503_v41 = vadd.f32 %v876_v37, %v502_v36 }
  0xf0   : > { %v587_v40 = vmax.f32 %v571_v26, 0.0  ;;  %v543_v42 = vadd.f32 %v876_v37, %v542_v38  ;;  %596 = vst [vmem:[%s902_s17 + $0x18] sm:$0xff] %v580_v32  ;;  %v566_v43 = vadd.f32 %v508_v34, %v328_v62 }
  0xf1   : > { %604 = vst [vmem:[%s902_s17 + $0x58] sm:$0xff] %v588_v33  ;;  %v574_v18 = vadd.f32 %v548_v35, %v336_v63  ;;  %595 = vst [vmem:[%s902_s17 + $0x10] sm:$0xff] %v579_v39  ;;  %v565_v46 = vadd.f32 %v503_v41, %v327_v4  ;;  %v740_v48 = vpop.f32.mrb[6].mxu0 }
  0xf2   : > { %603 = vst [vmem:[%s902_s17 + $0x50] sm:$0xff] %v587_v40  ;;  %v573_v47 = vadd.f32 %v543_v42, %v335_v5  ;;  %v752_v49 = vpop.f32.mrb[6].mxu1  ;;  %v582_v52 = vmax.f32 %v566_v43, 0.0  ;;  %v518_v54 = vadd.f32 %v740_v48, %v876_v37  ;;  %v512_v56 = vpop.f32.mrb[7].mxu0 }
  0xf3   : > { %v590_v53 = vmax.f32 %v574_v18, 0.0  ;;  %v558_v55 = vadd.f32 %v752_v49, %v876_v37  ;;  %v552_v57 = vpop.f32.mrb[7].mxu1  ;;  %v581_v58 = vmax.f32 %v565_v46, 0.0  ;;  %v513_v60 = vadd.f32 %v876_v37, %v512_v56 }
  0xf4   : > { %v589_v59 = vmax.f32 %v573_v47, 0.0  ;;  %v553_v61 = vadd.f32 %v876_v37, %v552_v57  ;;  %598 = vst [vmem:[%s902_s17 + $0x28] sm:$0xff] %v582_v52  ;;  %v568_v28 = vadd.f32 %v518_v54, %v330_v44 }
  0xf5   : > { %606 = vst [vmem:[%s902_s17 + $0x68] sm:$0xff] %v590_v53  ;;  %v576_v62 = vadd.f32 %v558_v55, %v338_v45  ;;  %597 = vst [vmem:[%s902_s17 + $0x20] sm:$0xff] %v581_v58  ;;  %v567_v63 = vadd.f32 %v513_v60, %v329_v50 }
  0xf6   : > { %605 = vst [vmem:[%s902_s17 + $0x60] sm:$0xff] %v589_v59  ;;  %v575_v0 = vadd.f32 %v553_v61, %v337_v51  ;;  %v584_v1 = vmax.f32 %v568_v28, 0.0 }
  0xf7   : > { %v592_v2 = vmax.f32 %v576_v62, 0.0  ;;  %v583_v3 = vmax.f32 %v567_v63, 0.0 }
  0xf8   : > { %v591_v4 = vmax.f32 %v575_v0, 0.0  ;;  %600 = vst [vmem:[%s902_s17 + $0x38] sm:$0xff] %v584_v1 }
  0xf9   : > { %608 = vst [vmem:[%s902_s17 + $0x78] sm:$0xff] %v592_v2  ;;  %599 = vst [vmem:[%s902_s17 + $0x30] sm:$0xff] %v583_v3 }
  0xfa   : > { %607 = vst [vmem:[%s902_s17 + $0x70] sm:$0xff] %v591_v4 }
  0xfb PF: > { %s16_s21 = sadd.s32 1, %s769_s21  }
  0xfc   : > { %p13_p4 = scmp.ge.s32.totalorder %s16_s21, 6  }
  0xfe   :  { %15 = sbr.rel (!%p13_p4) target bundleno = 1 (0x1), region = 77 }

// kernel: block_forward.4
= control target key start
LH: loop header
LB: loop body
LE: loop exit
PB: predicated region body
PF: predicated region fallthrough
CT: control target
= control target key end

     0   :  { %s3520_s21 = smov 0   ;;  %s3522_s22 = smov 0   ;;  %s4002_s0 = inlined_call_operand.vmem [shape: f32[2,16,18,4], index: 0, kind: input, shape index: {}]   ;;  %s4003_s1 = inlined_call_operand.vmem [shape: f32[2,16,18,4], index: 1, kind: input, shape index: {}]   ;;  %s4004_s2 = inlined_call_operand.vmem [shape: f32[2,16,18,4], index: 2, kind: input, shape index: {}]   ;;  %s4005_s3 = inlined_call_operand.vmem [shape: f32[9,4,128], index: 3, kind: input, shape index: {}]   ;;  %s4006_s4 = inlined_call_operand.vmem [shape: f32[1,128], index: 4, kind: input, shape index: {}]   ;;  %s4007_s5 = inlined_call_operand.vmem [shape: f32[512,128], index: 5, kind: output, shape index: {0}]   ;;  %s4008_s6 = inlined_call_operand.vmem [shape: f32[2,2,2,128], index: 6, kind: output, shape index: {1}]  }
   0x1   :  { %s3524_s23 = smov 0   ;;  %s3526_s24 = smov 0  }
   0x2   :  { %s3528_s25 = smov 0  }
   0x3 LB: > { %s26_s26 = sadd.s32 1, %s3475_s23  ;;  %s29_s27 = sadd.s32 1, %s3479_s24  ;;  %s3483_s25 = sphi %s3528_s25, %s17_s25   ;;  %s3479_s24 = sphi %s3526_s24, %s4012_s24   ;;  %s3475_s23 = sphi %s3524_s23, %s4011_s23   ;;  %s3471_s22 = sphi %s3522_s22, %s4010_s22   ;;  %s3467_s21 = sphi %s3520_s21, %s4009_s21  }
   0x4   : > { %p27_p0 = scmp.ge.s32.totalorder %s26_s26, 2  ;;  %p2710_p1 = scmp.ge.s32.totalorder %s3483_s25, 1 }
   0x5   : > { %p277_p2 = scmp.lt.s32.totalorder %s3483_s25, 5 }
   0x6   : > { %s4014_s26 = smov (%p27_p0, %s26_s26), 0  ;;  %s4016_s27 = smov (!%p27_p0, %s29_s27), %s3479_s24 }
   0x7   : > { %p278_p3 = pnand %p2710_p1, %p277_p2  ;;  %p31_p4 = scmp.ge.s32.totalorder %s4016_s27, 2 }
   0x8   : > { %v2722_v0 = vld [vmem:[%s4005_s3 + $0x4] sm:$0xf] (!%p278_p3)  ;;  %vm477_vm0 = vcmask (!%p278_p3), 1043456   ;;  %v3560_v1 = vld [vmem:[%s4005_s3 + $0x10] sm:$0xf] (!%p278_p3)  ;;  %s2711_s8 = sshll.u32 (!%p278_p3), %s3467_s21, 3 }
   0x9   : > { %s4018_s27 = smov (%p31_p4, %s4016_s27), 0  ;;  %281 = sbr.rel (%p278_p3) target bundleno = 404 (0x194), region = 40 }
   0xa   : > { %3039 = vmatprep.subr.msk.mxu1 (!%p278_p3), %vm477_vm0, %v2722_v0  ;;  %3143 = vmatprep.subr.msk.mxu0 (!%p278_p3), %vm477_vm0, %v3560_v1  ;;  %p343_p5 = scmp.lt.s32.totalorder (!%p278_p3), %s3471_s22, 1  ;;  %p345_p6 = scmp.lt.s32.totalorder (!%p278_p3), %s2711_s8, 15  ;;  %v409_v2 = vld [vmem:[%s4005_s3] sm:$0xf] (!%p278_p3)  ;;  %v2811_v3 = vld [vmem:[%s4005_s3 + $0x14] sm:$0xf] (!%p278_p3) }
   0xb   : > { %3040 = vmatpush3.msk.msra.mxu1 (!%p278_p3), %vm477_vm0, %v2722_v0  ;;  %3144 = vmatpush3.msk.msra.mxu0 (!%p278_p3), %vm477_vm0, %v3560_v1  ;;  %vm428_vm1 = vcmask (!%p278_p3), 31744   ;;  %v2829_v10 = vld [vmem:[%s4005_s3 + $0x18] sm:$0xf] (!%p278_p3)  ;;  %v3612_v11 = vld [vmem:[%s4005_s3 + $0x8] sm:$0xf] (!%p278_p3)  ;;  %p387_p8 = scmp.lt.s32.totalorder (!%p278_p3), %s3467_s21, 1 }
   0xc   : > { %3065 = vmatprep.subr.msk.mxu1 (!%p278_p3), %vm477_vm0, %v409_v2  ;;  %3169 = vmatprep.subr.msk.mxu0 (!%p278_p3), %vm477_vm0, %v2811_v3  ;;  %v3652_v28 = vld [vmem:[%s4005_s3 + $0x1c] sm:$0xf] (!%p278_p3)  ;;  %v3692_v45 = vld [vmem:[%s4005_s3 + $0xc] sm:$0xf] (!%p278_p3)  ;;  %v3739_v62 = vld [vmem:[%s4005_s3 + $0x20] sm:$0xf] (!%p278_p3) }
   0xd   : > { %vm2529_vm2 = vcmask (!%p278_p3), 1040384  }
  0x10   : > { %s3577_s13 = scalar_select %p343_p5, %s3471_s22, 1 }
  0x11   : > { %s4020_s8 = smov (!%p345_p6, %s2711_s8), 15 }
  0x12   : > { %s3404_s14 = smul.u32 48, %s3577_s13  ;;  %s2720_s12 = sshll.u32 %s3577_s13, 1 }
  0x13   : > { %s3403_s15 = smul.u32 3, %s4020_s8 }
  0x15   : > { %s349_s16 = sadd.s32 %s3404_s14, %s3403_s15 }
  0x16   : > { %s3582_s17 = sshll.u32 %s349_s16, 3 }
  0x17   : > { %s3588_s20 = scalar_lea.vmem %s4002_s0, %s3582_s17  ;;  %s3594_s30 = scalar_lea.vmem %s4003_s1, %s3582_s17 }
  0x18   : > { %v410_v4 = vld [vmem:[%s3588_s20 + $0x1] sm:$0xff]  ;;  %v411_v6 = vld [vmem:[%s3588_s20 + $0x9] sm:$0xff]  ;;  %v412_v8 = vld [vmem:[%s3588_s20 + $0x19] sm:$0xff]  ;;  %s3718_s19 = scalar_lea.vmem %s4004_s2, %s3582_s17 }
  0x19   : > { %v1282_v5 = vld [vmem:[%s3594_s30 + $0x1] sm:$0xff]  ;;  %3041 = vmatprep.mubr.msk.f32.mxu1 %vm428_vm1, %v410_v4  ;;  %v1283_v7 = vld [vmem:[%s3594_s30 + $0x9] sm:$0xff]  ;;  %v1284_v9 = vld [vmem:[%s3594_s30 + $0x19] sm:$0xff] }
  0x1a   : > { %3145 = vmatprep.mubr.msk.f32.mxu0 %vm428_vm1, %v1282_v5  ;;  %3042 = vmatmul.mubr.msk.f32.vlgmr.msra.gmra.mrb[0].mxu1 %vm428_vm1, %v411_v6  ;;  %v413_v12 = vld [vmem:[%s3588_s20 + $0x21] sm:$0xff]  ;;  %v414_v14 = vld [vmem:[%s3588_s20 + $0x31] sm:$0xff]  ;;  %v415_v16 = vld [vmem:[%s3588_s20 + $0x39] sm:$0xff] }
  0x1b   : > { %3146 = vmatmul.mubr.msk.f32.vlgmr.msra.gmra.mrb[0].mxu0 %vm428_vm1, %v1283_v7  ;;  %3066 = vmatpush3.msk.msra.mxu1 %vm477_vm0, %v409_v2  ;;  %v1285_v13 = vld [vmem:[%s3594_s30 + $0x21] sm:$0xff]  ;;  %v1286_v15 = vld [vmem:[%s3594_s30 + $0x31] sm:$0xff]  ;;  %v1287_v17 = vld [vmem:[%s3594_s30 + $0x39] sm:$0xff] }
  0x1c   : > { %3170 = vmatpush3.msk.msra.mxu0 %vm477_vm0, %v2811_v3  ;;  %3044 = vmatprep.mubr.msk.f32.mxu1 %vm428_vm1, %v412_v8  ;;  %v416_v18 = vld [vmem:[%s3588_s20 + $0x49] sm:$0xff]  ;;  %v417_v20 = vld [vmem:[%s3588_s20 + $0x51] sm:$0xff]  ;;  %v418_v22 = vld [vmem:[%s3588_s20 + $0x61] sm:$0xff] }
  0x1d   : > { %3148 = vmatprep.mubr.msk.f32.mxu0 %vm428_vm1, %v1284_v9  ;;  %3195 = vmatprep.subr.msk.mxu0 %vm477_vm0, %v2829_v10  ;;  %v1288_v19 = vld [vmem:[%s3594_s30 + $0x49] sm:$0xff]  ;;  %v1289_v21 = vld [vmem:[%s3594_s30 + $0x51] sm:$0xff]  ;;  %v420_v26 = vld [vmem:[%s3588_s20 + $0x79] sm:$0xff] }
  0x1e   : > { %3091 = vmatprep.subr.msk.mxu1 %vm477_vm0, %v3612_v11  ;;  %3045 = vmatmul.mubr.msk.f32.gmra.mrb[2].mxu1 %vm428_vm1, %v413_v12  ;;  %v1512_v23 = vld [vmem:[%s3594_s30 + $0x2] sm:$0xff]  ;;  %v1513_v25 = vld [vmem:[%s3594_s30 + $0xa] sm:$0xff]  ;;  %v1514_v27 = vld [vmem:[%s3594_s30 + $0x1a] sm:$0xff] }
  0x1f   : > { %3149 = vmatmul.mubr.msk.f32.gmra.mrb[2].mxu0 %vm428_vm1, %v1285_v13  ;;  %3047 = vmatprep.mubr.msk.f32.mxu1 %vm428_vm1, %v414_v14  ;;  %v419_v24 = vld [vmem:[%s3588_s20 + $0x69] sm:$0xff]  ;;  %v421_v29 = vld [vmem:[%s3588_s20 + $0x81] sm:$0xff]  ;;  %v422_v31 = vld [vmem:[%s3588_s20 + $0x91] sm:$0xff] }
  0x20   : > { %3151 = vmatprep.mubr.msk.f32.mxu0 %vm428_vm1, %v1286_v15  ;;  %v1515_v30 = vld [vmem:[%s3594_s30 + $0x22] sm:$0xff]  ;;  %v1516_v32 = vld [vmem:[%s3594_s30 + $0x32] sm:$0xff]  ;;  %v1517_v34 = vld [vmem:[%s3594_s30 + $0x3a] sm:$0xff] }
  0x21   : > { %v423_v33 = vld [vmem:[%s3588_s20 + $0x99] sm:$0xff]  ;;  %v424_v35 = vld [vmem:[%s3588_s20 + $0xa9] sm:$0xff]  ;;  %v425_v37 = vld [vmem:[%s3588_s20 + $0xb1] sm:$0xff] }
  0x22   : > { %3048 = vmatmul.mubr.msk.f32.gmra.mrb[4].mxu1 %vm428_vm1, %v415_v16  ;;  %v1518_v36 = vld [vmem:[%s3594_s30 + $0x4a] sm:$0xff]  ;;  %v1519_v38 = vld [vmem:[%s3594_s30 + $0x52] sm:$0xff]  ;;  %v393_v39 = vld [vmem:[%s3588_s20] sm:$0xff] }
  0x23   : > { %3152 = vmatmul.mubr.msk.f32.gmra.mrb[4].mxu0 %vm428_vm1, %v1287_v17  ;;  %3050 = vmatprep.mubr.msk.f32.mxu1 %vm428_vm1, %v416_v18  ;;  %v1520_v40 = vld [vmem:[%s3594_s30 + $0x62] sm:$0xff]  ;;  %v1521_v42 = vld [vmem:[%s3594_s30 + $0x6a] sm:$0xff]  ;;  %v395_v43 = vld [vmem:[%s3588_s20 + $0x18] sm:$0xff] }
  0x24   : > { %3154 = vmatprep.mubr.msk.f32.mxu0 %vm428_vm1, %v1288_v19  ;;  %v394_v41 = vld [vmem:[%s3588_s20 + $0x8] sm:$0xff]  ;;  %v1522_v44 = vld [vmem:[%s3594_s30 + $0x7a] sm:$0xff]  ;;  %v397_v48 = vld [vmem:[%s3588_s20 + $0x30] sm:$0xff] }
  0x25   : > { %v396_v46 = vld [vmem:[%s3588_s20 + $0x20] sm:$0xff]  ;;  %v1524_v49 = vld [vmem:[%s3594_s30 + $0x92] sm:$0xff]  ;;  %v399_v52 = vld [vmem:[%s3588_s20 + $0x48] sm:$0xff] }
  0x26   : > { %3051 = vmatmul.mubr.msk.f32.gmra.mrb[6].mxu1 %vm428_vm1, %v417_v20  ;;  %v1523_v47 = vld [vmem:[%s3594_s30 + $0x82] sm:$0xff]  ;;  %v398_v50 = vld [vmem:[%s3588_s20 + $0x38] sm:$0xff]  ;;  %v1526_v53 = vld [vmem:[%s3594_s30 + $0xaa] sm:$0xff] }
  0x27   : > { %3155 = vmatmul.mubr.msk.f32.gmra.mrb[6].mxu0 %vm428_vm1, %v1289_v21  ;;  %3053 = vmatprep.mubr.msk.f32.mxu1 %vm428_vm1, %v418_v22  ;;  %v1525_v51 = vld [vmem:[%s3594_s30 + $0x9a] sm:$0xff]  ;;  %v400_v54 = vld [vmem:[%s3588_s20 + $0x50] sm:$0xff]  ;;  %v402_v58 = vld [vmem:[%s3588_s20 + $0x68] sm:$0xff] }
  0x28   : > { %3171 = vmatprep.mubr.msk.f32.mxu0 %vm428_vm1, %v1512_v23  ;;  %v1527_v55 = vld [vmem:[%s3594_s30 + $0xb2] sm:$0xff]  ;;  %v401_v56 = vld [vmem:[%s3588_s20 + $0x60] sm:$0xff]  ;;  %v1743_v59 = vld [vmem:[%s3718_s19 + $0x8] sm:$0xff] }
  0x29   : > { %v1742_v57 = vld [vmem:[%s3718_s19] sm:$0xff]  ;;  %v403_v60 = vld [vmem:[%s3588_s20 + $0x78] sm:$0xff]  ;;  %v405_v2 = vld [vmem:[%s3588_s20 + $0x90] sm:$0xff] }
  0x2a   : > { %3054 = vmatmul.mubr.msk.f32.gmra.mrb[8].mxu1 %vm428_vm1, %v419_v24  ;;  %v1744_v61 = vld [vmem:[%s3718_s19 + $0x18] sm:$0xff]  ;;  %v404_v63 = vld [vmem:[%s3588_s20 + $0x80] sm:$0xff]  ;;  %v1746_v3 = vld [vmem:[%s3718_s19 + $0x30] sm:$0xff] }
  0x2b   : > { %3172 = vmatmul.mubr.msk.f32.vlgmr.msra.gmra.mrb[0].mxu0 %vm428_vm1, %v1513_v25  ;;  %3056 = vmatprep.mubr.msk.f32.mxu1 %vm428_vm1, %v420_v26  ;;  %v1745_v0 = vld [vmem:[%s3718_s19 + $0x20] sm:$0xff]  ;;  %v406_v4 = vld [vmem:[%s3588_s20 + $0x98] sm:$0xff]  ;;  %v407_v6 = vld [vmem:[%s3588_s20 + $0xa8] sm:$0xff] }
  0x2c   : > { %3196 = vmatpush3.msk.msra.mxu0 %vm477_vm0, %v2829_v10  ;;  %3174 = vmatprep.mubr.msk.f32.mxu0 %vm428_vm1, %v1514_v27  ;;  %v1747_v5 = vld [vmem:[%s3718_s19 + $0x38] sm:$0xff]  ;;  %v1748_v7 = vld [vmem:[%s3718_s19 + $0x48] sm:$0xff]  ;;  %v408_v8 = vld [vmem:[%s3588_s20 + $0xb0] sm:$0xff] }
  0x2d   : > { %3221 = vmatprep.subr.msk.mxu0 %vm477_vm0, %v3652_v28  ;;  %v1749_v9 = vld [vmem:[%s3718_s19 + $0x50] sm:$0xff]  ;;  %v822_v10 = vld [vmem:[%s3588_s20 + $0x2] sm:$0xff]  ;;  %v824_v14 = vld [vmem:[%s3588_s20 + $0x1a] sm:$0xff] }
  0x2e   : > { %3057 = vmatmul.mubr.msk.f32.gmra.mrb[10].mxu1 %vm428_vm1, %v421_v29  ;;  %v823_v12 = vld [vmem:[%s3588_s20 + $0xa] sm:$0xff]  ;;  %v1752_v15 = vld [vmem:[%s3718_s19 + $0x78] sm:$0xff]  ;;  %v825_v16 = vld [vmem:[%s3588_s20 + $0x22] sm:$0xff] }
  0x2f   : > { %3175 = vmatmul.mubr.msk.f32.gmra.mrb[2].mxu0 %vm428_vm1, %v1515_v30  ;;  %3059 = vmatprep.mubr.msk.f32.mxu1 %vm428_vm1, %v422_v31  ;;  %v1751_v13 = vld [vmem:[%s3718_s19 + $0x68] sm:$0xff]  ;;  %v1753_v17 = vld [vmem:[%s3718_s19 + $0x80] sm:$0xff]  ;;  %v826_v18 = vld [vmem:[%s3588_s20 + $0x32] sm:$0xff] }
  0x30   : > { %3177 = vmatprep.mubr.msk.f32.mxu0 %vm428_vm1, %v1516_v32  ;;  %v1754_v19 = vld [vmem:[%s3718_s19 + $0x90] sm:$0xff]  ;;  %v827_v20 = vld [vmem:[%s3588_s20 + $0x3a] sm:$0xff]  ;;  %v1756_v23 = vld [vmem:[%s3718_s19 + $0xa8] sm:$0xff] }
  0x31   : > { %v1755_v21 = vld [vmem:[%s3718_s19 + $0x98] sm:$0xff]  ;;  %v828_v22 = vld [vmem:[%s3588_s20 + $0x4a] sm:$0xff]  ;;  %v830_v26 = vld [vmem:[%s3588_s20 + $0x62] sm:$0xff] }
  0x32   : > { %3060 = vmatmul.mubr.msk.f32.gmra.mrb[12].mxu1 %vm428_vm1, %v423_v33  ;;  %v829_v24 = vld [vmem:[%s3588_s20 + $0x52] sm:$0xff]  ;;  %v1972_v27 = vld [vmem:[%s3718_s19 + $0x1] sm:$0xff]  ;;  %v1973_v29 = vld [vmem:[%s3718_s19 + $0x9] sm:$0xff] }
  0x33   : > { %3178 = vmatmul.mubr.msk.f32.gmra.mrb[4].mxu0 %vm428_vm1, %v1517_v34  ;;  %3062 = vmatprep.mubr.msk.f32.mxu1 %vm428_vm1, %v424_v35  ;;  %v1757_v25 = vld [vmem:[%s3718_s19 + $0xb0] sm:$0xff]  ;;  %v832_v30 = vld [vmem:[%s3588_s20 + $0x7a] sm:$0xff]  ;;  %v833_v32 = vld [vmem:[%s3588_s20 + $0x82] sm:$0xff] }
  0x34   : > { %3180 = vmatprep.mubr.msk.f32.mxu0 %vm428_vm1, %v1518_v36  ;;  %v1974_v31 = vld [vmem:[%s3718_s19 + $0x19] sm:$0xff]  ;;  %v1975_v33 = vld [vmem:[%s3718_s19 + $0x21] sm:$0xff]  ;;  %v1976_v35 = vld [vmem:[%s3718_s19 + $0x31] sm:$0xff] }
  0x35   : > { %v834_v34 = vld [vmem:[%s3588_s20 + $0x92] sm:$0xff]  ;;  %v835_v36 = vld [vmem:[%s3588_s20 + $0x9a] sm:$0xff] }
  0x36   : > { %3063 = vmatmul.mubr.msk.f32.gmra.mrb[14].mxu1 %vm428_vm1, %v425_v37  ;;  %v1977_v37 = vld [vmem:[%s3718_s19 + $0x39] sm:$0xff] }
  0x37   : > { %3181 = vmatmul.mubr.msk.f32.gmra.mrb[6].mxu0 %vm428_vm1, %v1519_v38  ;;  %3067 = vmatprep.mubr.msk.f32.mxu1 %vm428_vm1, %v393_v39  ;;  %v836_v38 = vld [vmem:[%s3588_s20 + $0xaa] sm:$0xff] }
  0x38   : > { %3183 = vmatprep.mubr.msk.f32.mxu0 %vm428_vm1, %v1520_v40  ;;  %v1978_v39 = vld [vmem:[%s3718_s19 + $0x49] sm:$0xff]  ;;  %v837_v40 = vld [vmem:[%s3588_s20 + $0xb2] sm:$0xff] }
  0x3a   : > { %3068 = vmatmul.mubr.msk.f32.vlgmr.msra.gmra.mrb[0].mxu1 %vm428_vm1, %v394_v41  ;;  %v1979_v41 = vld [vmem:[%s3718_s19 + $0x51] sm:$0xff] }
  0x3b   : > { %3184 = vmatmul.mubr.msk.f32.gmra.mrb[8].mxu0 %vm428_vm1, %v1521_v42  ;;  %3092 = vmatpush3.msk.msra.mxu1 %vm477_vm0, %v3612_v11  ;;  %v1750_v11 = vld [vmem:[%s3718_s19 + $0x60] sm:$0xff] }
  0x3c   : > { %3070 = vmatprep.mubr.msk.f32.mxu1 %vm428_vm1, %v395_v43  ;;  %3186 = vmatprep.mubr.msk.f32.mxu0 %vm428_vm1, %v1522_v44  ;;  %v1052_v42 = vld [vmem:[%s3594_s30] sm:$0xff]  ;;  %v1053_v44 = vld [vmem:[%s3594_s30 + $0x8] sm:$0xff] }
  0x3d   : > { %3117 = vmatprep.subr.msk.mxu1 %vm477_vm0, %v3692_v45  ;;  %v1980_v43 = vld [vmem:[%s3718_s19 + $0x61] sm:$0xff] }
  0x3e   : > { %3071 = vmatmul.mubr.msk.f32.gmra.mrb[2].mxu1 %vm428_vm1, %v396_v46  ;;  %v1054_v46 = vld [vmem:[%s3594_s30 + $0x18] sm:$0xff] }
  0x3f   : > { %3187 = vmatmul.mubr.msk.f32.gmra.mrb[10].mxu0 %vm428_vm1, %v1523_v47  ;;  %3073 = vmatprep.mubr.msk.f32.mxu1 %vm428_vm1, %v397_v48  ;;  %v1982_v47 = vld [vmem:[%s3718_s19 + $0x79] sm:$0xff] }
  0x40   : > { %3189 = vmatprep.mubr.msk.f32.mxu0 %vm428_vm1, %v1524_v49  ;;  %v1055_v48 = vld [vmem:[%s3594_s30 + $0x20] sm:$0xff] }
  0x41   : > { %v1983_v49 = vld [vmem:[%s3718_s19 + $0x81] sm:$0xff] }
  0x42   : > { %3074 = vmatmul.mubr.msk.f32.gmra.mrb[4].mxu1 %vm428_vm1, %v398_v50  ;;  %v1056_v50 = vld [vmem:[%s3594_s30 + $0x30] sm:$0xff] }
  0x43   : > { %3190 = vmatmul.mubr.msk.f32.gmra.mrb[12].mxu0 %vm428_vm1, %v1525_v51  ;;  %3076 = vmatprep.mubr.msk.f32.mxu1 %vm428_vm1, %v399_v52  ;;  %v1984_v51 = vld [vmem:[%s3718_s19 + $0x91] sm:$0xff]  ;;  %v1985_v52 = vld [vmem:[%s3718_s19 + $0x99] sm:$0xff] }
  0x44   : > { %3192 = vmatprep.mubr.msk.f32.mxu0 %vm428_vm1, %v1526_v53  ;;  %v1058_v53 = vld [vmem:[%s3594_s30 + $0x48] sm:$0xff] }
  0x46   : > { %3077 = vmatmul.mubr.msk.f32.gmra.mrb[6].mxu1 %vm428_vm1, %v400_v54  ;;  %v1986_v54 = vld [vmem:[%s3718_s19 + $0xa9] sm:$0xff] }
  0x47   : > { %3193 = vmatmul.mubr.msk.f32.gmra.mrb[14].mxu0 %vm428_vm1, %v1527_v55  ;;  %3079 = vmatprep.mubr.msk.f32.mxu1 %vm428_vm1, %v401_v56  ;;  %v1059_v55 = vld [vmem:[%s3594_s30 + $0x50] sm:$0xff] }
  0x48   : > { %3197 = vmatprep.mubr.msk.f32.mxu0 %vm428_vm1, %v1742_v57  ;;  %v1987_v56 = vld [vmem:[%s3718_s19 + $0xb1] sm:$0xff]  ;;  %v1060_v57 = vld [vmem:[%s3594_s30 + $0x60] sm:$0xff] }
  0x4a   : > { %3080 = vmatmul.mubr.msk.f32.gmra.mrb[8].mxu1 %vm428_vm1, %v402_v58  ;;  %v2202_v58 = vld [vmem:[%s3718_s19 + $0x2] sm:$0xff] }
  0x4b   : > { %3198 = vmatmul.mubr.msk.f32.vlgmr.msra.gmra.mrb[0].mxu0 %vm428_vm1, %v1743_v59  ;;  %3082 = vmatprep.mubr.msk.f32.mxu1 %vm428_vm1, %v403_v60  ;;  %v1061_v59 = vld [vmem:[%s3594_s30 + $0x68] sm:$0xff] }
  0x4c   : > { %3222 = vmatpush3.msk.msra.mxu0 %vm477_vm0, %v3652_v28  ;;  %3200 = vmatprep.mubr.msk.f32.mxu0 %vm428_vm1, %v1744_v61  ;;  %v831_v28 = vld [vmem:[%s3588_s20 + $0x6a] sm:$0xff]  ;;  %v1062_v61 = vld [vmem:[%s3594_s30 + $0x78] sm:$0xff]  ;;  %s2717_s20 = sshll.u32 %s3471_s22, 1 }
  0x4d   : > { %3247 = vmatprep.subr.msk.mxu0 %vm477_vm0, %v3739_v62  ;;  %v2203_v60 = vld [vmem:[%s3718_s19 + $0xa] sm:$0xff]  ;;  %s376_s29 = sadd.s32 %s3467_s21, %s2717_s20  ;;  %s4024_s21 = smov (!%p387_p8, %s3467_s21), 1 }
  0x4e   : > { %3083 = vmatmul.mubr.msk.f32.gmra.mrb[10].mxu1 %vm428_vm1, %v404_v63  ;;  %v1063_v63 = vld [vmem:[%s3594_s30 + $0x80] sm:$0xff]  ;;  %s2718_s7 = sshll.u32 %s376_s29, 4  ;;  %s390_s14 = sadd.s32 %s2720_s12, %s4024_s21 }
  0x4f   : > { %3201 = vmatmul.mubr.msk.f32.gmra.mrb[2].mxu0 %vm428_vm1, %v1745_v0  ;;  %3085 = vmatprep.mubr.msk.f32.mxu1 %vm428_vm1, %v405_v2  ;;  %v2205_v0 = vld [vmem:[%s3718_s19 + $0x22] sm:$0xff]  ;;  %v1064_v2 = vld [vmem:[%s3594_s30 + $0x90] sm:$0xff]  ;;  %p378_p7 = scmp.lt.s32.totalorder %s2718_s7, 63  ;;  %s2721_s15 = sshll.u32 %s390_s14, 1 }
  0x50   : > { %3203 = vmatprep.mubr.msk.f32.mxu0 %vm428_vm1, %v1746_v3  ;;  %v2206_v3 = vld [vmem:[%s3718_s19 + $0x32] sm:$0xff] }
  0x51   : > { %s4022_s7 = smov (!%p378_p7, %s2718_s7), 63 }
  0x52   : > { %3086 = vmatmul.mubr.msk.f32.gmra.mrb[12].mxu1 %vm428_vm1, %v406_v4  ;;  %v1065_v4 = vld [vmem:[%s3594_s30 + $0x98] sm:$0xff]  ;;  %s2719_s8 = sshll.u32 %s4022_s7, 3 }
  0x53   : > { %3204 = vmatmul.mubr.msk.f32.gmra.mrb[4].mxu0 %vm428_vm1, %v1747_v5  ;;  %3088 = vmatprep.mubr.msk.f32.mxu1 %vm428_vm1, %v407_v6  ;;  %v2207_v5 = vld [vmem:[%s3718_s19 + $0x3a] sm:$0xff]  ;;  %v1066_v6 = vld [vmem:[%s3594_s30 + $0xa8] sm:$0xff]  ;;  %s3947_s11 = scalar_lea.vmem %s4007_s5, %s2719_s8 }
  0x54   : > { %3206 = vmatprep.mubr.msk.f32.mxu0 %vm428_vm1, %v1748_v7  ;;  %v2208_v7 = vld [vmem:[%s3718_s19 + $0x4a] sm:$0xff] }
  0x56   : > { %3089 = vmatmul.mubr.msk.f32.gmra.mrb[14].mxu1 %vm428_vm1, %v408_v8  ;;  %v1067_v8 = vld [vmem:[%s3594_s30 + $0xb0] sm:$0xff] }
  0x57   : > { %3207 = vmatmul.mubr.msk.f32.gmra.mrb[6].mxu0 %vm428_vm1, %v1749_v9  ;;  %3093 = vmatprep.mubr.msk.f32.mxu1 %vm428_vm1, %v822_v10  ;;  %v2209_v9 = vld [vmem:[%s3718_s19 + $0x52] sm:$0xff]  ;;  %v1290_v10 = vld [vmem:[%s3594_s30 + $0x61] sm:$0xff] }
  0x58   : > { %3209 = vmatprep.mubr.msk.f32.mxu0 %vm428_vm1, %v1750_v11  ;;  %v2210_v11 = vld [vmem:[%s3718_s19 + $0x62] sm:$0xff] }
  0x5a   : > { %3094 = vmatmul.mubr.msk.f32.vlgmr.msra.gmra.mrb[0].mxu1 %vm428_vm1, %v823_v12  ;;  %v1291_v12 = vld [vmem:[%s3594_s30 + $0x69] sm:$0xff] }
  0x5b   : > { %3210 = vmatmul.mubr.msk.f32.gmra.mrb[8].mxu0 %vm428_vm1, %v1751_v13  ;;  %3118 = vmatpush3.msk.msra.mxu1 %vm477_vm0, %v3692_v45  ;;  %v1981_v45 = vld [vmem:[%s3718_s19 + $0x69] sm:$0xff] }
  0x5c   : > { %3096 = vmatprep.mubr.msk.f32.mxu1 %vm428_vm1, %v824_v14  ;;  %3212 = vmatprep.mubr.msk.f32.mxu0 %vm428_vm1, %v1752_v15  ;;  %v2211_v13 = vld [vmem:[%s3718_s19 + $0x6a] sm:$0xff]  ;;  %v1292_v14 = vld [vmem:[%s3594_s30 + $0x79] sm:$0xff] }
  0x5d   : > { %3273 = vmatprep.subr.msk.mxu1 %vm477_vm0, %v3560_v1  ;;  %v2212_v15 = vld [vmem:[%s3718_s19 + $0x7a] sm:$0xff] }
  0x5e   : > { %3097 = vmatmul.mubr.msk.f32.gmra.mrb[2].mxu1 %vm428_vm1, %v825_v16  ;;  %v1293_v16 = vld [vmem:[%s3594_s30 + $0x81] sm:$0xff] }
  0x5f   : > { %3213 = vmatmul.mubr.msk.f32.gmra.mrb[10].mxu0 %vm428_vm1, %v1753_v17  ;;  %3099 = vmatprep.mubr.msk.f32.mxu1 %vm428_vm1, %v826_v18  ;;  %v2213_v17 = vld [vmem:[%s3718_s19 + $0x82] sm:$0xff]  ;;  %v1294_v18 = vld [vmem:[%s3594_s30 + $0x91] sm:$0xff] }
  0x60   : > { %3215 = vmatprep.mubr.msk.f32.mxu0 %vm428_vm1, %v1754_v19  ;;  %v2214_v19 = vld [vmem:[%s3718_s19 + $0x92] sm:$0xff] }
  0x62   : > { %3100 = vmatmul.mubr.msk.f32.gmra.mrb[4].mxu1 %vm428_vm1, %v827_v20  ;;  %v1295_v20 = vld [vmem:[%s3594_s30 + $0x99] sm:$0xff] }
  0x63   : > { %3216 = vmatmul.mubr.msk.f32.gmra.mrb[12].mxu0 %vm428_vm1, %v1755_v21  ;;  %3102 = vmatprep.mubr.msk.f32.mxu1 %vm428_vm1, %v828_v22  ;;  %v2215_v21 = vld [vmem:[%s3718_s19 + $0x9a] sm:$0xff]  ;;  %v1296_v22 = vld [vmem:[%s3594_s30 + $0xa9] sm:$0xff] }
  0x64   : > { %3218 = vmatprep.mubr.msk.f32.mxu0 %vm428_vm1, %v1756_v23  ;;  %v2216_v23 = vld [vmem:[%s3718_s19 + $0xaa] sm:$0xff] }
  0x66   : > { %3103 = vmatmul.mubr.msk.f32.gmra.mrb[6].mxu1 %vm428_vm1, %v829_v24  ;;  %v1297_v24 = vld [vmem:[%s3594_s30 + $0xb1] sm:$0xff] }
  0x67   : > { %3219 = vmatmul.mubr.msk.f32.gmra.mrb[14].mxu0 %vm428_vm1, %v1757_v25  ;;  %3105 = vmatprep.mubr.msk.f32.mxu1 %vm428_vm1, %v830_v26  ;;  %v2217_v25 = vld [vmem:[%s3718_s19 + $0xb2] sm:$0xff] }
  0x68   : > { %3223 = vmatprep.mubr.msk.f32.mxu0 %vm428_vm1, %v1972_v27 }
  0x6a   : > { %3106 = vmatmul.mubr.msk.f32.gmra.mrb[8].mxu1 %vm428_vm1, %v831_v28 }
  0x6b   : > { %3224 = vmatmul.mubr.msk.f32.vlgmr.msra.gmra.mrb[0].mxu0 %vm428_vm1, %v1973_v29  ;;  %3108 = vmatprep.mubr.msk.f32.mxu1 %vm428_vm1, %v832_v30 }
  0x6c   : > { %3248 = vmatpush3.msk.msra.mxu0 %vm477_vm0, %v3739_v62  ;;  %3226 = vmatprep.mubr.msk.f32.mxu0 %vm428_vm1, %v1974_v31  ;;  %v2204_v62 = vld [vmem:[%s3718_s19 + $0x1a] sm:$0xff]  ;;  %s392_s19 = scalar_lea.vmem %s4008_s6, %s2721_s15 }
  0x6e   : > { %3109 = vmatmul.mubr.msk.f32.gmra.mrb[10].mxu1 %vm428_vm1, %v833_v32 }
  0x6f   : > { %3227 = vmatmul.mubr.msk.f32.gmra.mrb[2].mxu0 %vm428_vm1, %v1975_v33  ;;  %3111 = vmatprep.mubr.msk.f32.mxu1 %vm428_vm1, %v834_v34 }
  0x70   : > { %3229 = vmatprep.mubr.msk.f32.mxu0 %vm428_vm1, %v1976_v35  ;;  %v3942_v35 = vld [vmem:[%s4006_s4] ss:$0 sm:$0xff] }
  0x72   : > { %3112 = vmatmul.mubr.msk.f32.gmra.mrb[12].mxu1 %vm428_vm1, %v835_v36 }
  0x73   : > { %3230 = vmatmul.mubr.msk.f32.gmra.mrb[4].mxu0 %vm428_vm1, %v1977_v37  ;;  %3114 = vmatprep.mubr.msk.f32.mxu1 %vm428_vm1, %v836_v38 }
  0x74   : > { %3232 = vmatprep.mubr.msk.f32.mxu0 %vm428_vm1, %v1978_v39 }
  0x76   : > { %3115 = vmatmul.mubr.msk.f32.gmra.mrb[14].mxu1 %vm428_vm1, %v837_v40 }
  0x77   : > { %3233 = vmatmul.mubr.msk.f32.gmra.mrb[6].mxu0 %vm428_vm1, %v1979_v41  ;;  %3119 = vmatprep.mubr.msk.f32.mxu1 %vm428_vm1, %v1052_v42 }
  0x78   : > { %3235 = vmatprep.mubr.msk.f32.mxu0 %vm428_vm1, %v1980_v43 }
  0x7a   : > { %3120 = vmatmul.mubr.msk.f32.vlgmr.msra.gmra.mrb[0].mxu1 %vm428_vm1, %v1053_v44 }
  0x7b   : > { %3236 = vmatmul.mubr.msk.f32.gmra.mrb[8].mxu0 %vm428_vm1, %v1981_v45  ;;  %3274 = vmatpush3.msk.msra.mxu1 %vm477_vm0, %v3560_v1  ;;  %v1057_v1 = vld [vmem:[%s3594_s30 + $0x38] sm:$0xff] }
  0x7c   : > { %3122 = vmatprep.mubr.msk.f32.mxu1 %vm428_vm1, %v1054_v46  ;;  %3238 = vmatprep.mubr.msk.f32.mxu0 %vm428_vm1, %v1982_v47 }
  0x7e   : > { %3123 = vmatmul.mubr.msk.f32.gmra.mrb[2].mxu1 %vm428_vm1, %v1055_v48 }
  0x7f   : > { %3239 = vmatmul.mubr.msk.f32.gmra.mrb[10].mxu0 %vm428_vm1, %v1983_v49  ;;  %3125 = vmatprep.mubr.msk.f32.mxu1 %vm428_vm1, %v1056_v50 }
  0x80   : > { %3241 = vmatprep.mubr.msk.f32.mxu0 %vm428_vm1, %v1984_v51 }
  0x82   : > { %3126 = vmatmul.mubr.msk.f32.gmra.mrb[4].mxu1 %vm428_vm1, %v1057_v1 }
  0x83   : > { %3242 = vmatmul.mubr.msk.f32.gmra.mrb[12].mxu0 %vm428_vm1, %v1985_v52  ;;  %3128 = vmatprep.mubr.msk.f32.mxu1 %vm428_vm1, %v1058_v53 }
  0x84   : > { %3244 = vmatprep.mubr.msk.f32.mxu0 %vm428_vm1, %v1986_v54 }
  0x86   : > { %3129 = vmatmul.mubr.msk.f32.gmra.mrb[6].mxu1 %vm428_vm1, %v1059_v55 }
  0x87   : > { %3245 = vmatmul.mubr.msk.f32.gmra.mrb[14].mxu0 %vm428_vm1, %v1987_v56  ;;  %3131 = vmatprep.mubr.msk.f32.mxu1 %vm428_vm1, %v1060_v57 }
  0x88   : > { %3249 = vmatprep.mubr.msk.f32.mxu0 %vm428_vm1, %v2202_v58 }
  0x8a   : > { %3132 = vmatmul.mubr.msk.f32.gmra.mrb[8].mxu1 %vm428_vm1, %v1061_v59 }
  0x8b   : > { %3250 = vmatmul.mubr.msk.f32.vlgmr.msra.gmra.mrb[0].mxu0 %vm428_vm1, %v2203_v60  ;;  %3134 = vmatprep.mubr.msk.f32.mxu1 %vm428_vm1, %v1062_v61 }
  0x8c   : > { %3252 = vmatprep.mubr.msk.f32.mxu0 %vm428_vm1, %v2204_v62 }
  0x8e   : > { %3135 = vmatmul.mubr.msk.f32.gmra.mrb[10].mxu1 %vm428_vm1, %v1063_v63 }
  0x8f   : > { %3253 = vmatmul.mubr.msk.f32.gmra.mrb[2].mxu0 %vm428_vm1, %v2205_v0  ;;  %3137 = vmatprep.mubr.msk.f32.mxu1 %vm428_vm1, %v1064_v2 }
  0x90   : > { %3255 = vmatprep.mubr.msk.f32.mxu0 %vm428_vm1, %v2206_v3 }
  0x92   : > { %3138 = vmatmul.mubr.msk.f32.gmra.mrb[12].mxu1 %vm428_vm1, %v1065_v4 }
  0x93   : > { %3256 = vmatmul.mubr.msk.f32.gmra.mrb[4].mxu0 %vm428_vm1, %v2207_v5  ;;  %3140 = vmatprep.mubr.msk.f32.mxu1 %vm428_vm1, %v1066_v6 }
  0x94   : > { %3258 = vmatprep.mubr.msk.f32.mxu0 %vm428_vm1, %v2208_v7 }
  0x96   : > { %3141 = vmatmul.mubr.msk.f32.gmra.mrb[14].mxu1 %vm428_vm1, %v1067_v8 }
  0x97   : > { %3259 = vmatmul.mubr.msk.f32.gmra.mrb[6].mxu0 %vm428_vm1, %v2209_v9  ;;  %3157 = vmatprep.mubr.msk.f32.mxu1 %vm428_vm1, %v1290_v10 }
  0x98   : > { %3261 = vmatprep.mubr.msk.f32.mxu0 %vm428_vm1, %v2210_v11 }
  0x9a   : > { %3158 = vmatmul.mubr.msk.f32.vlgmr.msra.gmra.mrb[8].mxu1 %vm428_vm1, %v1291_v12 }
  0x9b   : > { %3262 = vmatmul.mubr.msk.f32.gmra.mrb[8].mxu0 %vm428_vm1, %v2211_v13  ;;  %3160 = vmatprep.mubr.msk.f32.mxu1 %vm428_vm1, %v1292_v14 }
  0x9c   : > { %3264 = vmatprep.mubr.msk.f32.mxu0 %vm428_vm1, %v2212_v15 }
  0x9e   : > { %3161 = vmatmul.mubr.msk.f32.gmra.mrb[10].mxu1 %vm428_vm1, %v1293_v16 }
  0x9f   : > { %3265 = vmatmul.mubr.msk.f32.gmra.mrb[10].mxu0 %vm428_vm1, %v2213_v17  ;;  %3163 = vmatprep.mubr.msk.f32.mxu1 %vm428_vm1, %v1294_v18 }
  0xa0   : > { %3267 = vmatprep.mubr.msk.f32.mxu0 %vm428_vm1, %v2214_v19 }
  0xa2   : > { %3164 = vmatmul.mubr.msk.f32.gmra.mrb[12].mxu1 %vm428_vm1, %v1295_v20 }
  0xa3   : > { %3268 = vmatmul.mubr.msk.f32.gmra.mrb[12].mxu0 %vm428_vm1, %v2215_v21  ;;  %3166 = vmatprep.mubr.msk.f32.mxu1 %vm428_vm1, %v1296_v22 }
  0xa4   : > { %3270 = vmatprep.mubr.msk.f32.mxu0 %vm428_vm1, %v2216_v23 }
  0xa6   : > { %3167 = vmatmul.mubr.msk.f32.gmra.mrb[14].mxu1 %vm428_vm1, %v1297_v24 }
  0xa7   : > { %3271 = vmatmul.mubr.msk.f32.gmra.mrb[14].mxu0 %vm428_vm1, %v2217_v25 }
 0x14d   : > { %v3121_v26 = vpop.f32.mrb[0].mxu1 }
 0x14e   : > { %v1187_v27 = vpop.f32.mrb[1].mxu1 }
 0x151   : > { %v3124_v28 = vpop.f32.mrb[2].mxu1 }
 0x152   : > { %v1197_v29 = vpop.f32.mrb[3].mxu1 }
 0x155   : > { %v3127_v30 = vpop.f32.mrb[4].mxu1 }
 0x156   : > { %v1207_v31 = vpop.f32.mrb[5].mxu1 }
 0x159   : > { %v3130_v32 = vpop.f32.mrb[6].mxu1 }
 0x15a   : > { %v1217_v33 = vpop.f32.mrb[7].mxu1 }
 0x15e   : > { %v3251_v34 = vpop.f32.mrb[0].mxu0 }
 0x15f   : > { %v3275_v36 = vadd.f32 %v3251_v34, %v3121_v26  ;;  %v2337_v37 = vpop.f32.mrb[1].mxu0 }
 0x160   : > { %v3276_v38 = vadd.f32 %v2337_v37, %v1187_v27 }
 0x161   : > { %v2440_v39 = vadd.f32 %v3275_v36, %v3942_v35 }
 0x162   : > { %v2439_v40 = vadd.f32 %v3276_v38, %v3942_v35  ;;  %v3254_v41 = vpop.f32.mrb[2].mxu0 }
 0x163   : > { %2456 = vst [vmem:[%s3947_s11 + $0x8] sm:$0xff] %v2440_v39  ;;  %v2493_v42 = vmul.f32 %v2440_v39, %v2440_v39  ;;  %v3277_v43 = vadd.f32 %v3254_v41, %v3124_v28  ;;  %v2347_v44 = vpop.f32.mrb[3].mxu0 }
 0x164   : > { %2455 = vst [vmem:[%s3947_s11] sm:$0xff] %v2439_v40  ;;  %v2471_v45 = vadd.f32 %v2440_v39, %v2439_v40  ;;  %v2492_v46 = vmul.f32 %v2439_v40, %v2439_v40  ;;  %v3278_v47 = vadd.f32 %v2347_v44, %v1197_v29 }
 0x165   : > { %v2442_v48 = vadd.f32 %v3277_v43, %v3942_v35 }
 0x166   : > { %v2508_v49 = vadd.f32 %v2493_v42, %v2492_v46  ;;  %v2441_v50 = vadd.f32 %v3278_v47, %v3942_v35  ;;  %v3257_v51 = vpop.f32.mrb[4].mxu0 }
 0x167   : > { %2458 = vst [vmem:[%s3947_s11 + $0x18] sm:$0xff] %v2442_v48  ;;  %v3279_v1 = vadd.f32 %v3257_v51, %v3127_v30  ;;  %v2357_v52 = vpop.f32.mrb[5].mxu0  ;;  %v2495_v57 = vmul.f32 %v2442_v48, %v2442_v48 }
 0x168   : > { %2457 = vst [vmem:[%s3947_s11 + $0x10] sm:$0xff] %v2441_v50  ;;  %v2472_v53 = vadd.f32 %v2471_v45, %v2441_v50  ;;  %v2494_v54 = vmul.f32 %v2441_v50, %v2441_v50  ;;  %v3280_v55 = vadd.f32 %v2357_v52, %v1207_v31 }
 0x169   : > { %v2444_v56 = vadd.f32 %v3279_v1, %v3942_v35 }
 0x16a   : > { %v2509_v58 = vadd.f32 %v2508_v49, %v2494_v54  ;;  %v2443_v59 = vadd.f32 %v3280_v55, %v3942_v35  ;;  %v2473_v60 = vadd.f32 %v2472_v53, %v2442_v48  ;;  %v3260_v61 = vpop.f32.mrb[6].mxu0 }
 0x16b   : > { %2460 = vst [vmem:[%s3947_s11 + $0x28] sm:$0xff] %v2444_v56  ;;  %v3281_v62 = vadd.f32 %v3260_v61, %v3130_v32  ;;  %v2367_v63 = vpop.f32.mrb[7].mxu0  ;;  %v2497_v6 = vmul.f32 %v2444_v56, %v2444_v56 }
 0x16c   : > { %2459 = vst [vmem:[%s3947_s11 + $0x20] sm:$0xff] %v2443_v59  ;;  %v2474_v0 = vadd.f32 %v2473_v60, %v2443_v59  ;;  %v2496_v2 = vmul.f32 %v2443_v59, %v2443_v59  ;;  %v2510_v3 = vadd.f32 %v2509_v58, %v2495_v57  ;;  %v3282_v4 = vadd.f32 %v2367_v63, %v1217_v33 }
 0x16d   : > { %v2446_v5 = vadd.f32 %v3281_v62, %v3942_v35  ;;  %v3159_v10 = vpop.f32.mrb[8].mxu1 }
 0x16e   : > { %v2511_v7 = vadd.f32 %v2510_v3, %v2496_v2  ;;  %v2445_v8 = vadd.f32 %v3282_v4, %v3942_v35  ;;  %v2475_v9 = vadd.f32 %v2474_v0, %v2444_v56  ;;  %v3263_v11 = vpop.f32.mrb[8].mxu0  ;;  %v1457_v13 = vpop.f32.mrb[9].mxu1 }
 0x16f   : > { %2462 = vst [vmem:[%s3947_s11 + $0x38] sm:$0xff] %v2446_v5  ;;  %v3283_v12 = vadd.f32 %v3263_v11, %v3159_v10  ;;  %v2377_v14 = vpop.f32.mrb[9].mxu0  ;;  %v2499_v20 = vmul.f32 %v2446_v5, %v2446_v5 }
 0x170   : > { %2461 = vst [vmem:[%s3947_s11 + $0x30] sm:$0xff] %v2445_v8  ;;  %v2476_v15 = vadd.f32 %v2475_v9, %v2445_v8  ;;  %v2498_v16 = vmul.f32 %v2445_v8, %v2445_v8  ;;  %v2512_v17 = vadd.f32 %v2511_v7, %v2497_v6  ;;  %v3284_v18 = vadd.f32 %v2377_v14, %v1457_v13 }
 0x171   : > { %v2448_v19 = vadd.f32 %v3283_v12, %v3942_v35  ;;  %v3162_v24 = vpop.f32.mrb[10].mxu1 }
 0x172   : > { %v2513_v21 = vadd.f32 %v2512_v17, %v2498_v16  ;;  %v2447_v22 = vadd.f32 %v3284_v18, %v3942_v35  ;;  %v2477_v23 = vadd.f32 %v2476_v15, %v2446_v5  ;;  %v3266_v25 = vpop.f32.mrb[10].mxu0  ;;  %v1467_v27 = vpop.f32.mrb[11].mxu1 }
 0x173   : > { %2464 = vst [vmem:[%s3947_s11 + $0x48] sm:$0xff] %v2448_v19  ;;  %v3285_v26 = vadd.f32 %v3266_v25, %v3162_v24  ;;  %v2387_v28 = vpop.f32.mrb[11].mxu0  ;;  %v2501_v34 = vmul.f32 %v2448_v19, %v2448_v19 }
 0x174   : > { %2463 = vst [vmem:[%s3947_s11 + $0x40] sm:$0xff] %v2447_v22  ;;  %v2478_v29 = vadd.f32 %v2477_v23, %v2447_v22  ;;  %v2500_v30 = vmul.f32 %v2447_v22, %v2447_v22  ;;  %v2514_v31 = vadd.f32 %v2513_v21, %v2499_v20  ;;  %v3286_v32 = vadd.f32 %v2387_v28, %v1467_v27 }
 0x175   : > { %v2450_v33 = vadd.f32 %v3285_v26, %v3942_v35  ;;  %v3165_v39 = vpop.f32.mrb[12].mxu1 }
 0x176   : > { %v2515_v36 = vadd.f32 %v2514_v31, %v2500_v30  ;;  %v2449_v37 = vadd.f32 %v3286_v32, %v3942_v35  ;;  %v2479_v38 = vadd.f32 %v2478_v29, %v2448_v19  ;;  %v3269_v40 = vpop.f32.mrb[12].mxu0  ;;  %v1477_v42 = vpop.f32.mrb[13].mxu1 }
 0x177   : > { %2466 = vst [vmem:[%s3947_s11 + $0x58] sm:$0xff] %v2450_v33  ;;  %v3287_v41 = vadd.f32 %v3269_v40, %v3165_v39  ;;  %v2397_v43 = vpop.f32.mrb[13].mxu0  ;;  %v2503_v49 = vmul.f32 %v2450_v33, %v2450_v33 }
 0x178   : > { %2465 = vst [vmem:[%s3947_s11 + $0x50] sm:$0xff] %v2449_v37  ;;  %v2480_v44 = vadd.f32 %v2479_v38, %v2449_v37  ;;  %v2502_v45 = vmul.f32 %v2449_v37, %v2449_v37  ;;  %v2516_v46 = vadd.f32 %v2515_v36, %v2501_v34  ;;  %v3288_v47 = vadd.f32 %v2397_v43, %v1477_v42 }
 0x179   : > { %v2452_v48 = vadd.f32 %v3287_v41, %v3942_v35  ;;  %v3168_v52 = vpop.f32.mrb[14].mxu1 }
 0x17a   : > { %v2517_v50 = vadd.f32 %v2516_v46, %v2502_v45  ;;  %v2451_v51 = vadd.f32 %v3288_v47, %v3942_v35  ;;  %v2481_v1 = vadd.f32 %v2480_v44, %v2450_v33  ;;  %v3272_v53 = vpop.f32.mrb[14].mxu0  ;;  %v1487_v55 = vpop.f32.mrb[15].mxu1 }
 0x17b   : > { %2468 = vst [vmem:[%s3947_s11 + $0x68] sm:$0xff] %v2452_v48  ;;  %v3289_v54 = vadd.f32 %v3272_v53, %v3168_v52  ;;  %v2407_v56 = vpop.f32.mrb[15].mxu0  ;;  %v2505_v62 = vmul.f32 %v2452_v48, %v2452_v48 }
 0x17c   : > { %2467 = vst [vmem:[%s3947_s11 + $0x60] sm:$0xff] %v2451_v51  ;;  %v2482_v57 = vadd.f32 %v2481_v1, %v2451_v51  ;;  %v2504_v58 = vmul.f32 %v2451_v51, %v2451_v51  ;;  %v2518_v59 = vadd.f32 %v2517_v50, %v2503_v49  ;;  %v3290_v60 = vadd.f32 %v2407_v56, %v1487_v55 }
 0x17d   : > { %v2454_v61 = vadd.f32 %v3289_v54, %v3942_v35 }
 0x17e   : > { %v2519_v63 = vadd.f32 %v2518_v59, %v2504_v58  ;;  %v2453_v0 = vadd.f32 %v3290_v60, %v3942_v35  ;;  %v2483_v2 = vadd.f32 %v2482_v57, %v2452_v48 }
 0x17f   : > { %2470 = vst [vmem:[%s3947_s11 + $0x78] sm:$0xff] %v2454_v61  ;;  %v2507_v6 = vmul.f32 %v2454_v61, %v2454_v61 }
 0x180   : > { %2469 = vst [vmem:[%s3947_s11 + $0x70] sm:$0xff] %v2453_v0  ;;  %v2484_v3 = vadd.f32 %v2483_v2, %v2453_v0  ;;  %v2506_v4 = vmul.f32 %v2453_v0, %v2453_v0  ;;  %v2520_v5 = vadd.f32 %v2519_v63, %v2505_v62 }
 0x182   : > { %v2485_v7 = vadd.f32 %v2484_v3, %v2454_v61  ;;  %v2521_v8 = vadd.f32 %v2520_v5, %v2506_v4 }
 0x184   : > { %v2486_v9 = vrot.slane %v2485_v7, 4  ;;  %v2522_v10 = vadd.f32 %v2521_v8, %v2507_v6 }
 0x186   : > { %v2487_v11 = vadd.f32 %v2486_v9, %v2485_v7  ;;  %v2523_v12 = vrot.slane %v2522_v10, 4 }
 0x188   : > { %v2488_v13 = vrot.slane %v2487_v11, 2  ;;  %v2524_v14 = vadd.f32 %v2523_v12, %v2522_v10 }
 0x18a   : > { %v2489_v35 = vadd.f32 %v2488_v13, %v2487_v11  ;;  %v2525_v15 = vrot.slane %v2524_v14, 2 }
 0x18c   : > { %v2490_v16 = vrot.slane %v2489_v35, 1  ;;  %v2526_v17 = vadd.f32 %v2525_v15, %v2524_v14 }
 0x18e   : > { %v2527_v18 = vrot.slane %v2526_v17, 1  ;;  %v2491_v19 = vadd.f32 %v2490_v16, %v2489_v35 }
 0x190   : > { %v2528_v20 = vadd.f32 %v2527_v18, %v2526_v17 }
 0x192   : > { %v2530_v21 = vsel %vm2529_vm2, %v2491_v19, %v2528_v20 }
 0x193   : > { %2531 = vst [vmem:[%s392_s19] sm:$0x3] %v2530_v21 }
 0x194 PF: > { %s17_s25 = sadd.s32 1, %s3483_s25   ;;  %s4009_s21 = smov %s3475_s23 }
 0x195   : > { %p14_p9 = scmp.ge.s32.totalorder %s17_s25, 6   ;;  %s4010_s22 = smov %s3479_s24 }
 0x196   : > { %s4011_s23 = smov %s4014_s26  ;;  %s4012_s24 = smov %s4018_s27 }
 0x197   :  { %16 = sbr.rel (!%p14_p9) target bundleno = 3 (0x3), region = 96 }

// kernel: block_forward.6
= control target key start
LH: loop header
LB: loop body
LE: loop exit
PB: predicated region body
PF: predicated region fallthrough
CT: control target
= control target key end

     0   :  { %s3868_s21 = smov 0   ;;  %s3870_s22 = smov 0   ;;  %s4614_s0 = inlined_call_operand.vmem [shape: f32[2,16,18,128], index: 0, kind: input, shape index: {}]   ;;  %s4615_s1 = inlined_call_operand.vmem [shape: f32[2,16,18,128], index: 1, kind: input, shape index: {}]   ;;  %s4616_s2 = inlined_call_operand.vmem [shape: f32[2,16,18,128], index: 2, kind: input, shape index: {}]   ;;  %s4617_s3 = inlined_call_operand.vmem [shape: f32[9,128,128], index: 3, kind: input, shape index: {}]   ;;  %s4618_s4 = inlined_call_operand.vmem [shape: f32[1,128], index: 4, kind: input, shape index: {}]   ;;  %s4619_s5 = inlined_call_operand.vmem [shape: f32[512,128], index: 5, kind: output, shape index: {0}]   ;;  %s4620_s6 = inlined_call_operand.vmem [shape: f32[2,2,2,128], index: 6, kind: output, shape index: {1}]  }
   0x1   :  { %s3872_s23 = smov 0   ;;  %s3874_s24 = smov 0  }
   0x2   :  { %s3876_s25 = smov 0  }
   0x3 LB: > { %s26_s26 = sadd.s32 1, %s3823_s23  ;;  %s29_s27 = sadd.s32 1, %s3827_s24  ;;  %s3831_s25 = sphi %s3876_s25, %s17_s25   ;;  %s3827_s24 = sphi %s3874_s24, %s4624_s24   ;;  %s3823_s23 = sphi %s3872_s23, %s4623_s23   ;;  %s3819_s22 = sphi %s3870_s22, %s4622_s22   ;;  %s3815_s21 = sphi %s3868_s21, %s4621_s21  }
   0x4   : > { %p27_p0 = scmp.ge.s32.totalorder %s26_s26, 2  ;;  %p2384_p1 = scmp.ge.s32.totalorder %s3831_s25, 1 }
   0x5   : > { %p277_p2 = scmp.lt.s32.totalorder %s3831_s25, 5 }
   0x6   : > { %s4626_s26 = smov (%p27_p0, %s26_s26), 0  ;;  %s4628_s27 = smov (!%p27_p0, %s29_s27), %s3827_s24 }
   0x7   : > { %p278_p3 = pnand %p2384_p1, %p277_p2  ;;  %p31_p4 = scmp.ge.s32.totalorder %s4628_s27, 2 }
   0x8   : > { %v2396_v0 = vld [vmem:[%s4617_s3 + $0x80] sm:$0xff] (!%p278_p3)  ;;  %v2397_v1 = vld [vmem:[%s4617_s3 + $0x88] sm:$0xff] (!%p278_p3)  ;;  %s2385_s10 = sshll.u32 (!%p278_p3), %s3815_s21, 3  ;;  %p343_p5 = scmp.lt.s32.totalorder (!%p278_p3), %s3819_s22, 1  ;;  %v2398_v5 = vld [vmem:[%s4617_s3 + $0x90] sm:$0xff] (!%p278_p3)  ;;  %vm2203_vm0 = vcmask (!%p278_p3), 1040384  }
   0x9   : > { %s4630_s27 = smov (%p31_p4, %s4628_s27), 0  ;;  %281 = sbr.rel (%p278_p3) target bundleno = 438 (0x1b6), region = 40 }
   0xa   : > { %v2444_v2 = vld [vmem:[%s4617_s3 + $0x200] sm:$0xff] (!%p278_p3)  ;;  %v3319_v3 = vpack.c.bf16 (!%p278_p3), %v2397_v1, %v2396_v0  ;;  %v2445_v4 = vld [vmem:[%s4617_s3 + $0x208] sm:$0xff] (!%p278_p3)  ;;  %v2399_v6 = vld [vmem:[%s4617_s3 + $0x98] sm:$0xff] (!%p278_p3)  ;;  %p345_p6 = scmp.lt.s32.totalorder (!%p278_p3), %s2385_s10, 15  ;;  %p387_p8 = scmp.lt.s32.totalorder (!%p278_p3), %s3815_s21, 1 }
   0xb   : > { %v3447_v7 = vpack.c.bf16 (!%p278_p3), %v2445_v4, %v2444_v2  ;;  %v3323_v8 = vpack.c.bf16 (!%p278_p3), %v2399_v6, %v2398_v5  ;;  %v2446_v9 = vld [vmem:[%s4617_s3 + $0x210] sm:$0xff] (!%p278_p3)  ;;  %v2447_v10 = vld [vmem:[%s4617_s3 + $0x218] sm:$0xff] (!%p278_p3)  ;;  %v2400_v11 = vld [vmem:[%s4617_s3 + $0xa0] sm:$0xff] (!%p278_p3) }
   0xc   : > { %3320 = vmatprep.subr.bf16.mxu1 (!%p278_p3), %v3319_v3  ;;  %v3451_v12 = vpack.c.bf16 (!%p278_p3), %v2447_v10, %v2446_v9  ;;  %v2401_v13 = vld [vmem:[%s4617_s3 + $0xa8] sm:$0xff] (!%p278_p3)  ;;  %v2448_v14 = vld [vmem:[%s4617_s3 + $0x220] sm:$0xff] (!%p278_p3)  ;;  %v2402_v18 = vld [vmem:[%s4617_s3 + $0xb0] sm:$0xff] (!%p278_p3) }
   0xd   : > { %v2449_v15 = vld [vmem:[%s4617_s3 + $0x228] sm:$0xff] (!%p278_p3)  ;;  %3448 = vmatprep.subr.bf16.mxu0 (!%p278_p3), %v3447_v7  ;;  %3322 = vmatpush3.bf16.msra.mxu1 (!%p278_p3), %v3319_v3  ;;  %v3327_v16 = vpack.c.bf16 (!%p278_p3), %v2401_v13, %v2400_v11  ;;  %v2403_v19 = vld [vmem:[%s4617_s3 + $0xb8] sm:$0xff] (!%p278_p3)  ;;  %v2450_v20 = vld [vmem:[%s4617_s3 + $0x230] sm:$0xff] (!%p278_p3) }
   0xe   : > { %3450 = vmatpush3.bf16.msra.mxu0 (!%p278_p3), %v3447_v7  ;;  %3324 = vmatprep.subr.bf16.mxu1 (!%p278_p3), %v3323_v8  ;;  %v3455_v17 = vpack.c.bf16 (!%p278_p3), %v2449_v15, %v2448_v14  ;;  %v2451_v21 = vld [vmem:[%s4617_s3 + $0x238] sm:$0xff] (!%p278_p3)  ;;  %v3331_v22 = vpack.c.bf16 (!%p278_p3), %v2403_v19, %v2402_v18  ;;  %v2404_v24 = vld [vmem:[%s4617_s3 + $0xc0] sm:$0xff] (!%p278_p3)  ;;  %v2405_v25 = vld [vmem:[%s4617_s3 + $0xc8] sm:$0xff] (!%p278_p3) }
   0xf   : > { %3452 = vmatprep.subr.bf16.mxu0 (!%p278_p3), %v3451_v12  ;;  %v3459_v23 = vpack.c.bf16 (!%p278_p3), %v2451_v21, %v2450_v20  ;;  %v2452_v27 = vld [vmem:[%s4617_s3 + $0x240] sm:$0xff] (!%p278_p3)  ;;  %v2453_v28 = vld [vmem:[%s4617_s3 + $0x248] sm:$0xff] (!%p278_p3)  ;;  %v3335_v30 = vpack.c.bf16 (!%p278_p3), %v2405_v25, %v2404_v24  ;;  %v2406_v32 = vld [vmem:[%s4617_s3 + $0xd0] sm:$0xff] (!%p278_p3) }
  0x10   : > { %s3932_s30 = scalar_select %p343_p5, %s3819_s22, 1  ;;  %v3463_v31 = vpack.c.bf16 %v2453_v28, %v2452_v27  ;;  %v2407_v33 = vld [vmem:[%s4617_s3 + $0xd8] sm:$0xff]  ;;  %v2454_v34 = vld [vmem:[%s4617_s3 + $0x250] sm:$0xff]  ;;  %v2408_v38 = vld [vmem:[%s4617_s3 + $0xe0] sm:$0xff] }
  0x11   : > { %s4632_s10 = smov (!%p345_p6, %s2385_s10), 15  ;;  %3326 = vmatpush3.bf16.msra.mxu1 %v3323_v8  ;;  %v2455_v35 = vld [vmem:[%s4617_s3 + $0x258] sm:$0xff]  ;;  %v3339_v36 = vpack.c.bf16 %v2407_v33, %v2406_v32  ;;  %v2409_v39 = vld [vmem:[%s4617_s3 + $0xe8] sm:$0xff]  ;;  %v2456_v40 = vld [vmem:[%s4617_s3 + $0x260] sm:$0xff] }
  0x12   : > { %s3752_s14 = smul.u32 48, %s3932_s30  ;;  %3454 = vmatpush3.bf16.msra.mxu0 %v3451_v12  ;;  %3328 = vmatprep.subr.bf16.mxu1 %v3327_v16  ;;  %v3467_v37 = vpack.c.bf16 %v2455_v35, %v2454_v34  ;;  %v2457_v41 = vld [vmem:[%s4617_s3 + $0x268] sm:$0xff]  ;;  %v3343_v42 = vpack.c.bf16 %v2409_v39, %v2408_v38  ;;  %v2410_v44 = vld [vmem:[%s4617_s3 + $0xf0] sm:$0xff]  ;;  %v2411_v45 = vld [vmem:[%s4617_s3 + $0xf8] sm:$0xff] }
  0x13   : > { %s3751_s15 = smul.u32 3, %s4632_s10  ;;  %3456 = vmatprep.subr.bf16.mxu0 %v3455_v17  ;;  %v3471_v43 = vpack.c.bf16 %v2457_v41, %v2456_v40  ;;  %v2458_v46 = vld [vmem:[%s4617_s3 + $0x270] sm:$0xff]  ;;  %v2459_v47 = vld [vmem:[%s4617_s3 + $0x278] sm:$0xff]  ;;  %v3347_v48 = vpack.c.bf16 %v2411_v45, %v2410_v44  ;;  %v409_v50 = vld [vmem:[%s4617_s3] sm:$0xff] }
  0x14   : > { %v3475_v49 = vpack.c.bf16 %v2459_v47, %v2458_v46  ;;  %v410_v51 = vld [vmem:[%s4617_s3 + $0x8] sm:$0xff]  ;;  %v2460_v52 = vld [vmem:[%s4617_s3 + $0x280] sm:$0xff]  ;;  %v411_v56 = vld [vmem:[%s4617_s3 + $0x10] sm:$0xff] }
  0x15   : > { %s349_s8 = sadd.s32 %s3752_s14, %s3751_s15  ;;  %3330 = vmatpush3.bf16.msra.mxu1 %v3327_v16  ;;  %v2461_v53 = vld [vmem:[%s4617_s3 + $0x288] sm:$0xff]  ;;  %v3351_v54 = vpack.c.bf16 %v410_v51, %v409_v50  ;;  %v412_v57 = vld [vmem:[%s4617_s3 + $0x18] sm:$0xff]  ;;  %v2462_v59 = vld [vmem:[%s4617_s3 + $0x290] sm:$0xff] }
  0x16   : > { %s3956_s10 = sshll.u32 %s349_s8, 3  ;;  %3458 = vmatpush3.bf16.msra.mxu0 %v3455_v17  ;;  %3332 = vmatprep.subr.bf16.mxu1 %v3331_v22  ;;  %v3479_v55 = vpack.c.bf16 %v2461_v53, %v2460_v52  ;;  %v2463_v60 = vld [vmem:[%s4617_s3 + $0x298] sm:$0xff]  ;;  %v3355_v63 = vpack.c.bf16 %v412_v57, %v411_v56  ;;  %v413_v2 = vld [vmem:[%s4617_s3 + $0x20] sm:$0xff]  ;;  %v414_v3 = vld [vmem:[%s4617_s3 + $0x28] sm:$0xff] }
  0x17   : > { %s3962_s12 = scalar_lea.vmem %s4614_s0, %s3956_s10  ;;  %s3968_s17 = scalar_lea.vmem %s4615_s1, %s3956_s10  ;;  %3460 = vmatprep.subr.bf16.mxu0 %v3459_v23  ;;  %v3483_v1 = vpack.c.bf16 %v2463_v60, %v2462_v59  ;;  %v2464_v5 = vld [vmem:[%s4617_s3 + $0x2a0] sm:$0xff]  ;;  %v2465_v6 = vld [vmem:[%s4617_s3 + $0x2a8] sm:$0xff]  ;;  %v3359_v9 = vpack.c.bf16 %v414_v3, %v413_v2  ;;  %v415_v12 = vld [vmem:[%s4617_s3 + $0x30] sm:$0xff] }
  0x18   : > { %v425_v26 = vld [vmem:[%s3962_s12 + $0x1] sm:$0xff]  ;;  %v426_v58 = vld [vmem:[%s3962_s12 + $0x9] sm:$0xff]  ;;  %v427_v62 = vld [vmem:[%s3962_s12 + $0x19] sm:$0xff]  ;;  %v3487_v11 = vpack.c.bf16 %v2465_v6, %v2464_v5  ;;  %s4283_s11 = scalar_lea.vmem %s4616_s2, %s3956_s10  ;;  %s2394_s10 = sshll.u32 %s3932_s30, 1 }
  0x19   : > { %2847 = vmatprep.mubr.f32.mxu1 %v425_v26  ;;  %v1136_v29 = vld [vmem:[%s3968_s17 + $0x1] sm:$0xff]  ;;  %3334 = vmatpush3.bf16.msra.mxu1 %v3331_v22  ;;  %v1137_v61 = vld [vmem:[%s3968_s17 + $0x9] sm:$0xff]  ;;  %v1138_v0 = vld [vmem:[%s3968_s17 + $0x19] sm:$0xff] }
  0x1a   : > { %3071 = vmatprep.mubr.f32.mxu0 %v1136_v29  ;;  %3462 = vmatpush3.bf16.msra.mxu0 %v3459_v23  ;;  %v428_v4 = vld [vmem:[%s3962_s12 + $0x21] sm:$0xff]  ;;  %v429_v8 = vld [vmem:[%s3962_s12 + $0x31] sm:$0xff]  ;;  %v430_v14 = vld [vmem:[%s3962_s12 + $0x39] sm:$0xff] }
  0x1b   : > { %3336 = vmatprep.subr.bf16.mxu1 %v3335_v30  ;;  %3464 = vmatprep.subr.bf16.mxu0 %v3463_v31  ;;  %v1139_v7 = vld [vmem:[%s3968_s17 + $0x21] sm:$0xff]  ;;  %v1140_v10 = vld [vmem:[%s3968_s17 + $0x31] sm:$0xff]  ;;  %v1141_v17 = vld [vmem:[%s3968_s17 + $0x39] sm:$0xff] }
  0x1c   : > { %v416_v13 = vld [vmem:[%s4617_s3 + $0x38] sm:$0xff]  ;;  %v2466_v15 = vld [vmem:[%s4617_s3 + $0x2b0] sm:$0xff]  ;;  %v417_v22 = vld [vmem:[%s4617_s3 + $0x40] sm:$0xff] }
  0x1d   : > { %3338 = vmatpush3.bf16.msra.mxu1 %v3335_v30  ;;  %v2467_v16 = vld [vmem:[%s4617_s3 + $0x2b8] sm:$0xff]  ;;  %v431_v18 = vld [vmem:[%s3962_s12 + $0x49] sm:$0xff]  ;;  %v3363_v19 = vpack.c.bf16 %v416_v13, %v415_v12  ;;  %v2468_v25 = vld [vmem:[%s4617_s3 + $0x2c0] sm:$0xff] }
  0x1e   : > { %3466 = vmatpush3.bf16.msra.mxu0 %v3463_v31  ;;  %3340 = vmatprep.subr.bf16.mxu1 %v3339_v36  ;;  %v1142_v20 = vld [vmem:[%s3968_s17 + $0x49] sm:$0xff]  ;;  %v3491_v21 = vpack.c.bf16 %v2467_v16, %v2466_v15  ;;  %v432_v24 = vld [vmem:[%s3962_s12 + $0x51] sm:$0xff]  ;;  %v433_v28 = vld [vmem:[%s3962_s12 + $0x61] sm:$0xff] }
  0x1f   : > { %3468 = vmatprep.subr.bf16.mxu0 %v3467_v37  ;;  %v418_v23 = vld [vmem:[%s4617_s3 + $0x48] sm:$0xff]  ;;  %v1143_v27 = vld [vmem:[%s3968_s17 + $0x51] sm:$0xff]  ;;  %v435_v38 = vld [vmem:[%s3962_s12 + $0x79] sm:$0xff] }
  0x20   : > { %v2469_v26 = vld [vmem:[%s4617_s3 + $0x2c8] sm:$0xff]  ;;  %v3367_v29 = vpack.c.bf16 %v418_v23, %v417_v22  ;;  %v419_v32 = vld [vmem:[%s4617_s3 + $0x50] sm:$0xff]  ;;  %v420_v33 = vld [vmem:[%s4617_s3 + $0x58] sm:$0xff] }
  0x21   : > { %3342 = vmatpush3.bf16.msra.mxu1 %v3339_v36  ;;  %v1144_v30 = vld [vmem:[%s3968_s17 + $0x61] sm:$0xff]  ;;  %v3495_v31 = vpack.c.bf16 %v2469_v26, %v2468_v25  ;;  %v434_v34 = vld [vmem:[%s3962_s12 + $0x69] sm:$0xff]  ;;  %v2471_v36 = vld [vmem:[%s4617_s3 + $0x2d8] sm:$0xff]  ;;  %v3371_v39 = vpack.c.bf16 %v420_v33, %v419_v32 }
  0x22   : > { %3470 = vmatpush3.bf16.msra.mxu0 %v3467_v37  ;;  %3344 = vmatprep.subr.bf16.mxu1 %v3343_v42  ;;  %v2470_v35 = vld [vmem:[%s4617_s3 + $0x2d0] sm:$0xff]  ;;  %v1146_v40 = vld [vmem:[%s3968_s17 + $0x79] sm:$0xff]  ;;  %v436_v44 = vld [vmem:[%s3962_s12 + $0x81] sm:$0xff] }
  0x23   : > { %3472 = vmatprep.subr.bf16.mxu0 %v3471_v43  ;;  %v1145_v37 = vld [vmem:[%s3968_s17 + $0x69] sm:$0xff]  ;;  %v3499_v41 = vpack.c.bf16 %v2471_v36, %v2470_v35  ;;  %v2472_v45 = vld [vmem:[%s4617_s3 + $0x2e0] sm:$0xff]  ;;  %v1148_v50 = vld [vmem:[%s3968_s17 + $0x91] sm:$0xff] }
  0x24   : > { %v2473_v46 = vld [vmem:[%s4617_s3 + $0x2e8] sm:$0xff]  ;;  %v423_v52 = vld [vmem:[%s4617_s3 + $0x70] sm:$0xff]  ;;  %v424_v53 = vld [vmem:[%s4617_s3 + $0x78] sm:$0xff] }
  0x25   : > { %3346 = vmatpush3.bf16.msra.mxu1 %v3343_v42  ;;  %v421_v42 = vld [vmem:[%s4617_s3 + $0x60] sm:$0xff]  ;;  %v3503_v51 = vpack.c.bf16 %v2473_v46, %v2472_v45  ;;  %v2475_v56 = vld [vmem:[%s4617_s3 + $0x2f8] sm:$0xff]  ;;  %v3379_v59 = vpack.c.bf16 %v424_v53, %v423_v52  ;;  %v1150_v60 = vld [vmem:[%s3968_s17 + $0xa9] sm:$0xff] }
  0x26   : > { %3474 = vmatpush3.bf16.msra.mxu0 %v3471_v43  ;;  %3348 = vmatprep.subr.bf16.mxu1 %v3347_v48  ;;  %v422_v43 = vld [vmem:[%s4617_s3 + $0x68] sm:$0xff]  ;;  %v1149_v57 = vld [vmem:[%s3968_s17 + $0x99] sm:$0xff]  ;;  %v1151_v3 = vld [vmem:[%s3968_s17 + $0xb1] sm:$0xff] }
  0x27   : > { %3476 = vmatprep.subr.bf16.mxu0 %v3475_v49  ;;  %v1147_v47 = vld [vmem:[%s3968_s17 + $0x81] sm:$0xff]  ;;  %v2479_v12 = vld [vmem:[%s4617_s3 + $0x318] sm:$0xff]  ;;  %v1331_v13 = vld [vmem:[%s3968_s17 + $0xa] sm:$0xff] }
  0x28   : > { %v2477_v2 = vld [vmem:[%s4617_s3 + $0x308] sm:$0xff]  ;;  %v1332_v16 = vld [vmem:[%s3968_s17 + $0x1a] sm:$0xff]  ;;  %v1334_v26 = vld [vmem:[%s3968_s17 + $0x32] sm:$0xff] }
  0x29   : > { %3350 = vmatpush3.bf16.msra.mxu1 %v3347_v48  ;;  %v437_v48 = vld [vmem:[%s3962_s12 + $0x91] sm:$0xff]  ;;  %v1330_v6 = vld [vmem:[%s3968_s17 + $0x2] sm:$0xff]  ;;  %v1335_v33 = vld [vmem:[%s3968_s17 + $0x3a] sm:$0xff] }
  0x2a   : > { %3478 = vmatpush3.bf16.msra.mxu0 %v3475_v49  ;;  %3352 = vmatprep.subr.bf16.mxu1 %v3351_v54  ;;  %v3375_v49 = vpack.c.bf16 %v422_v43, %v421_v42  ;;  %v2481_v22 = vld [vmem:[%s4617_s3 + $0x328] sm:$0xff]  ;;  %v2483_v32 = vld [vmem:[%s4617_s3 + $0x338] sm:$0xff] }
  0x2b   : > { %3480 = vmatprep.subr.bf16.mxu0 %v3479_v55  ;;  %v1333_v23 = vld [vmem:[%s3968_s17 + $0x22] sm:$0xff]  ;;  %v1336_v36 = vld [vmem:[%s3968_s17 + $0x4a] sm:$0xff]  ;;  %v1337_v43 = vld [vmem:[%s3968_s17 + $0x52] sm:$0xff] }
  0x2c   : > { %2848 = vmatmul.mubr.f32.vlgmr.msra.gmra.mrb[0].mxu1 %v426_v58  ;;  %v439_v58 = vld [vmem:[%s3962_s12 + $0xa9] sm:$0xff]  ;;  %v2487_v52 = vld [vmem:[%s4617_s3 + $0x358] sm:$0xff] }
  0x2d   : > { %3072 = vmatmul.mubr.f32.vlgmr.msra.gmra.mrb[0].mxu0 %v1137_v61  ;;  %3354 = vmatpush3.bf16.msra.mxu1 %v3351_v54  ;;  %v438_v54 = vld [vmem:[%s3962_s12 + $0x99] sm:$0xff]  ;;  %v2485_v42 = vld [vmem:[%s4617_s3 + $0x348] sm:$0xff] }
  0x2e   : > { %3482 = vmatpush3.bf16.msra.mxu0 %v3479_v55  ;;  %2850 = vmatprep.mubr.f32.mxu1 %v427_v62  ;;  %v2474_v55 = vld [vmem:[%s4617_s3 + $0x2f0] sm:$0xff]  ;;  %v2412_v62 = vld [vmem:[%s4617_s3 + $0x100] sm:$0xff] }
  0x2f   : > { %3074 = vmatprep.mubr.f32.mxu0 %v1138_v0  ;;  %3356 = vmatprep.subr.bf16.mxu1 %v3355_v63  ;;  %v3507_v61 = vpack.c.bf16 %v2475_v56, %v2474_v55  ;;  %v440_v0 = vld [vmem:[%s3962_s12 + $0xb1] sm:$0xff]  ;;  %v1338_v46 = vld [vmem:[%s3968_s17 + $0x62] sm:$0xff]  ;;  %v1340_v56 = vld [vmem:[%s3968_s17 + $0x7a] sm:$0xff] }
  0x30   : > { %2851 = vmatmul.mubr.f32.gmra.mrb[2].mxu1 %v428_v4  ;;  %3484 = vmatprep.subr.bf16.mxu0 %v3483_v1  ;;  %v393_v4 = vld [vmem:[%s3962_s12] sm:$0xff]  ;;  %v1339_v53 = vld [vmem:[%s3968_s17 + $0x6a] sm:$0xff] }
  0x31   : > { %3075 = vmatmul.mubr.f32.gmra.mrb[2].mxu0 %v1139_v7  ;;  %3358 = vmatpush3.bf16.msra.mxu1 %v3355_v63  ;;  %v2413_v63 = vld [vmem:[%s4617_s3 + $0x108] sm:$0xff] }
  0x32   : > { %3486 = vmatpush3.bf16.msra.mxu0 %v3483_v1  ;;  %2853 = vmatprep.mubr.f32.mxu1 %v429_v8  ;;  %v2476_v1 = vld [vmem:[%s4617_s3 + $0x300] sm:$0xff]  ;;  %v3383_v5 = vpack.c.bf16 %v2413_v63, %v2412_v62  ;;  %v2414_v8 = vld [vmem:[%s4617_s3 + $0x110] sm:$0xff]  ;;  %v2489_v62 = vld [vmem:[%s4617_s3 + $0x368] sm:$0xff] }
  0x33   : > { %3077 = vmatprep.mubr.f32.mxu0 %v1140_v10  ;;  %3360 = vmatprep.subr.bf16.mxu1 %v3359_v9  ;;  %v3511_v7 = vpack.c.bf16 %v2477_v2, %v2476_v1  ;;  %v394_v10 = vld [vmem:[%s3962_s12 + $0x8] sm:$0xff]  ;;  %v1342_v2 = vld [vmem:[%s3968_s17 + $0x92] sm:$0xff] }
  0x34   : > { %2854 = vmatmul.mubr.f32.gmra.mrb[4].mxu1 %v430_v14  ;;  %3488 = vmatprep.subr.bf16.mxu0 %v3487_v11  ;;  %v395_v14 = vld [vmem:[%s3962_s12 + $0x18] sm:$0xff]  ;;  %v1341_v63 = vld [vmem:[%s3968_s17 + $0x82] sm:$0xff] }
  0x35   : > { %3078 = vmatmul.mubr.f32.gmra.mrb[4].mxu0 %v1141_v17  ;;  %3362 = vmatpush3.bf16.msra.mxu1 %v3359_v9  ;;  %v2415_v9 = vld [vmem:[%s4617_s3 + $0x118] sm:$0xff] }
  0x36   : > { %3490 = vmatpush3.bf16.msra.mxu0 %v3487_v11  ;;  %2856 = vmatprep.mubr.f32.mxu1 %v431_v18  ;;  %v2478_v11 = vld [vmem:[%s4617_s3 + $0x310] sm:$0xff]  ;;  %v3387_v15 = vpack.c.bf16 %v2415_v9, %v2414_v8  ;;  %v2416_v18 = vld [vmem:[%s4617_s3 + $0x120] sm:$0xff]  ;;  %v2491_v8 = vld [vmem:[%s4617_s3 + $0x378] sm:$0xff] }
  0x37   : > { %3080 = vmatprep.mubr.f32.mxu0 %v1142_v20  ;;  %3364 = vmatprep.subr.bf16.mxu1 %v3363_v19  ;;  %v3515_v17 = vpack.c.bf16 %v2479_v12, %v2478_v11  ;;  %v396_v20 = vld [vmem:[%s3962_s12 + $0x20] sm:$0xff]  ;;  %v1344_v12 = vld [vmem:[%s3968_s17 + $0xaa] sm:$0xff] }
  0x38   : > { %2857 = vmatmul.mubr.f32.gmra.mrb[6].mxu1 %v432_v24  ;;  %3492 = vmatprep.subr.bf16.mxu0 %v3491_v21  ;;  %v397_v24 = vld [vmem:[%s3962_s12 + $0x30] sm:$0xff]  ;;  %v1343_v9 = vld [vmem:[%s3968_s17 + $0x9a] sm:$0xff] }
  0x39   : > { %3081 = vmatmul.mubr.f32.gmra.mrb[6].mxu0 %v1143_v27  ;;  %3366 = vmatpush3.bf16.msra.mxu1 %v3363_v19  ;;  %v2417_v19 = vld [vmem:[%s4617_s3 + $0x128] sm:$0xff] }
  0x3a   : > { %3494 = vmatpush3.bf16.msra.mxu0 %v3491_v21  ;;  %2859 = vmatprep.mubr.f32.mxu1 %v433_v28  ;;  %v2480_v21 = vld [vmem:[%s4617_s3 + $0x320] sm:$0xff]  ;;  %v3391_v25 = vpack.c.bf16 %v2417_v19, %v2416_v18  ;;  %v2418_v28 = vld [vmem:[%s4617_s3 + $0x130] sm:$0xff]  ;;  %v2493_v18 = vld [vmem:[%s4617_s3 + $0x388] sm:$0xff] }
  0x3b   : > { %3083 = vmatprep.mubr.f32.mxu0 %v1144_v30  ;;  %3368 = vmatprep.subr.bf16.mxu1 %v3367_v29  ;;  %v3519_v27 = vpack.c.bf16 %v2481_v22, %v2480_v21  ;;  %v398_v30 = vld [vmem:[%s3962_s12 + $0x38] sm:$0xff]  ;;  %v1524_v22 = vld [vmem:[%s4283_s11] sm:$0xff] }
  0x3c   : > { %2860 = vmatmul.mubr.f32.gmra.mrb[8].mxu1 %v434_v34  ;;  %3496 = vmatprep.subr.bf16.mxu0 %v3495_v31  ;;  %v399_v34 = vld [vmem:[%s3962_s12 + $0x48] sm:$0xff]  ;;  %v1345_v19 = vld [vmem:[%s3968_s17 + $0xb2] sm:$0xff] }
  0x3d   : > { %3084 = vmatmul.mubr.f32.gmra.mrb[8].mxu0 %v1145_v37  ;;  %3370 = vmatpush3.bf16.msra.mxu1 %v3367_v29  ;;  %v2419_v29 = vld [vmem:[%s4617_s3 + $0x138] sm:$0xff] }
  0x3e   : > { %3498 = vmatpush3.bf16.msra.mxu0 %v3495_v31  ;;  %2862 = vmatprep.mubr.f32.mxu1 %v435_v38  ;;  %v2482_v31 = vld [vmem:[%s4617_s3 + $0x330] sm:$0xff]  ;;  %v3395_v35 = vpack.c.bf16 %v2419_v29, %v2418_v28  ;;  %v2420_v38 = vld [vmem:[%s4617_s3 + $0x140] sm:$0xff]  ;;  %v2495_v28 = vld [vmem:[%s4617_s3 + $0x398] sm:$0xff] }
  0x3f   : > { %3086 = vmatprep.mubr.f32.mxu0 %v1146_v40  ;;  %3372 = vmatprep.subr.bf16.mxu1 %v3371_v39  ;;  %v3523_v37 = vpack.c.bf16 %v2483_v32, %v2482_v31  ;;  %v400_v40 = vld [vmem:[%s3962_s12 + $0x50] sm:$0xff]  ;;  %v1525_v29 = vld [vmem:[%s4283_s11 + $0x8] sm:$0xff]  ;;  %v1526_v32 = vld [vmem:[%s4283_s11 + $0x18] sm:$0xff] }
  0x40   : > { %2863 = vmatmul.mubr.f32.gmra.mrb[10].mxu1 %v436_v44  ;;  %3500 = vmatprep.subr.bf16.mxu0 %v3499_v41  ;;  %v401_v44 = vld [vmem:[%s3962_s12 + $0x60] sm:$0xff] }
  0x41   : > { %3087 = vmatmul.mubr.f32.gmra.mrb[10].mxu0 %v1147_v47  ;;  %3374 = vmatpush3.bf16.msra.mxu1 %v3371_v39  ;;  %v2421_v39 = vld [vmem:[%s4617_s3 + $0x148] sm:$0xff] }
  0x42   : > { %3502 = vmatpush3.bf16.msra.mxu0 %v3499_v41  ;;  %2865 = vmatprep.mubr.f32.mxu1 %v437_v48  ;;  %v2484_v41 = vld [vmem:[%s4617_s3 + $0x340] sm:$0xff]  ;;  %v3399_v45 = vpack.c.bf16 %v2421_v39, %v2420_v38  ;;  %v2422_v48 = vld [vmem:[%s4617_s3 + $0x150] sm:$0xff]  ;;  %v2497_v38 = vld [vmem:[%s4617_s3 + $0x3a8] sm:$0xff] }
  0x43   : > { %3089 = vmatprep.mubr.f32.mxu0 %v1148_v50  ;;  %3376 = vmatprep.subr.bf16.mxu1 %v3375_v49  ;;  %v3527_v47 = vpack.c.bf16 %v2485_v42, %v2484_v41  ;;  %v402_v50 = vld [vmem:[%s3962_s12 + $0x68] sm:$0xff]  ;;  %v1527_v39 = vld [vmem:[%s4283_s11 + $0x20] sm:$0xff]  ;;  %v1528_v42 = vld [vmem:[%s4283_s11 + $0x30] sm:$0xff] }
  0x44   : > { %2866 = vmatmul.mubr.f32.gmra.mrb[12].mxu1 %v438_v54  ;;  %3504 = vmatprep.subr.bf16.mxu0 %v3503_v51  ;;  %v403_v54 = vld [vmem:[%s3962_s12 + $0x78] sm:$0xff] }
  0x45   : > { %3090 = vmatmul.mubr.f32.gmra.mrb[12].mxu0 %v1149_v57  ;;  %3378 = vmatpush3.bf16.msra.mxu1 %v3375_v49  ;;  %v2423_v49 = vld [vmem:[%s4617_s3 + $0x158] sm:$0xff] }
  0x46   : > { %3506 = vmatpush3.bf16.msra.mxu0 %v3503_v51  ;;  %2868 = vmatprep.mubr.f32.mxu1 %v439_v58  ;;  %v2486_v51 = vld [vmem:[%s4617_s3 + $0x350] sm:$0xff]  ;;  %v3403_v55 = vpack.c.bf16 %v2423_v49, %v2422_v48  ;;  %v2424_v58 = vld [vmem:[%s4617_s3 + $0x160] sm:$0xff]  ;;  %v2499_v48 = vld [vmem:[%s4617_s3 + $0x3b8] sm:$0xff] }
  0x47   : > { %3092 = vmatprep.mubr.f32.mxu0 %v1150_v60  ;;  %3380 = vmatprep.subr.bf16.mxu1 %v3379_v59  ;;  %v3531_v57 = vpack.c.bf16 %v2487_v52, %v2486_v51  ;;  %v404_v60 = vld [vmem:[%s3962_s12 + $0x80] sm:$0xff]  ;;  %v1529_v49 = vld [vmem:[%s4283_s11 + $0x38] sm:$0xff]  ;;  %v1530_v52 = vld [vmem:[%s4283_s11 + $0x48] sm:$0xff] }
  0x48   : > { %2869 = vmatmul.mubr.f32.gmra.mrb[14].mxu1 %v440_v0  ;;  %3508 = vmatprep.subr.bf16.mxu0 %v3507_v61  ;;  %v405_v0 = vld [vmem:[%s3962_s12 + $0x90] sm:$0xff] }
  0x49   : > { %3093 = vmatmul.mubr.f32.gmra.mrb[14].mxu0 %v1151_v3  ;;  %3382 = vmatpush3.bf16.msra.mxu1 %v3379_v59  ;;  %v2425_v59 = vld [vmem:[%s4617_s3 + $0x168] sm:$0xff] }
  0x4a   : > { %3510 = vmatpush3.bf16.msra.mxu0 %v3507_v61  ;;  %2903 = vmatprep.mubr.f32.mxu1 %v393_v4  ;;  %v2488_v61 = vld [vmem:[%s4617_s3 + $0x360] sm:$0xff]  ;;  %v3407_v1 = vpack.c.bf16 %v2425_v59, %v2424_v58  ;;  %v2426_v4 = vld [vmem:[%s4617_s3 + $0x170] sm:$0xff]  ;;  %v2501_v58 = vld [vmem:[%s4617_s3 + $0x3c8] sm:$0xff] }
  0x4b   : > { %3127 = vmatprep.mubr.f32.mxu0 %v1330_v6  ;;  %3384 = vmatprep.subr.bf16.mxu1 %v3383_v5  ;;  %v3535_v3 = vpack.c.bf16 %v2489_v62, %v2488_v61  ;;  %v406_v6 = vld [vmem:[%s3962_s12 + $0x98] sm:$0xff]  ;;  %v1531_v59 = vld [vmem:[%s4283_s11 + $0x50] sm:$0xff]  ;;  %v1532_v62 = vld [vmem:[%s4283_s11 + $0x60] sm:$0xff] }
  0x4c   : > { %2904 = vmatmul.mubr.f32.vlgmr.msra.gmra.mrb[0].mxu1 %v394_v10  ;;  %3512 = vmatprep.subr.bf16.mxu0 %v3511_v7  ;;  %v407_v10 = vld [vmem:[%s3962_s12 + $0xa8] sm:$0xff] }
  0x4d   : > { %3128 = vmatmul.mubr.f32.vlgmr.msra.gmra.mrb[0].mxu0 %v1331_v13  ;;  %3386 = vmatpush3.bf16.msra.mxu1 %v3383_v5  ;;  %v2427_v5 = vld [vmem:[%s4617_s3 + $0x178] sm:$0xff] }
  0x4e   : > { %3514 = vmatpush3.bf16.msra.mxu0 %v3511_v7  ;;  %2906 = vmatprep.mubr.f32.mxu1 %v395_v14  ;;  %v2490_v7 = vld [vmem:[%s4617_s3 + $0x370] sm:$0xff]  ;;  %v3411_v11 = vpack.c.bf16 %v2427_v5, %v2426_v4  ;;  %v2428_v14 = vld [vmem:[%s4617_s3 + $0x180] sm:$0xff]  ;;  %v2503_v4 = vld [vmem:[%s4617_s3 + $0x3d8] sm:$0xff] }
  0x4f   : > { %3130 = vmatprep.mubr.f32.mxu0 %v1332_v16  ;;  %3388 = vmatprep.subr.bf16.mxu1 %v3387_v15  ;;  %v3539_v13 = vpack.c.bf16 %v2491_v8, %v2490_v7  ;;  %v408_v16 = vld [vmem:[%s3962_s12 + $0xb0] sm:$0xff]  ;;  %v1533_v5 = vld [vmem:[%s4283_s11 + $0x68] sm:$0xff]  ;;  %v1534_v8 = vld [vmem:[%s4283_s11 + $0x78] sm:$0xff] }
  0x50   : > { %2907 = vmatmul.mubr.f32.gmra.mrb[2].mxu1 %v396_v20  ;;  %3516 = vmatprep.subr.bf16.mxu0 %v3515_v17  ;;  %v748_v20 = vld [vmem:[%s3962_s12 + $0x2] sm:$0xff] }
  0x51   : > { %3131 = vmatmul.mubr.f32.gmra.mrb[2].mxu0 %v1333_v23  ;;  %3390 = vmatpush3.bf16.msra.mxu1 %v3387_v15  ;;  %v2429_v15 = vld [vmem:[%s4617_s3 + $0x188] sm:$0xff] }
  0x52   : > { %3518 = vmatpush3.bf16.msra.mxu0 %v3515_v17  ;;  %2909 = vmatprep.mubr.f32.mxu1 %v397_v24  ;;  %v2492_v17 = vld [vmem:[%s4617_s3 + $0x380] sm:$0xff]  ;;  %v3415_v21 = vpack.c.bf16 %v2429_v15, %v2428_v14  ;;  %v2430_v24 = vld [vmem:[%s4617_s3 + $0x190] sm:$0xff]  ;;  %v2505_v14 = vld [vmem:[%s4617_s3 + $0x3e8] sm:$0xff] }
  0x53   : > { %3133 = vmatprep.mubr.f32.mxu0 %v1334_v26  ;;  %3392 = vmatprep.subr.bf16.mxu1 %v3391_v25  ;;  %v3543_v23 = vpack.c.bf16 %v2493_v18, %v2492_v17  ;;  %v749_v26 = vld [vmem:[%s3962_s12 + $0xa] sm:$0xff]  ;;  %v1535_v15 = vld [vmem:[%s4283_s11 + $0x80] sm:$0xff] }
  0x54   : > { %2910 = vmatmul.mubr.f32.gmra.mrb[4].mxu1 %v398_v30  ;;  %3520 = vmatprep.subr.bf16.mxu0 %v3519_v27  ;;  %v750_v30 = vld [vmem:[%s3962_s12 + $0x1a] sm:$0xff]  ;;  %v1536_v18 = vld [vmem:[%s4283_s11 + $0x90] sm:$0xff] }
  0x55   : > { %3134 = vmatmul.mubr.f32.gmra.mrb[4].mxu0 %v1335_v33  ;;  %3394 = vmatpush3.bf16.msra.mxu1 %v3391_v25  ;;  %v2431_v25 = vld [vmem:[%s4617_s3 + $0x198] sm:$0xff] }
  0x56   : > { %3522 = vmatpush3.bf16.msra.mxu0 %v3519_v27  ;;  %2912 = vmatprep.mubr.f32.mxu1 %v399_v34  ;;  %v2494_v27 = vld [vmem:[%s4617_s3 + $0x390] sm:$0xff]  ;;  %v3419_v31 = vpack.c.bf16 %v2431_v25, %v2430_v24  ;;  %v2432_v34 = vld [vmem:[%s4617_s3 + $0x1a0] sm:$0xff]  ;;  %v2507_v24 = vld [vmem:[%s4617_s3 + $0x3f8] sm:$0xff] }
  0x57   : > { %3136 = vmatprep.mubr.f32.mxu0 %v1336_v36  ;;  %3396 = vmatprep.subr.bf16.mxu1 %v3395_v35  ;;  %v3547_v33 = vpack.c.bf16 %v2495_v28, %v2494_v27  ;;  %v751_v36 = vld [vmem:[%s3962_s12 + $0x22] sm:$0xff]  ;;  %v1537_v25 = vld [vmem:[%s4283_s11 + $0x98] sm:$0xff] }
  0x58   : > { %2913 = vmatmul.mubr.f32.gmra.mrb[6].mxu1 %v400_v40  ;;  %3524 = vmatprep.subr.bf16.mxu0 %v3523_v37  ;;  %v752_v40 = vld [vmem:[%s3962_s12 + $0x32] sm:$0xff]  ;;  %v1538_v28 = vld [vmem:[%s4283_s11 + $0xa8] sm:$0xff] }
  0x59   : > { %3137 = vmatmul.mubr.f32.gmra.mrb[6].mxu0 %v1337_v43  ;;  %3398 = vmatpush3.bf16.msra.mxu1 %v3395_v35  ;;  %v2433_v35 = vld [vmem:[%s4617_s3 + $0x1a8] sm:$0xff] }
  0x5a   : > { %3526 = vmatpush3.bf16.msra.mxu0 %v3523_v37  ;;  %2915 = vmatprep.mubr.f32.mxu1 %v401_v44  ;;  %v2496_v37 = vld [vmem:[%s4617_s3 + $0x3a0] sm:$0xff]  ;;  %v3423_v41 = vpack.c.bf16 %v2433_v35, %v2432_v34  ;;  %v2434_v44 = vld [vmem:[%s4617_s3 + $0x1b0] sm:$0xff] }
  0x5b   : > { %3139 = vmatprep.mubr.f32.mxu0 %v1338_v46  ;;  %3400 = vmatprep.subr.bf16.mxu1 %v3399_v45  ;;  %v3551_v43 = vpack.c.bf16 %v2497_v38, %v2496_v37  ;;  %v753_v46 = vld [vmem:[%s3962_s12 + $0x3a] sm:$0xff]  ;;  %v2510_v37 = vld [vmem:[%s4617_s3 + $0x410] sm:$0xff] }
  0x5c   : > { %2916 = vmatmul.mubr.f32.gmra.mrb[8].mxu1 %v402_v50  ;;  %3528 = vmatprep.subr.bf16.mxu0 %v3527_v47  ;;  %v754_v50 = vld [vmem:[%s3962_s12 + $0x4a] sm:$0xff]  ;;  %v942_v34 = vld [vmem:[%s3968_s17] sm:$0xff]  ;;  %v2511_v38 = vld [vmem:[%s4617_s3 + $0x418] sm:$0xff] }
  0x5d   : > { %3140 = vmatmul.mubr.f32.gmra.mrb[8].mxu0 %v1339_v53  ;;  %3402 = vmatpush3.bf16.msra.mxu1 %v3399_v45  ;;  %v2435_v45 = vld [vmem:[%s4617_s3 + $0x1b8] sm:$0xff] }
  0x5e   : > { %3530 = vmatpush3.bf16.msra.mxu0 %v3527_v47  ;;  %2918 = vmatprep.mubr.f32.mxu1 %v403_v54  ;;  %v2498_v47 = vld [vmem:[%s4617_s3 + $0x3b0] sm:$0xff]  ;;  %v3427_v51 = vpack.c.bf16 %v2435_v45, %v2434_v44  ;;  %v2436_v54 = vld [vmem:[%s4617_s3 + $0x1c0] sm:$0xff]  ;;  %v2513_v45 = vld [vmem:[%s4617_s3 + $0x428] sm:$0xff] }
  0x5f   : > { %3142 = vmatprep.mubr.f32.mxu0 %v1340_v56  ;;  %3404 = vmatprep.subr.bf16.mxu1 %v3403_v55  ;;  %v3555_v53 = vpack.c.bf16 %v2499_v48, %v2498_v47  ;;  %v755_v56 = vld [vmem:[%s3962_s12 + $0x52] sm:$0xff]  ;;  %v2512_v44 = vld [vmem:[%s4617_s3 + $0x420] sm:$0xff] }
  0x60   : > { %2919 = vmatmul.mubr.f32.gmra.mrb[10].mxu1 %v404_v60  ;;  %3532 = vmatprep.subr.bf16.mxu0 %v3531_v57  ;;  %v756_v60 = vld [vmem:[%s3962_s12 + $0x62] sm:$0xff]  ;;  %v946_v48 = vld [vmem:[%s3968_s17 + $0x30] sm:$0xff] }
  0x61   : > { %3143 = vmatmul.mubr.f32.gmra.mrb[10].mxu0 %v1341_v63  ;;  %3406 = vmatpush3.bf16.msra.mxu1 %v3403_v55  ;;  %v2437_v55 = vld [vmem:[%s4617_s3 + $0x1c8] sm:$0xff] }
  0x62   : > { %3534 = vmatpush3.bf16.msra.mxu0 %v3531_v57  ;;  %2921 = vmatprep.mubr.f32.mxu1 %v405_v0  ;;  %v2500_v57 = vld [vmem:[%s4617_s3 + $0x3c0] sm:$0xff]  ;;  %v3431_v61 = vpack.c.bf16 %v2437_v55, %v2436_v54  ;;  %v2438_v0 = vld [vmem:[%s4617_s3 + $0x1d0] sm:$0xff]  ;;  %v948_v55 = vld [vmem:[%s3968_s17 + $0x48] sm:$0xff] }
  0x63   : > { %3145 = vmatprep.mubr.f32.mxu0 %v1342_v2  ;;  %3408 = vmatprep.subr.bf16.mxu1 %v3407_v1  ;;  %v3559_v63 = vpack.c.bf16 %v2501_v58, %v2500_v57  ;;  %v757_v2 = vld [vmem:[%s3962_s12 + $0x6a] sm:$0xff]  ;;  %v1721_v47 = vld [vmem:[%s4283_s11 + $0x21] sm:$0xff]  ;;  %v1723_v54 = vld [vmem:[%s4283_s11 + $0x39] sm:$0xff] }
  0x64   : > { %2922 = vmatmul.mubr.f32.gmra.mrb[12].mxu1 %v406_v6  ;;  %3536 = vmatprep.subr.bf16.mxu0 %v3535_v3  ;;  %v758_v6 = vld [vmem:[%s3962_s12 + $0x7a] sm:$0xff]  ;;  %v1724_v57 = vld [vmem:[%s4283_s11 + $0x49] sm:$0xff] }
  0x65   : > { %3146 = vmatmul.mubr.f32.gmra.mrb[12].mxu0 %v1343_v9  ;;  %3410 = vmatpush3.bf16.msra.mxu1 %v3407_v1  ;;  %v2439_v1 = vld [vmem:[%s4617_s3 + $0x1d8] sm:$0xff]  ;;  %v2516_v58 = vld [vmem:[%s4617_s3 + $0x440] sm:$0xff] }
  0x66   : > { %3538 = vmatpush3.bf16.msra.mxu0 %v3535_v3  ;;  %2924 = vmatprep.mubr.f32.mxu1 %v407_v10  ;;  %v2502_v3 = vld [vmem:[%s4617_s3 + $0x3d0] sm:$0xff]  ;;  %v3435_v7 = vpack.c.bf16 %v2439_v1, %v2438_v0  ;;  %v2440_v10 = vld [vmem:[%s4617_s3 + $0x1e0] sm:$0xff] }
  0x67   : > { %3148 = vmatprep.mubr.f32.mxu0 %v1344_v12  ;;  %3412 = vmatprep.subr.bf16.mxu1 %v3411_v11  ;;  %v3563_v9 = vpack.c.bf16 %v2503_v4, %v2502_v3  ;;  %v759_v12 = vld [vmem:[%s3962_s12 + $0x82] sm:$0xff]  ;;  %v2518_v1 = vld [vmem:[%s4617_s3 + $0x450] sm:$0xff] }
  0x68   : > { %2925 = vmatmul.mubr.f32.gmra.mrb[14].mxu1 %v408_v16  ;;  %3540 = vmatprep.subr.bf16.mxu0 %v3539_v13  ;;  %v760_v16 = vld [vmem:[%s3962_s12 + $0x92] sm:$0xff]  ;;  %v1726_v0 = vld [vmem:[%s4283_s11 + $0x61] sm:$0xff]  ;;  %v1727_v4 = vld [vmem:[%s4283_s11 + $0x69] sm:$0xff] }
  0x69   : > { %3149 = vmatmul.mubr.f32.gmra.mrb[14].mxu0 %v1345_v19  ;;  %3414 = vmatpush3.bf16.msra.mxu1 %v3411_v11  ;;  %v2441_v11 = vld [vmem:[%s4617_s3 + $0x1e8] sm:$0xff] }
  0x6a   : > { %3542 = vmatpush3.bf16.msra.mxu0 %v3539_v13  ;;  %2959 = vmatprep.mubr.f32.mxu1 %v748_v20  ;;  %v2504_v13 = vld [vmem:[%s4617_s3 + $0x3e0] sm:$0xff]  ;;  %v3439_v17 = vpack.c.bf16 %v2441_v11, %v2440_v10  ;;  %v2442_v20 = vld [vmem:[%s4617_s3 + $0x1f0] sm:$0xff]  ;;  %v951_v3 = vld [vmem:[%s3968_s17 + $0x68] sm:$0xff] }
  0x6b   : > { %3183 = vmatprep.mubr.f32.mxu0 %v1524_v22  ;;  %3416 = vmatprep.subr.bf16.mxu1 %v3415_v21  ;;  %v3567_v19 = vpack.c.bf16 %v2505_v14, %v2504_v13  ;;  %v761_v22 = vld [vmem:[%s3962_s12 + $0x9a] sm:$0xff]  ;;  %v1730_v14 = vld [vmem:[%s4283_s11 + $0x91] sm:$0xff] }
  0x6c   : > { %2960 = vmatmul.mubr.f32.vlgmr.msra.gmra.mrb[0].mxu1 %v749_v26  ;;  %3544 = vmatprep.subr.bf16.mxu0 %v3543_v23  ;;  %v762_v26 = vld [vmem:[%s3962_s12 + $0xaa] sm:$0xff]  ;;  %v953_v10 = vld [vmem:[%s3968_s17 + $0x80] sm:$0xff] }
  0x6d   : > { %3184 = vmatmul.mubr.f32.vlgmr.msra.gmra.mrb[0].mxu0 %v1525_v29  ;;  %3418 = vmatpush3.bf16.msra.mxu1 %v3415_v21  ;;  %v2443_v21 = vld [vmem:[%s4617_s3 + $0x1f8] sm:$0xff]  ;;  %v1729_v11 = vld [vmem:[%s4283_s11 + $0x81] sm:$0xff] }
  0x6e   : > { %3546 = vmatpush3.bf16.msra.mxu0 %v3543_v23  ;;  %2962 = vmatprep.mubr.f32.mxu1 %v750_v30  ;;  %v2506_v23 = vld [vmem:[%s4617_s3 + $0x3f0] sm:$0xff]  ;;  %v3443_v27 = vpack.c.bf16 %v2443_v21, %v2442_v20  ;;  %v2508_v30 = vld [vmem:[%s4617_s3 + $0x400] sm:$0xff] }
  0x6f   : > { %3186 = vmatprep.mubr.f32.mxu0 %v1526_v32  ;;  %3420 = vmatprep.subr.bf16.mxu1 %v3419_v31  ;;  %v3571_v29 = vpack.c.bf16 %v2507_v24, %v2506_v23  ;;  %v763_v32 = vld [vmem:[%s3962_s12 + $0xb2] sm:$0xff]  ;;  %v1732_v21 = vld [vmem:[%s4283_s11 + $0xa9] sm:$0xff] }
  0x70   : > { %2963 = vmatmul.mubr.f32.gmra.mrb[2].mxu1 %v751_v36  ;;  %3548 = vmatprep.subr.bf16.mxu0 %v3547_v33  ;;  %v1718_v36 = vld [vmem:[%s4283_s11 + $0x1] sm:$0xff]  ;;  %v1733_v23 = vld [vmem:[%s4283_s11 + $0xb1] sm:$0xff] }
  0x71   : > { %3187 = vmatmul.mubr.f32.gmra.mrb[2].mxu0 %v1527_v39  ;;  %3422 = vmatpush3.bf16.msra.mxu1 %v3419_v31  ;;  %v2509_v31 = vld [vmem:[%s4617_s3 + $0x408] sm:$0xff] }
  0x72   : > { %3550 = vmatpush3.bf16.msra.mxu0 %v3547_v33  ;;  %2965 = vmatprep.mubr.f32.mxu1 %v752_v40  ;;  %v1539_v33 = vld [vmem:[%s4283_s11 + $0xb0] sm:$0xff]  ;;  %v3575_v35 = vpack.c.bf16 %v2509_v31, %v2508_v30  ;;  %v943_v39 = vld [vmem:[%s3968_s17 + $0x8] sm:$0xff] }
  0x73   : > { %3189 = vmatprep.mubr.f32.mxu0 %v1528_v42  ;;  %3424 = vmatprep.subr.bf16.mxu1 %v3423_v41  ;;  %v1719_v40 = vld [vmem:[%s4283_s11 + $0x9] sm:$0xff]  ;;  %v3579_v42 = vpack.c.bf16 %v2511_v38, %v2510_v37  ;;  %v1927_v38 = vld [vmem:[%s4283_s11 + $0xb2] sm:$0xff] }
  0x74   : > { %2966 = vmatmul.mubr.f32.gmra.mrb[4].mxu1 %v753_v46  ;;  %3552 = vmatprep.subr.bf16.mxu0 %v3551_v43  ;;  %v945_v46 = vld [vmem:[%s3968_s17 + $0x20] sm:$0xff]  ;;  %v1918_v37 = vld [vmem:[%s4283_s11 + $0x4a] sm:$0xff] }
  0x75   : > { %3190 = vmatmul.mubr.f32.gmra.mrb[4].mxu0 %v1529_v49  ;;  %3426 = vmatpush3.bf16.msra.mxu1 %v3423_v41  ;;  %v944_v41 = vld [vmem:[%s3968_s17 + $0x18] sm:$0xff]  ;;  %v3583_v49 = vpack.c.bf16 %v2513_v45, %v2512_v44  ;;  %v1912_v24 = vld [vmem:[%s4283_s11 + $0x2] sm:$0xff] }
  0x76   : > { %3554 = vmatpush3.bf16.msra.mxu0 %v3551_v43  ;;  %2968 = vmatprep.mubr.f32.mxu1 %v754_v50  ;;  %v1720_v43 = vld [vmem:[%s4283_s11 + $0x19] sm:$0xff]  ;;  %v1722_v50 = vld [vmem:[%s4283_s11 + $0x31] sm:$0xff]  ;;  %v1923_v30 = vld [vmem:[%s4283_s11 + $0x82] sm:$0xff] }
  0x77   : > { %3192 = vmatprep.mubr.f32.mxu0 %v1530_v52  ;;  %3428 = vmatprep.subr.bf16.mxu1 %v3427_v51  ;;  %v2515_v52 = vld [vmem:[%s4617_s3 + $0x438] sm:$0xff]  ;;  %v1915_v31 = vld [vmem:[%s4283_s11 + $0x22] sm:$0xff] }
  0x78   : > { %2969 = vmatmul.mubr.f32.gmra.mrb[6].mxu1 %v755_v56  ;;  %3556 = vmatprep.subr.bf16.mxu0 %v3555_v53 }
  0x79   : > { %3193 = vmatmul.mubr.f32.gmra.mrb[6].mxu0 %v1531_v59  ;;  %3430 = vmatpush3.bf16.msra.mxu1 %v3427_v51  ;;  %v2514_v51 = vld [vmem:[%s4617_s3 + $0x430] sm:$0xff]  ;;  %v2517_v59 = vld [vmem:[%s4617_s3 + $0x448] sm:$0xff] }
  0x7a   : > { %3558 = vmatpush3.bf16.msra.mxu0 %v3555_v53  ;;  %2971 = vmatprep.mubr.f32.mxu1 %v756_v60  ;;  %v947_v53 = vld [vmem:[%s3968_s17 + $0x38] sm:$0xff]  ;;  %v3587_v56 = vpack.c.bf16 %v2515_v52, %v2514_v51  ;;  %v949_v60 = vld [vmem:[%s3968_s17 + $0x50] sm:$0xff] }
  0x7b   : > { %3195 = vmatprep.mubr.f32.mxu0 %v1532_v62  ;;  %3432 = vmatprep.subr.bf16.mxu1 %v3431_v61  ;;  %v950_v62 = vld [vmem:[%s3968_s17 + $0x60] sm:$0xff] }
  0x7c   : > { %2972 = vmatmul.mubr.f32.gmra.mrb[8].mxu1 %v757_v2  ;;  %3560 = vmatprep.subr.bf16.mxu0 %v3559_v63  ;;  %v2519_v2 = vld [vmem:[%s4617_s3 + $0x458] sm:$0xff] }
  0x7d   : > { %3196 = vmatmul.mubr.f32.gmra.mrb[8].mxu0 %v1533_v5  ;;  %3434 = vmatpush3.bf16.msra.mxu1 %v3431_v61  ;;  %v1725_v61 = vld [vmem:[%s4283_s11 + $0x51] sm:$0xff] }
  0x7e   : > { %3562 = vmatpush3.bf16.msra.mxu0 %v3559_v63  ;;  %2974 = vmatprep.mubr.f32.mxu1 %v758_v6  ;;  %v3591_v63 = vpack.c.bf16 %v2517_v59, %v2516_v58  ;;  %v952_v5 = vld [vmem:[%s3968_s17 + $0x78] sm:$0xff]  ;;  %v3595_v6 = vpack.c.bf16 %v2519_v2, %v2518_v1 }
  0x7f   : > { %3198 = vmatprep.mubr.f32.mxu0 %v1534_v8  ;;  %3436 = vmatprep.subr.bf16.mxu1 %v3435_v7  ;;  %v2520_v8 = vld [vmem:[%s4617_s3 + $0x460] sm:$0xff] }
  0x80   : > { %2975 = vmatmul.mubr.f32.gmra.mrb[10].mxu1 %v759_v12  ;;  %3564 = vmatprep.subr.bf16.mxu0 %v3563_v9  ;;  %v954_v12 = vld [vmem:[%s3968_s17 + $0x90] sm:$0xff] }
  0x81   : > { %3199 = vmatmul.mubr.f32.gmra.mrb[10].mxu0 %v1535_v15  ;;  %3438 = vmatpush3.bf16.msra.mxu1 %v3435_v7  ;;  %v1728_v7 = vld [vmem:[%s4283_s11 + $0x79] sm:$0xff]  ;;  %v2522_v15 = vld [vmem:[%s4617_s3 + $0x470] sm:$0xff] }
  0x82   : > { %3566 = vmatpush3.bf16.msra.mxu0 %v3563_v9  ;;  %2977 = vmatprep.mubr.f32.mxu1 %v760_v16  ;;  %v2521_v9 = vld [vmem:[%s4617_s3 + $0x468] sm:$0xff]  ;;  %v2523_v16 = vld [vmem:[%s4617_s3 + $0x478] sm:$0xff] }
  0x83   : > { %3201 = vmatprep.mubr.f32.mxu0 %v1536_v18  ;;  %3440 = vmatprep.subr.bf16.mxu1 %v3439_v17  ;;  %v3599_v13 = vpack.c.bf16 %v2521_v9, %v2520_v8  ;;  %v1731_v18 = vld [vmem:[%s4283_s11 + $0x99] sm:$0xff]  ;;  %v3603_v20 = vpack.c.bf16 %v2523_v16, %v2522_v15 }
  0x84   : > { %2978 = vmatmul.mubr.f32.gmra.mrb[12].mxu1 %v761_v22  ;;  %3568 = vmatprep.subr.bf16.mxu0 %v3567_v19  ;;  %v957_v22 = vld [vmem:[%s3968_s17 + $0xb0] sm:$0xff]  ;;  %v4523_v8 = vld [vmem:[%s4618_s4] ss:$0 sm:$0xff] }
  0x85   : > { %3202 = vmatmul.mubr.f32.gmra.mrb[12].mxu0 %v1537_v25  ;;  %3442 = vmatpush3.bf16.msra.mxu1 %v3439_v17  ;;  %v955_v17 = vld [vmem:[%s3968_s17 + $0x98] sm:$0xff]  ;;  %v1920_v25 = vld [vmem:[%s4283_s11 + $0x62] sm:$0xff] }
  0x86   : > { %3570 = vmatpush3.bf16.msra.mxu0 %v3567_v19  ;;  %2980 = vmatprep.mubr.f32.mxu1 %v762_v26  ;;  %v956_v19 = vld [vmem:[%s3968_s17 + $0xa8] sm:$0xff]  ;;  %s2391_s17 = sshll.u32 %s3819_s22, 1 }
  0x87   : > { %3204 = vmatprep.mubr.f32.mxu0 %v1538_v28  ;;  %3444 = vmatprep.subr.bf16.mxu1 %v3443_v27  ;;  %v1921_v26 = vld [vmem:[%s4283_s11 + $0x6a] sm:$0xff]  ;;  %v1922_v28 = vld [vmem:[%s4283_s11 + $0x7a] sm:$0xff] }
  0x88   : > { %2981 = vmatmul.mubr.f32.gmra.mrb[14].mxu1 %v763_v32  ;;  %3572 = vmatprep.subr.bf16.mxu0 %v3571_v29  ;;  %v1924_v32 = vld [vmem:[%s4283_s11 + $0x92] sm:$0xff] }
  0x89   : > { %3205 = vmatmul.mubr.f32.gmra.mrb[14].mxu0 %v1539_v33  ;;  %3446 = vmatpush3.bf16.msra.mxu1 %v3443_v27  ;;  %v1913_v27 = vld [vmem:[%s4283_s11 + $0xa] sm:$0xff]  ;;  %v1916_v33 = vld [vmem:[%s4283_s11 + $0x32] sm:$0xff] }
  0x8a   : > { %3574 = vmatpush3.bf16.msra.mxu0 %v3571_v29  ;;  %3015 = vmatprep.mubr.f32.mxu1 %v942_v34  ;;  %v1914_v29 = vld [vmem:[%s4283_s11 + $0x1a] sm:$0xff] }
  0x8b   : > { %3239 = vmatprep.mubr.f32.mxu0 %v1718_v36  ;;  %3576 = vmatprep.subr.bf16.mxu0 %v3575_v35  ;;  %v1925_v34 = vld [vmem:[%s4283_s11 + $0x9a] sm:$0xff]  ;;  %v1926_v36 = vld [vmem:[%s4283_s11 + $0xaa] sm:$0xff] }
  0x8c   : > { %3016 = vmatmul.mubr.f32.vlgmr.msra.gmra.mrb[0].mxu1 %v943_v39  ;;  %3607 = vmatprep.subr.bf16.mxu1 %v3575_v35  ;;  %v1919_v39 = vld [vmem:[%s4283_s11 + $0x52] sm:$0xff] }
  0x8d   : > { %3240 = vmatmul.mubr.f32.vlgmr.msra.gmra.mrb[0].mxu0 %v1719_v40  ;;  %3615 = vmatpush3.bf16.msra.mxu1 %v3575_v35 }
  0x8e   : > { %3578 = vmatpush3.bf16.msra.mxu0 %v3575_v35  ;;  %3018 = vmatprep.mubr.f32.mxu1 %v944_v41  ;;  %v1917_v35 = vld [vmem:[%s4283_s11 + $0x3a] sm:$0xff]  ;;  %s376_s11 = sadd.s32 %s3815_s21, %s2391_s17  ;;  %s4636_s21 = smov (!%p387_p8, %s3815_s21), 1 }
  0x8f   : > { %3242 = vmatprep.mubr.f32.mxu0 %v1720_v43  ;;  %3580 = vmatprep.subr.bf16.mxu0 %v3579_v42  ;;  %s2392_s9 = sshll.u32 %s376_s11, 4  ;;  %s390_s18 = sadd.s32 %s2394_s10, %s4636_s21 }
  0x90   : > { %3019 = vmatmul.mubr.f32.gmra.mrb[2].mxu1 %v945_v46  ;;  %3608 = vmatprep.subr.bf16.mxu1 %v3579_v42  ;;  %p378_p7 = scmp.lt.s32.totalorder %s2392_s9, 63  ;;  %s2395_s19 = sshll.u32 %s390_s18, 1 }
  0x91   : > { %3243 = vmatmul.mubr.f32.gmra.mrb[2].mxu0 %v1721_v47  ;;  %3616 = vmatpush3.bf16.msra.mxu1 %v3579_v42  ;;  %s392_s29 = scalar_lea.vmem %s4620_s6, %s2395_s19 }
  0x92   : > { %3582 = vmatpush3.bf16.msra.mxu0 %v3579_v42  ;;  %3021 = vmatprep.mubr.f32.mxu1 %v946_v48  ;;  %s4634_s9 = smov (!%p378_p7, %s2392_s9), 63 }
  0x93   : > { %3245 = vmatprep.mubr.f32.mxu0 %v1722_v50  ;;  %3584 = vmatprep.subr.bf16.mxu0 %v3583_v49  ;;  %s2393_s22 = sshll.u32 %s4634_s9, 3 }
  0x94   : > { %3022 = vmatmul.mubr.f32.gmra.mrb[4].mxu1 %v947_v53  ;;  %3609 = vmatprep.subr.bf16.mxu1 %v3583_v49  ;;  %s4528_s15 = scalar_lea.vmem %s4619_s5, %s2393_s22 }
  0x95   : > { %3246 = vmatmul.mubr.f32.gmra.mrb[4].mxu0 %v1723_v54  ;;  %3617 = vmatpush3.bf16.msra.mxu1 %v3583_v49 }
  0x96   : > { %3586 = vmatpush3.bf16.msra.mxu0 %v3583_v49  ;;  %3024 = vmatprep.mubr.f32.mxu1 %v948_v55 }
  0x97   : > { %3248 = vmatprep.mubr.f32.mxu0 %v1724_v57  ;;  %3588 = vmatprep.subr.bf16.mxu0 %v3587_v56 }
  0x98   : > { %3025 = vmatmul.mubr.f32.gmra.mrb[6].mxu1 %v949_v60  ;;  %3610 = vmatprep.subr.bf16.mxu1 %v3587_v56 }
  0x99   : > { %3249 = vmatmul.mubr.f32.gmra.mrb[6].mxu0 %v1725_v61  ;;  %3618 = vmatpush3.bf16.msra.mxu1 %v3587_v56 }
  0x9a   : > { %3590 = vmatpush3.bf16.msra.mxu0 %v3587_v56  ;;  %3027 = vmatprep.mubr.f32.mxu1 %v950_v62 }
  0x9b   : > { %3251 = vmatprep.mubr.f32.mxu0 %v1726_v0  ;;  %3592 = vmatprep.subr.bf16.mxu0 %v3591_v63 }
  0x9c   : > { %3028 = vmatmul.mubr.f32.gmra.mrb[8].mxu1 %v951_v3  ;;  %3611 = vmatprep.subr.bf16.mxu1 %v3591_v63 }
  0x9d   : > { %3252 = vmatmul.mubr.f32.gmra.mrb[8].mxu0 %v1727_v4  ;;  %3619 = vmatpush3.bf16.msra.mxu1 %v3591_v63 }
  0x9e   : > { %3594 = vmatpush3.bf16.msra.mxu0 %v3591_v63  ;;  %3030 = vmatprep.mubr.f32.mxu1 %v952_v5 }
  0x9f   : > { %3254 = vmatprep.mubr.f32.mxu0 %v1728_v7  ;;  %3596 = vmatprep.subr.bf16.mxu0 %v3595_v6 }
  0xa0   : > { %3031 = vmatmul.mubr.f32.gmra.mrb[10].mxu1 %v953_v10  ;;  %3612 = vmatprep.subr.bf16.mxu1 %v3595_v6 }
  0xa1   : > { %3255 = vmatmul.mubr.f32.gmra.mrb[10].mxu0 %v1729_v11  ;;  %3620 = vmatpush3.bf16.msra.mxu1 %v3595_v6 }
  0xa2   : > { %3598 = vmatpush3.bf16.msra.mxu0 %v3595_v6  ;;  %3033 = vmatprep.mubr.f32.mxu1 %v954_v12 }
  0xa3   : > { %3257 = vmatprep.mubr.f32.mxu0 %v1730_v14  ;;  %3600 = vmatprep.subr.bf16.mxu0 %v3599_v13 }
  0xa4   : > { %3034 = vmatmul.mubr.f32.gmra.mrb[12].mxu1 %v955_v17  ;;  %3613 = vmatprep.subr.bf16.mxu1 %v3599_v13 }
  0xa5   : > { %3258 = vmatmul.mubr.f32.gmra.mrb[12].mxu0 %v1731_v18  ;;  %3621 = vmatpush3.bf16.msra.mxu1 %v3599_v13 }
  0xa6   : > { %3602 = vmatpush3.bf16.msra.mxu0 %v3599_v13  ;;  %3036 = vmatprep.mubr.f32.mxu1 %v956_v19 }
  0xa7   : > { %3260 = vmatprep.mubr.f32.mxu0 %v1732_v21  ;;  %3604 = vmatprep.subr.bf16.mxu0 %v3603_v20 }
  0xa8   : > { %3037 = vmatmul.mubr.f32.gmra.mrb[14].mxu1 %v957_v22  ;;  %3614 = vmatprep.subr.bf16.mxu1 %v3603_v20 }
  0xa9   : > { %3261 = vmatmul.mubr.f32.gmra.mrb[14].mxu0 %v1733_v23  ;;  %3622 = vmatpush3.bf16.msra.mxu1 %v3603_v20 }
  0xaa   : > { %3606 = vmatpush3.bf16.msra.mxu0 %v3603_v20  ;;  %3295 = vmatprep.mubr.f32.mxu0 %v1912_v24 }
  0xab   : > { %3307 = vmatprep.mubr.f32.mxu1 %v1920_v25 }
  0xac   : > { %3308 = vmatmul.mubr.f32.vlgmr.msra.gmra.mrb[16].mxu1 %v1921_v26 }
  0xad   : > { %3296 = vmatmul.mubr.f32.vlgmr.msra.gmra.mrb[0].mxu0 %v1913_v27  ;;  %3310 = vmatprep.mubr.f32.mxu1 %v1922_v28 }
  0xae   : > { %3298 = vmatprep.mubr.f32.mxu0 %v1914_v29 }
  0xb0   : > { %3311 = vmatmul.mubr.f32.gmra.mrb[18].mxu1 %v1923_v30 }
  0xb1   : > { %3299 = vmatmul.mubr.f32.gmra.mrb[2].mxu0 %v1915_v31  ;;  %3313 = vmatprep.mubr.f32.mxu1 %v1924_v32 }
  0xb2   : > { %3301 = vmatprep.mubr.f32.mxu0 %v1916_v33 }
  0xb4   : > { %3314 = vmatmul.mubr.f32.gmra.mrb[20].mxu1 %v1925_v34 }
  0xb5   : > { %3302 = vmatmul.mubr.f32.gmra.mrb[4].mxu0 %v1917_v35  ;;  %3316 = vmatprep.mubr.f32.mxu1 %v1926_v36 }
  0xb6   : > { %3304 = vmatprep.mubr.f32.mxu0 %v1918_v37 }
  0xb8   : > { %3317 = vmatmul.mubr.f32.gmra.mrb[22].mxu1 %v1927_v38 }
  0xb9   : > { %3305 = vmatmul.mubr.f32.gmra.mrb[6].mxu0 %v1919_v39 }
 0x15f   : > { %v3017_v40 = vpop.f32.mrb[0].mxu1 }
 0x160   : > { %v1041_v41 = vpop.f32.mrb[1].mxu1 }
 0x163   : > { %v3020_v42 = vpop.f32.mrb[2].mxu1 }
 0x164   : > { %v4504_v43 = vpop.f32.mrb[3].mxu1 }
 0x167   : > { %v4506_v44 = vpop.f32.mrb[4].mxu1 }
 0x168   : > { %v4508_v45 = vpop.f32.mrb[5].mxu1 }
 0x16b   : > { %v4510_v46 = vpop.f32.mrb[6].mxu1 }
 0x16c   : > { %v4512_v47 = vpop.f32.mrb[7].mxu1 }
 0x16f   : > { %v3029_v48 = vpop.f32.mrb[8].mxu1 }
 0x170   : > { %v3253_v49 = vpop.f32.mrb[8].mxu0  ;;  %v1081_v50 = vpop.f32.mrb[9].mxu1 }
 0x171   : > { %v3631_v51 = vadd.f32 %v3253_v49, %v3029_v48  ;;  %v1857_v52 = vpop.f32.mrb[9].mxu0 }
 0x172   : > { %v3633_v53 = vadd.f32 %v1857_v52, %v1081_v50 }
 0x173   : > { %v3032_v54 = vpop.f32.mrb[10].mxu1 }
 0x174   : > { %v3256_v55 = vpop.f32.mrb[10].mxu0  ;;  %v1091_v56 = vpop.f32.mrb[11].mxu1 }
 0x175   : > { %v3635_v57 = vadd.f32 %v3256_v55, %v3032_v54  ;;  %v1867_v58 = vpop.f32.mrb[11].mxu0 }
 0x176   : > { %v3637_v59 = vadd.f32 %v1867_v58, %v1091_v56 }
 0x177   : > { %v3035_v60 = vpop.f32.mrb[12].mxu1 }
 0x178   : > { %v3259_v61 = vpop.f32.mrb[12].mxu0  ;;  %v1101_v62 = vpop.f32.mrb[13].mxu1 }
 0x179   : > { %v3639_v63 = vadd.f32 %v3259_v61, %v3035_v60  ;;  %v1877_v0 = vpop.f32.mrb[13].mxu0 }
 0x17a   : > { %v3641_v1 = vadd.f32 %v1877_v0, %v1101_v62 }
 0x17b   : > { %v3038_v2 = vpop.f32.mrb[14].mxu1 }
 0x17c   : > { %v3262_v3 = vpop.f32.mrb[14].mxu0  ;;  %v1111_v4 = vpop.f32.mrb[15].mxu1 }
 0x17d   : > { %v4516_v5 = vadd.f32 %v3262_v3, %v3038_v2  ;;  %v1887_v6 = vpop.f32.mrb[15].mxu0 }
 0x17e   : > { %v4518_v7 = vadd.f32 %v1887_v6, %v1111_v4 }
 0x17f   : > { %v3309_v9 = vpop.f32.mrb[16].mxu1 }
 0x180   : > { %v3297_v10 = vpop.f32.mrb[0].mxu0  ;;  %v3632_v11 = vadd.f32 %v3631_v51, %v3309_v9  ;;  %v2051_v12 = vpop.f32.mrb[17].mxu1 }
 0x181   : > { %v3623_v13 = vadd.f32 %v3297_v10, %v3017_v40  ;;  %v2011_v14 = vpop.f32.mrb[1].mxu0  ;;  %v3634_v15 = vadd.f32 %v3633_v53, %v2051_v12 }
 0x182   : > { %v4531_v16 = vadd.f32 %v3632_v11, %v4523_v8  ;;  %v3624_v17 = vadd.f32 %v2011_v14, %v1041_v41 }
 0x183   : > { %v2114_v18 = vadd.f32 %v3623_v13, %v4523_v8  ;;  %v4535_v19 = vadd.f32 %v3634_v15, %v4523_v8  ;;  %v3312_v20 = vpop.f32.mrb[18].mxu1 }
 0x184   : > { %2138 = vst [vmem:[%s4528_s15 + $0x48] sm:$0xff] %v4531_v16  ;;  %v2113_v21 = vadd.f32 %v3624_v17, %v4523_v8  ;;  %v3300_v22 = vpop.f32.mrb[2].mxu0  ;;  %v3636_v23 = vadd.f32 %v3635_v57, %v3312_v20  ;;  %v2061_v24 = vpop.f32.mrb[19].mxu1  ;;  %v2175_v20 = vmul.f32 %v4531_v16, %v4531_v16 }
 0x185   : > { %2130 = vst [vmem:[%s4528_s15 + $0x8] sm:$0xff] %v2114_v18  ;;  %v2167_v25 = vmul.f32 %v2114_v18, %v2114_v18  ;;  %2137 = vst [vmem:[%s4528_s15 + $0x40] sm:$0xff] %v4535_v19  ;;  %v3625_v26 = vadd.f32 %v3300_v22, %v3020_v42  ;;  %v2021_v27 = vpop.f32.mrb[3].mxu0  ;;  %v3638_v28 = vadd.f32 %v3637_v59, %v2061_v24 }
 0x186   : > { %2129 = vst [vmem:[%s4528_s15] sm:$0xff] %v2113_v21  ;;  %v2145_v29 = vadd.f32 %v2114_v18, %v2113_v21  ;;  %v2166_v30 = vmul.f32 %v2113_v21, %v2113_v21  ;;  %v4545_v31 = vadd.f32 %v3636_v23, %v4523_v8  ;;  %v3626_v32 = vadd.f32 %v2021_v27, %v4504_v43 }
 0x187   : > { %v2116_v33 = vadd.f32 %v3625_v26, %v4523_v8  ;;  %v4550_v34 = vadd.f32 %v3638_v28, %v4523_v8  ;;  %v3315_v35 = vpop.f32.mrb[20].mxu1 }
 0x188   : > { %v2182_v36 = vadd.f32 %v2167_v25, %v2166_v30  ;;  %2140 = vst [vmem:[%s4528_s15 + $0x58] sm:$0xff] %v4545_v31  ;;  %v2115_v37 = vadd.f32 %v3626_v32, %v4523_v8  ;;  %v3303_v38 = vpop.f32.mrb[4].mxu0  ;;  %v3640_v39 = vadd.f32 %v3639_v63, %v3315_v35  ;;  %v2071_v40 = vpop.f32.mrb[21].mxu1  ;;  %v2177_v25 = vmul.f32 %v4545_v31, %v4545_v31 }
 0x189   : > { %2132 = vst [vmem:[%s4528_s15 + $0x18] sm:$0xff] %v2116_v33  ;;  %2139 = vst [vmem:[%s4528_s15 + $0x50] sm:$0xff] %v4550_v34  ;;  %v3627_v41 = vadd.f32 %v3303_v38, %v4506_v44  ;;  %v2031_v42 = vpop.f32.mrb[5].mxu0  ;;  %v3642_v43 = vadd.f32 %v3641_v1, %v2071_v40  ;;  %v2169_v55 = vmul.f32 %v2116_v33, %v2116_v33 }
 0x18a   : > { %2131 = vst [vmem:[%s4528_s15 + $0x10] sm:$0xff] %v2115_v37  ;;  %v2146_v48 = vadd.f32 %v2145_v29, %v2115_v37  ;;  %v2168_v49 = vmul.f32 %v2115_v37, %v2115_v37  ;;  %v2126_v50 = vadd.f32 %v3640_v39, %v4523_v8  ;;  %v3628_v51 = vadd.f32 %v2031_v42, %v4508_v45 }
 0x18b   : > { %v2118_v52 = vadd.f32 %v3627_v41, %v4523_v8  ;;  %v2125_v53 = vadd.f32 %v3642_v43, %v4523_v8  ;;  %v3318_v54 = vpop.f32.mrb[22].mxu1  ;;  %v2176_v22 = vmul.f32 %v4550_v34, %v4550_v34 }
 0x18c   : > { %v2183_v56 = vadd.f32 %v2182_v36, %v2168_v49  ;;  %2142 = vst [vmem:[%s4528_s15 + $0x68] sm:$0xff] %v2126_v50  ;;  %v2117_v44 = vadd.f32 %v3628_v51, %v4523_v8  ;;  %v2147_v57 = vadd.f32 %v2146_v48, %v2116_v33  ;;  %v3306_v58 = vpop.f32.mrb[6].mxu0  ;;  %v2081_v59 = vpop.f32.mrb[23].mxu1  ;;  %v3644_v45 = vadd.f32 %v4516_v5, %v3318_v54 }
 0x18d   : > { %2134 = vst [vmem:[%s4528_s15 + $0x28] sm:$0xff] %v2118_v52  ;;  %2141 = vst [vmem:[%s4528_s15 + $0x60] sm:$0xff] %v2125_v53  ;;  %v3629_v60 = vadd.f32 %v3306_v58, %v4510_v46  ;;  %v2041_v61 = vpop.f32.mrb[7].mxu0  ;;  %v3646_v4 = vadd.f32 %v4518_v7, %v2081_v59  ;;  %v2171_v6 = vmul.f32 %v2118_v52, %v2118_v52 }
 0x18e   : > { %2133 = vst [vmem:[%s4528_s15 + $0x20] sm:$0xff] %v2117_v44  ;;  %v2148_v62 = vadd.f32 %v2147_v57, %v2117_v44  ;;  %v2170_v63 = vmul.f32 %v2117_v44, %v2117_v44  ;;  %v2184_v0 = vadd.f32 %v2183_v56, %v2169_v55  ;;  %v3630_v1 = vadd.f32 %v2041_v61, %v4512_v47 }
 0x18f   : > { %v2120_v2 = vadd.f32 %v3629_v60, %v4523_v8  ;;  %v2128_v3 = vadd.f32 %v3644_v45, %v4523_v8  ;;  %v2127_v10 = vadd.f32 %v3646_v4, %v4523_v8  ;;  %v2174_v7 = vmul.f32 %v4535_v19, %v4535_v19 }
 0x190   : > { %v2185_v46 = vadd.f32 %v2184_v0, %v2170_v63  ;;  %v2119_v9 = vadd.f32 %v3630_v1, %v4523_v8  ;;  %v2149_v5 = vadd.f32 %v2148_v62, %v2118_v52  ;;  %v2178_v27 = vmul.f32 %v2125_v53, %v2125_v53 }
 0x191   : > { %2136 = vst [vmem:[%s4528_s15 + $0x38] sm:$0xff] %v2120_v2  ;;  %2144 = vst [vmem:[%s4528_s15 + $0x78] sm:$0xff] %v2128_v3  ;;  %v2173_v47 = vmul.f32 %v2120_v2, %v2120_v2  ;;  %v2180_v35 = vmul.f32 %v2127_v10, %v2127_v10  ;;  %v2181_v37 = vmul.f32 %v2128_v3, %v2128_v3 }
 0x192   : > { %2135 = vst [vmem:[%s4528_s15 + $0x30] sm:$0xff] %v2119_v9  ;;  %v2150_v11 = vadd.f32 %v2149_v5, %v2119_v9  ;;  %v2172_v12 = vmul.f32 %v2119_v9, %v2119_v9  ;;  %v2186_v13 = vadd.f32 %v2185_v46, %v2171_v6  ;;  %2143 = vst [vmem:[%s4528_s15 + $0x70] sm:$0xff] %v2127_v10 }
 0x194   : > { %v2151_v14 = vadd.f32 %v2150_v11, %v2120_v2  ;;  %v2187_v15 = vadd.f32 %v2186_v13, %v2172_v12 }
 0x196   : > { %v2152_v17 = vadd.f32 %v2151_v14, %v4535_v19  ;;  %v2188_v18 = vadd.f32 %v2187_v15, %v2173_v47 }
 0x198   : > { %v2153_v21 = vadd.f32 %v2152_v17, %v4531_v16  ;;  %v2189_v8 = vadd.f32 %v2188_v18, %v2174_v7  ;;  %v2179_v16 = vmul.f32 %v2126_v50, %v2126_v50 }
 0x19a   : > { %v2190_v23 = vadd.f32 %v2189_v8, %v2175_v20  ;;  %v2154_v24 = vadd.f32 %v2153_v21, %v4550_v34 }
 0x19c   : > { %v2155_v26 = vadd.f32 %v2154_v24, %v4545_v31  ;;  %v2191_v19 = vadd.f32 %v2190_v23, %v2176_v22 }
 0x19e   : > { %v2156_v28 = vadd.f32 %v2155_v26, %v2125_v53  ;;  %v2192_v29 = vadd.f32 %v2191_v19, %v2177_v25 }
 0x1a0   : > { %v2157_v30 = vadd.f32 %v2156_v28, %v2126_v50  ;;  %v2193_v32 = vadd.f32 %v2192_v29, %v2178_v27 }
 0x1a2   : > { %v2158_v33 = vadd.f32 %v2157_v30, %v2127_v10  ;;  %v2194_v36 = vadd.f32 %v2193_v32, %v2179_v16 }
 0x1a4   : > { %v2159_v34 = vadd.f32 %v2158_v33, %v2128_v3  ;;  %v2195_v38 = vadd.f32 %v2194_v36, %v2180_v35 }
 0x1a6   : > { %v2160_v39 = vrot.slane %v2159_v34, 4  ;;  %v2196_v40 = vadd.f32 %v2195_v38, %v2181_v37 }
 0x1a8   : > { %v2161_v31 = vadd.f32 %v2160_v39, %v2159_v34  ;;  %v2197_v41 = vrot.slane %v2196_v40, 4 }
 0x1aa   : > { %v2162_v42 = vrot.slane %v2161_v31, 2  ;;  %v2198_v43 = vadd.f32 %v2197_v41, %v2196_v40 }
 0x1ac   : > { %v2163_v48 = vadd.f32 %v2162_v42, %v2161_v31  ;;  %v2199_v49 = vrot.slane %v2198_v43, 2 }
 0x1ae   : > { %v2164_v50 = vrot.slane %v2163_v48, 1  ;;  %v2200_v51 = vadd.f32 %v2199_v49, %v2198_v43 }
 0x1b0   : > { %v2201_v52 = vrot.slane %v2200_v51, 1  ;;  %v2165_v53 = vadd.f32 %v2164_v50, %v2163_v48 }
 0x1b2   : > { %v2202_v54 = vadd.f32 %v2201_v52, %v2200_v51 }
 0x1b4   : > { %v2204_v55 = vsel %vm2203_vm0, %v2165_v53, %v2202_v54 }
 0x1b5   : > { %2205 = vst [vmem:[%s392_s29] sm:$0x3] %v2204_v55 }
 0x1b6 PF: > { %s17_s25 = sadd.s32 1, %s3831_s25   ;;  %s4621_s21 = smov %s3823_s23 }
 0x1b7   : > { %p14_p9 = scmp.ge.s32.totalorder %s17_s25, 6   ;;  %s4622_s22 = smov %s3827_s24 }
 0x1b8   : > { %s4623_s23 = smov %s4626_s26  ;;  %s4624_s24 = smov %s4630_s27 }
 0x1b9   :  { %16 = sbr.rel (!%p14_p9) target bundleno = 3 (0x3), region = 96 }

</bundles_post_ra>
